<compile_context>
chip_gen: v7x
topology: tpu7x:2x2x1
jax: 0.10.0
libtpu: 0.0.40
codegen_flags: <defaults>
</compile_context>

<pallas_src>
import functools

import jax
import jax.numpy as jnp
from jax.experimental import pallas as pl
from jax.experimental.pallas import tpu as pltpu

LANE = 128      # TPU lane width; hidden / head dims are zero-padded to this.
SUBLANE = 8     # f32 sublane count; batch is zero-padded to a multiple of this.
GATE_PERM = (0, 1, 3, 2)   # PyTorch [i, f, g, o] -> kernel [i, f, o, g]


def _lstm_kernel(T, Bp, H, Hp,
                 x_ref,                 # (T*Bp, D)   bf16, time-major rows
                 wih0_ref, whh0_ref,    # (D, 4Hp) (Hp, 4Hp)   bf16
                 b0_ref,                # (1, 4Hp)    f32
                 w1_ref,                # (2Hp, 4Hp)  bf16  = [[wih1],[whh1]]
                 b1_ref,                # (1, 4Hp)    f32
                 gamma_ref, beta_ref,   # (1, Hp)     f32, zero-padded
                 wh_ref, bh_ref,        # (Hp, 128) bf16, (1, 128) f32
                 out_ref):              # (Bp, 128)   f32
    f32, bf16 = jnp.float32, jnp.bfloat16

    wih0 = wih0_ref[...]
    whh0 = whh0_ref[...]
    w1 = w1_ref[...]

    # Hoisted bias broadcast (JAX does not CSE broadcast_in_dim per iteration).
    b1 = jnp.broadcast_to(b1_ref[...], (Bp, 4 * Hp)).astype(f32)

    # Hoisted layer-0 input projection: one (T*Bp, D) @ (D, 4Hp) matmul with
    # the bias folded in.  Bp == 8k, so every per-step row slice below is an
    # (8, 128)-tile-aligned free view.
    xz = jnp.dot(x_ref[...], wih0, preferred_element_type=f32) + b0_ref[...]

    def gates(z):
        # Gate blocks were reordered to [i, f, o, g] in the wrapper, so the
        # three sigmoids are one contiguous (Bp, 3*Hp) slab and tanh one slab.
        sig = jax.nn.sigmoid(z[:, :3 * Hp])
        g = jnp.tanh(z[:, 3 * Hp:])
        return sig[:, 0:Hp], sig[:, Hp:2 * Hp], sig[:, 2 * Hp:3 * Hp], g

    zeros_f32 = jnp.zeros((Bp, Hp), f32)
    zeros_bf16 = jnp.zeros((Bp, Hp), bf16)
    c0, c1, h1 = zeros_f32, zeros_f32, zeros_f32
    h0b, h1b = zeros_bf16, zeros_bf16

    # T is a static Python int -> full unroll; layer1(t) and layer0(t+1) are
    # data-independent so the scheduler can interleave their MXU/EUP work.
    # TODO(synk): for T beyond ~16, switch to lax.fori_loop(..., unroll=2..4)
    # or a T grid ("arbitrary") with h/c carried in VMEM scratch to bound vreg
    # pressure and code size.
    # TODO(synk): v5e alternative: fuse h0 @ [whh0 || wih1] (N = 8*Hp) instead
    # of the K=256 fusion; verify which wins from the bundle dump.
    for t in range(T):
        # layer 0:  z0(t) = xz(t) + h0(t-1) @ whh0
        z0 = xz[t * Bp:(t + 1) * Bp, :] + jnp.dot(
            h0b, whh0, preferred_element_type=f32)
        i0, f0, o0, g0 = gates(z0)
        c0 = f0 * c0 + i0 * g0
        h0 = o0 * jnp.tanh(c0)
        h0b = h0.astype(bf16)                 # single cast, reused next step

        # layer 1 (K-fused):  z1(t) = [h0(t) | h1(t-1)] @ [[wih1],[whh1]] + b1
        # one MXU launch per step, K = 2*Hp = 256 fills the v6e/v7x MXU depth.
        z1 = jnp.dot(jnp.concatenate([h0b, h1b], axis=-1), w1,
                     preferred_element_type=f32) + b1
        i1, f1, o1, g1 = gates(z1)
        c1 = f1 * c1 + i1 * g1
        h1 = o1 * jnp.tanh(c1)
        h1b = h1.astype(bf16)

    # LayerNorm over the H real lanes (padded lanes of h1 are exactly 0:
    # zero-padded gate weights/biases keep c_pad = h_pad = 0 for all steps).
    lane = jax.lax.broadcasted_iota(jnp.int32, (1, Hp), 1)
    valid = lane < H
    inv_h = 1.0 / H
    mean = jnp.sum(h1, axis=-1, keepdims=True) * inv_h
    centered = jnp.where(valid, h1 - mean, 0.0)
    var = jnp.sum(centered * centered, axis=-1, keepdims=True) * inv_h
    y = centered * jax.lax.rsqrt(var + 1e-5) * gamma_ref[...] + beta_ref[...]
    y = jnp.maximum(y, 0.0)                   # ReLU; padded lanes stay 0

    # Lane-dense head: (Bp, 128) unmasked store; real logits are columns 0..1.
    out_ref[...] = (jnp.dot(y.astype(bf16), wh_ref[...],
                            preferred_element_type=f32) + bh_ref[...])


def _pad_gate_cols(w, H, Hp):
    """(In, 4H) PyTorch [i,f,g,o] -> (In, 4Hp) reordered [i,f,o,g], zero-padded."""
    In = w.shape[0]
    w = w.reshape(In, 4, H)[:, GATE_PERM, :]
    w = jnp.pad(w, ((0, 0), (0, 0), (0, Hp - H)))
    return w.reshape(In, 4 * Hp)


def _pad_rows(w, Hp):
    return jnp.pad(w, ((0, Hp - w.shape[0]), (0, 0)))


def lstm_forward(x, params):
    """x: (B, T, D) float32, batch_first like the PyTorch module."""
    B, T, D = x.shape
    H = params["whh0"].shape[0]
    Hp = max(LANE, ((H + LANE - 1) // LANE) * LANE)
    Bp = max(SUBLANE, ((B + SUBLANE - 1) // SUBLANE) * SUBLANE)
    No = LANE  # lane-dense head width; real logits are the first 2 columns
    bf16 = jnp.bfloat16

    # ---- pad + reorder params; matmul weights go to bf16 in the wrapper so
    # the kernel never holds f32 copies and the entry DMA bytes are halved.
    wih0 = _pad_gate_cols(params["wih0"], H, Hp).astype(bf16)        # (D, 4Hp)
    whh0 = _pad_rows(_pad_gate_cols(params["whh0"], H, Hp), Hp).astype(bf16)
    b0 = _pad_gate_cols(params["b0"], H, Hp)                         # (1, 4Hp)
    w1 = jnp.concatenate(
        [_pad_rows(_pad_gate_cols(params["wih1"], H, Hp), Hp),
         _pad_rows(_pad_gate_cols(params["whh1"], H, Hp), Hp)],
        axis=0).astype(bf16)                                         # (2Hp,4Hp)
    b1 = _pad_gate_cols(params["b1"], H, Hp)                         # (1, 4Hp)
    gamma = jnp.pad(params["gamma"], ((0, 0), (0, Hp - H)))          # (1, Hp)
    beta = jnp.pad(params["beta"], ((0, 0), (0, Hp - H)))            # (1, Hp)
    wh = jnp.pad(params["wh"],
                 ((0, Hp - H), (0, No - params["wh"].shape[1]))).astype(bf16)
    bh = jnp.pad(params["bh"], ((0, 0), (0, No - params["bh"].shape[1])))

    # Time-major, batch zero-padded to Bp sublanes, bf16.  Row index = t*Bp + b
    # so the hoisted projection rows of step t are a tile-aligned static slice.
    # TODO(synk): once a T grid exists, feed x via a BlockSpec index_map
    # instead of this wrapper-side transpose/pad pass.
    x_tm = jnp.pad(jnp.transpose(x, (1, 0, 2)), ((0, 0), (0, Bp - B), (0, 0)))
    x2d = x_tm.reshape(T * Bp, D).astype(bf16)

    args = (x2d, wih0, whh0, b0, w1, b1, gamma, beta, wh, bh)

    # Explicit scoped-VMEM budget sized from the actual operand footprint
    # (v5e default scoped limit is only 16 MiB; v7x physical VMEM is 64 MiB).
    footprint = sum(int(a.size) * a.dtype.itemsize for a in args)
    footprint += T * Bp * 4 * Hp * 4 + Bp * No * 4           # xz + out
    vmem_limit = int(min(max(6 * footprint, 16 * 2**20), 48 * 2**20))

    kernel = functools.partial(_lstm_kernel, T, Bp, H, Hp)
    vmem = pl.BlockSpec(memory_space=pltpu.MemorySpace.VMEM)

    # TODO(synk): for large B add a leading batch grid axis with
    # dimension_semantics=("parallel",) so v7x's second TensorCore is used.
    out = pl.pallas_call(
        kernel,
        out_shape=jax.ShapeDtypeStruct((Bp, No), jnp.float32),
        in_specs=[vmem] * len(args),
        out_specs=vmem,
        compiler_params=pltpu.CompilerParams(vmem_limit_bytes=vmem_limit),
    )(*args)
    return out[:B, :2]


def init_params(key, inp, hidden):
    """Deterministic synthetic parameters; shapes match torch.nn.LSTM/LayerNorm/Linear."""
    ks = jax.random.split(key, 12)
    s = 1.0 / jnp.sqrt(hidden)

    def u(k, shape):
        return jax.random.uniform(k, shape, jnp.float32, -s, s)

    return {
        # layer 0: W_ih (4H, inp) -> transposed (inp, 4H); biases b_ih+b_hh folded.
        "wih0": u(ks[0], (inp, 4 * hidden)),
        "whh0": u(ks[1], (hidden, 4 * hidden)),
        "b0": u(ks[2], (1, 4 * hidden)) + u(ks[3], (1, 4 * hidden)),
        # layer 1: input is hidden.
        "wih1": u(ks[4], (hidden, 4 * hidden)),
        "whh1": u(ks[5], (hidden, 4 * hidden)),
        "b1": u(ks[6], (1, 4 * hidden)) + u(ks[7], (1, 4 * hidden)),
        # LayerNorm(hidden)
        "gamma": jnp.ones((1, hidden), jnp.float32),
        "beta": jnp.zeros((1, hidden), jnp.float32),
        # head: Linear(hidden, 2), weight (2, hidden) -> transposed (hidden, 2)
        "wh": u(ks[8], (hidden, 2)),
        "bh": u(ks[9], (1, 2)),
    }


def reference_forward(x, p):
    """Pure-JAX reference of the same math (bf16 matmul operands, f32 accumulate).

    Uses the original PyTorch gate order [i, f, g, o] and unpermuted params, so
    it independently validates the wrapper's gate reorder / padding / fusion.
    """
    B, T, D = x.shape
    H = p["whh0"].shape[0]
    bf16 = jnp.bfloat16

    def mm(a, b):
        return jnp.dot(a.astype(bf16), b.astype(bf16),
                       preferred_element_type=jnp.float32)

    def cell(inp, h, c, wih, whh, b):
        z = mm(inp, wih) + mm(h, whh) + b
        i = jax.nn.sigmoid(z[:, 0 * H:1 * H])
        f = jax.nn.sigmoid(z[:, 1 * H:2 * H])
        g = jnp.tanh(z[:, 2 * H:3 * H])
        o = jax.nn.sigmoid(z[:, 3 * H:4 * H])
        c = f * c + i * g
        return o * jnp.tanh(c), c

    h0 = c0 = h1 = c1 = jnp.zeros((B, H), jnp.float32)
    for t in range(T):
        h0, c0 = cell(x[:, t, :], h0, c0, p["wih0"], p["whh0"], p["b0"])
        h1, c1 = cell(h0, h1, c1, p["wih1"], p["whh1"], p["b1"])
    mean = jnp.mean(h1, axis=-1, keepdims=True)
    var = jnp.mean((h1 - mean) ** 2, axis=-1, keepdims=True)
    y = (h1 - mean) * jax.lax.rsqrt(var + 1e-5) * p["gamma"] + p["beta"]
    y = jnp.maximum(y, 0.0)
    return mm(y, p["wh"]) + p["bh"]


if __name__ == "__main__":
    B, T, D, H = 2, 8, 16, 32
    key = jax.random.PRNGKey(0)
    kx, kp = jax.random.split(key)
    x = jax.random.normal(kx, (B, T, D), jnp.float32)
    params = init_params(kp, D, H)

    out = jax.block_until_ready(lstm_forward(x, params))
    ref = jax.block_until_ready(reference_forward(x, params))

    assert out.shape == (B, 2)
    assert jnp.allclose(out, ref, rtol=2e-3, atol=2e-3), (out, ref)
    print("KERNEL_OK")
</pallas_src>

<mosaic_0001>
module attributes {stable_mosaic.version = 11 : i64} {
  func.func @_lstm_kernel(%arg0: memref<64x16xbf16, #tpu.memory_space<vmem>>, %arg1: memref<16x512xbf16, #tpu.memory_space<vmem>>, %arg2: memref<128x512xbf16, #tpu.memory_space<vmem>>, %arg3: memref<1x512xf32, #tpu.memory_space<vmem>>, %arg4: memref<256x512xbf16, #tpu.memory_space<vmem>>, %arg5: memref<1x512xf32, #tpu.memory_space<vmem>>, %arg6: memref<1x128xf32, #tpu.memory_space<vmem>>, %arg7: memref<1x128xf32, #tpu.memory_space<vmem>>, %arg8: memref<128x128xbf16, #tpu.memory_space<vmem>>, %arg9: memref<1x128xf32, #tpu.memory_space<vmem>>, %arg10: memref<8x128xf32, #tpu.memory_space<vmem>>) attributes {dimension_semantics = [], scalar_prefetch = 0 : i64, scratch_operands = 0 : i64, tpu.core_type = #tpu.core_type<tc>} {
    %c0 = arith.constant 0 : index
    %c0_0 = arith.constant 0 : index
    %0 = vector.load %arg1[%c0, %c0_0] : memref<16x512xbf16, #tpu.memory_space<vmem>>, vector<16x512xbf16>
    %c0_1 = arith.constant 0 : index
    %c0_2 = arith.constant 0 : index
    %1 = vector.load %arg2[%c0_1, %c0_2] : memref<128x512xbf16, #tpu.memory_space<vmem>>, vector<128x512xbf16>
    %c0_3 = arith.constant 0 : index
    %c0_4 = arith.constant 0 : index
    %2 = vector.load %arg4[%c0_3, %c0_4] : memref<256x512xbf16, #tpu.memory_space<vmem>>, vector<256x512xbf16>
    %c0_5 = arith.constant 0 : index
    %c0_6 = arith.constant 0 : index
    %3 = vector.load %arg5[%c0_5, %c0_6] : memref<1x512xf32, #tpu.memory_space<vmem>>, vector<1x512xf32>
    %4 = vector.shape_cast %3 : vector<1x512xf32> to vector<1x512xf32>
    %5 = vector.broadcast %4 : vector<1x512xf32> to vector<8x512xf32>
    %c0_7 = arith.constant 0 : index
    %c0_8 = arith.constant 0 : index
    %6 = vector.load %arg0[%c0_7, %c0_8] : memref<64x16xbf16, #tpu.memory_space<vmem>>, vector<64x16xbf16>
    %cst = arith.constant dense<0.000000e+00> : vector<64x512xf32>
    %7 = tpu.matmul %6, %0, %cst {dimension_numbers = #tpu.dot_dimension_numbers<[1], [0], [0], [1], [0, 0, 1, 1], [], []>} : vector<64x16xbf16>, vector<16x512xbf16>, vector<64x512xf32> -> vector<64x512xf32>
    %c0_9 = arith.constant 0 : index
    %c0_10 = arith.constant 0 : index
    %8 = vector.load %arg3[%c0_9, %c0_10] : memref<1x512xf32, #tpu.memory_space<vmem>>, vector<1x512xf32>
    %9 = vector.broadcast %8 : vector<1x512xf32> to vector<64x512xf32>
    %10 = arith.addf %7, %9 : vector<64x512xf32>
    %cst_11 = arith.constant 0.000000e+00 : f32
    %11 = vector.broadcast %cst_11 : f32 to vector<8x128xf32>
    %cst_12 = arith.constant 0.000000e+00 : bf16
    %12 = vector.broadcast %cst_12 : bf16 to vector<8x128xbf16>
    %13 = vector.extract_strided_slice %10 {offsets = [0, 0], sizes = [8, 512], strides = [1, 1]} : vector<64x512xf32> to vector<8x512xf32>
    %cst_13 = arith.constant dense<0.000000e+00> : vector<8x512xf32>
    %14 = tpu.matmul %12, %1, %cst_13 {dimension_numbers = #tpu.dot_dimension_numbers<[1], [0], [0], [1], [0, 0, 1, 1], [], []>} : vector<8x128xbf16>, vector<128x512xbf16>, vector<8x512xf32> -> vector<8x512xf32>
    %15 = arith.addf %13, %14 : vector<8x512xf32>
    %16 = vector.extract_strided_slice %15 {offsets = [0, 0], sizes = [8, 384], strides = [1, 1]} : vector<8x512xf32> to vector<8x384xf32>
    %17 = arith.negf %16 : vector<8x384xf32>
    %18 = math.exp %17 : vector<8x384xf32>
    %cst_14 = arith.constant 1.000000e+00 : f32
    %19 = vector.broadcast %cst_14 : f32 to vector<8x384xf32>
    %20 = arith.addf %19, %18 : vector<8x384xf32>
    %21 = arith.divf %19, %20 : vector<8x384xf32>
    %22 = vector.extract_strided_slice %15 {offsets = [0, 384], sizes = [8, 128], strides = [1, 1]} : vector<8x512xf32> to vector<8x128xf32>
    %23 = math.tanh %22 : vector<8x128xf32>
    %24 = vector.extract_strided_slice %21 {offsets = [0, 0], sizes = [8, 128], strides = [1, 1]} : vector<8x384xf32> to vector<8x128xf32>
    %25 = vector.extract_strided_slice %21 {offsets = [0, 128], sizes = [8, 128], strides = [1, 1]} : vector<8x384xf32> to vector<8x128xf32>
    %26 = vector.extract_strided_slice %21 {offsets = [0, 256], sizes = [8, 128], strides = [1, 1]} : vector<8x384xf32> to vector<8x128xf32>
    %27 = arith.mulf %25, %11 : vector<8x128xf32>
    %28 = arith.mulf %24, %23 : vector<8x128xf32>
    %29 = arith.addf %27, %28 : vector<8x128xf32>
    %30 = math.tanh %29 : vector<8x128xf32>
    %31 = arith.mulf %26, %30 : vector<8x128xf32>
    %32 = arith.truncf %31 : vector<8x128xf32> to vector<8x128xbf16>
    %33 = tpu.concatenate %32, %12 in 1 : vector<8x128xbf16>, vector<8x128xbf16> -> vector<8x256xbf16>
    %cst_15 = arith.constant dense<0.000000e+00> : vector<8x512xf32>
    %34 = tpu.matmul %33, %2, %cst_15 {dimension_numbers = #tpu.dot_dimension_numbers<[1], [0], [0], [1], [0, 0, 1, 1], [], []>} : vector<8x256xbf16>, vector<256x512xbf16>, vector<8x512xf32> -> vector<8x512xf32>
    %35 = arith.addf %34, %5 : vector<8x512xf32>
    %36 = vector.extract_strided_slice %35 {offsets = [0, 0], sizes = [8, 384], strides = [1, 1]} : vector<8x512xf32> to vector<8x384xf32>
    %37 = arith.negf %36 : vector<8x384xf32>
    %38 = math.exp %37 : vector<8x384xf32>
    %cst_16 = arith.constant 1.000000e+00 : f32
    %39 = vector.broadcast %cst_16 : f32 to vector<8x384xf32>
    %40 = arith.addf %39, %38 : vector<8x384xf32>
    %41 = arith.divf %39, %40 : vector<8x384xf32>
    %42 = vector.extract_strided_slice %35 {offsets = [0, 384], sizes = [8, 128], strides = [1, 1]} : vector<8x512xf32> to vector<8x128xf32>
    %43 = math.tanh %42 : vector<8x128xf32>
    %44 = vector.extract_strided_slice %41 {offsets = [0, 0], sizes = [8, 128], strides = [1, 1]} : vector<8x384xf32> to vector<8x128xf32>
    %45 = vector.extract_strided_slice %41 {offsets = [0, 128], sizes = [8, 128], strides = [1, 1]} : vector<8x384xf32> to vector<8x128xf32>
    %46 = vector.extract_strided_slice %41 {offsets = [0, 256], sizes = [8, 128], strides = [1, 1]} : vector<8x384xf32> to vector<8x128xf32>
    %47 = arith.mulf %45, %11 : vector<8x128xf32>
    %48 = arith.mulf %44, %43 : vector<8x128xf32>
    %49 = arith.addf %47, %48 : vector<8x128xf32>
    %50 = math.tanh %49 : vector<8x128xf32>
    %51 = arith.mulf %46, %50 : vector<8x128xf32>
    %52 = arith.truncf %51 : vector<8x128xf32> to vector<8x128xbf16>
    %53 = vector.extract_strided_slice %10 {offsets = [8, 0], sizes = [8, 512], strides = [1, 1]} : vector<64x512xf32> to vector<8x512xf32>
    %cst_17 = arith.constant dense<0.000000e+00> : vector<8x512xf32>
    %54 = tpu.matmul %32, %1, %cst_17 {dimension_numbers = #tpu.dot_dimension_numbers<[1], [0], [0], [1], [0, 0, 1, 1], [], []>} : vector<8x128xbf16>, vector<128x512xbf16>, vector<8x512xf32> -> vector<8x512xf32>
    %55 = arith.addf %53, %54 : vector<8x512xf32>
    %56 = vector.extract_strided_slice %55 {offsets = [0, 0], sizes = [8, 384], strides = [1, 1]} : vector<8x512xf32> to vector<8x384xf32>
    %57 = arith.negf %56 : vector<8x384xf32>
    %58 = math.exp %57 : vector<8x384xf32>
    %cst_18 = arith.constant 1.000000e+00 : f32
    %59 = vector.broadcast %cst_18 : f32 to vector<8x384xf32>
    %60 = arith.addf %59, %58 : vector<8x384xf32>
    %61 = arith.divf %59, %60 : vector<8x384xf32>
    %62 = vector.extract_strided_slice %55 {offsets = [0, 384], sizes = [8, 128], strides = [1, 1]} : vector<8x512xf32> to vector<8x128xf32>
    %63 = math.tanh %62 : vector<8x128xf32>
    %64 = vector.extract_strided_slice %61 {offsets = [0, 0], sizes = [8, 128], strides = [1, 1]} : vector<8x384xf32> to vector<8x128xf32>
    %65 = vector.extract_strided_slice %61 {offsets = [0, 128], sizes = [8, 128], strides = [1, 1]} : vector<8x384xf32> to vector<8x128xf32>
    %66 = vector.extract_strided_slice %61 {offsets = [0, 256], sizes = [8, 128], strides = [1, 1]} : vector<8x384xf32> to vector<8x128xf32>
    %67 = arith.mulf %65, %29 : vector<8x128xf32>
    %68 = arith.mulf %64, %63 : vector<8x128xf32>
    %69 = arith.addf %67, %68 : vector<8x128xf32>
    %70 = math.tanh %69 : vector<8x128xf32>
    %71 = arith.mulf %66, %70 : vector<8x128xf32>
    %72 = arith.truncf %71 : vector<8x128xf32> to vector<8x128xbf16>
    %73 = tpu.concatenate %72, %52 in 1 : vector<8x128xbf16>, vector<8x128xbf16> -> vector<8x256xbf16>
    %cst_19 = arith.constant dense<0.000000e+00> : vector<8x512xf32>
    %74 = tpu.matmul %73, %2, %cst_19 {dimension_numbers = #tpu.dot_dimension_numbers<[1], [0], [0], [1], [0, 0, 1, 1], [], []>} : vector<8x256xbf16>, vector<256x512xbf16>, vector<8x512xf32> -> vector<8x512xf32>
    %75 = arith.addf %74, %5 : vector<8x512xf32>
    %76 = vector.extract_strided_slice %75 {offsets = [0, 0], sizes = [8, 384], strides = [1, 1]} : vector<8x512xf32> to vector<8x384xf32>
    %77 = arith.negf %76 : vector<8x384xf32>
    %78 = math.exp %77 : vector<8x384xf32>
    %cst_20 = arith.constant 1.000000e+00 : f32
    %79 = vector.broadcast %cst_20 : f32 to vector<8x384xf32>
    %80 = arith.addf %79, %78 : vector<8x384xf32>
    %81 = arith.divf %79, %80 : vector<8x384xf32>
    %82 = vector.extract_strided_slice %75 {offsets = [0, 384], sizes = [8, 128], strides = [1, 1]} : vector<8x512xf32> to vector<8x128xf32>
    %83 = math.tanh %82 : vector<8x128xf32>
    %84 = vector.extract_strided_slice %81 {offsets = [0, 0], sizes = [8, 128], strides = [1, 1]} : vector<8x384xf32> to vector<8x128xf32>
    %85 = vector.extract_strided_slice %81 {offsets = [0, 128], sizes = [8, 128], strides = [1, 1]} : vector<8x384xf32> to vector<8x128xf32>
    %86 = vector.extract_strided_slice %81 {offsets = [0, 256], sizes = [8, 128], strides = [1, 1]} : vector<8x384xf32> to vector<8x128xf32>
    %87 = arith.mulf %85, %49 : vector<8x128xf32>
    %88 = arith.mulf %84, %83 : vector<8x128xf32>
    %89 = arith.addf %87, %88 : vector<8x128xf32>
    %90 = math.tanh %89 : vector<8x128xf32>
    %91 = arith.mulf %86, %90 : vector<8x128xf32>
    %92 = arith.truncf %91 : vector<8x128xf32> to vector<8x128xbf16>
    %93 = vector.extract_strided_slice %10 {offsets = [16, 0], sizes = [8, 512], strides = [1, 1]} : vector<64x512xf32> to vector<8x512xf32>
    %cst_21 = arith.constant dense<0.000000e+00> : vector<8x512xf32>
    %94 = tpu.matmul %72, %1, %cst_21 {dimension_numbers = #tpu.dot_dimension_numbers<[1], [0], [0], [1], [0, 0, 1, 1], [], []>} : vector<8x128xbf16>, vector<128x512xbf16>, vector<8x512xf32> -> vector<8x512xf32>
    %95 = arith.addf %93, %94 : vector<8x512xf32>
    %96 = vector.extract_strided_slice %95 {offsets = [0, 0], sizes = [8, 384], strides = [1, 1]} : vector<8x512xf32> to vector<8x384xf32>
    %97 = arith.negf %96 : vector<8x384xf32>
    %98 = math.exp %97 : vector<8x384xf32>
    %cst_22 = arith.constant 1.000000e+00 : f32
    %99 = vector.broadcast %cst_22 : f32 to vector<8x384xf32>
    %100 = arith.addf %99, %98 : vector<8x384xf32>
    %101 = arith.divf %99, %100 : vector<8x384xf32>
    %102 = vector.extract_strided_slice %95 {offsets = [0, 384], sizes = [8, 128], strides = [1, 1]} : vector<8x512xf32> to vector<8x128xf32>
    %103 = math.tanh %102 : vector<8x128xf32>
    %104 = vector.extract_strided_slice %101 {offsets = [0, 0], sizes = [8, 128], strides = [1, 1]} : vector<8x384xf32> to vector<8x128xf32>
    %105 = vector.extract_strided_slice %101 {offsets = [0, 128], sizes = [8, 128], strides = [1, 1]} : vector<8x384xf32> to vector<8x128xf32>
    %106 = vector.extract_strided_slice %101 {offsets = [0, 256], sizes = [8, 128], strides = [1, 1]} : vector<8x384xf32> to vector<8x128xf32>
    %107 = arith.mulf %105, %69 : vector<8x128xf32>
    %108 = arith.mulf %104, %103 : vector<8x128xf32>
    %109 = arith.addf %107, %108 : vector<8x128xf32>
    %110 = math.tanh %109 : vector<8x128xf32>
    %111 = arith.mulf %106, %110 : vector<8x128xf32>
    %112 = arith.truncf %111 : vector<8x128xf32> to vector<8x128xbf16>
    %113 = tpu.concatenate %112, %92 in 1 : vector<8x128xbf16>, vector<8x128xbf16> -> vector<8x256xbf16>
    %cst_23 = arith.constant dense<0.000000e+00> : vector<8x512xf32>
    %114 = tpu.matmul %113, %2, %cst_23 {dimension_numbers = #tpu.dot_dimension_numbers<[1], [0], [0], [1], [0, 0, 1, 1], [], []>} : vector<8x256xbf16>, vector<256x512xbf16>, vector<8x512xf32> -> vector<8x512xf32>
    %115 = arith.addf %114, %5 : vector<8x512xf32>
    %116 = vector.extract_strided_slice %115 {offsets = [0, 0], sizes = [8, 384], strides = [1, 1]} : vector<8x512xf32> to vector<8x384xf32>
    %117 = arith.negf %116 : vector<8x384xf32>
    %118 = math.exp %117 : vector<8x384xf32>
    %cst_24 = arith.constant 1.000000e+00 : f32
    %119 = vector.broadcast %cst_24 : f32 to vector<8x384xf32>
    %120 = arith.addf %119, %118 : vector<8x384xf32>
    %121 = arith.divf %119, %120 : vector<8x384xf32>
    %122 = vector.extract_strided_slice %115 {offsets = [0, 384], sizes = [8, 128], strides = [1, 1]} : vector<8x512xf32> to vector<8x128xf32>
    %123 = math.tanh %122 : vector<8x128xf32>
    %124 = vector.extract_strided_slice %121 {offsets = [0, 0], sizes = [8, 128], strides = [1, 1]} : vector<8x384xf32> to vector<8x128xf32>
    %125 = vector.extract_strided_slice %121 {offsets = [0, 128], sizes = [8, 128], strides = [1, 1]} : vector<8x384xf32> to vector<8x128xf32>
    %126 = vector.extract_strided_slice %121 {offsets = [0, 256], sizes = [8, 128], strides = [1, 1]} : vector<8x384xf32> to vector<8x128xf32>
    %127 = arith.mulf %125, %89 : vector<8x128xf32>
    %128 = arith.mulf %124, %123 : vector<8x128xf32>
    %129 = arith.addf %127, %128 : vector<8x128xf32>
    %130 = math.tanh %129 : vector<8x128xf32>
    %131 = arith.mulf %126, %130 : vector<8x128xf32>
    %132 = arith.truncf %131 : vector<8x128xf32> to vector<8x128xbf16>
    %133 = vector.extract_strided_slice %10 {offsets = [24, 0], sizes = [8, 512], strides = [1, 1]} : vector<64x512xf32> to vector<8x512xf32>
    %cst_25 = arith.constant dense<0.000000e+00> : vector<8x512xf32>
    %134 = tpu.matmul %112, %1, %cst_25 {dimension_numbers = #tpu.dot_dimension_numbers<[1], [0], [0], [1], [0, 0, 1, 1], [], []>} : vector<8x128xbf16>, vector<128x512xbf16>, vector<8x512xf32> -> vector<8x512xf32>
    %135 = arith.addf %133, %134 : vector<8x512xf32>
    %136 = vector.extract_strided_slice %135 {offsets = [0, 0], sizes = [8, 384], strides = [1, 1]} : vector<8x512xf32> to vector<8x384xf32>
    %137 = arith.negf %136 : vector<8x384xf32>
    %138 = math.exp %137 : vector<8x384xf32>
    %cst_26 = arith.constant 1.000000e+00 : f32
    %139 = vector.broadcast %cst_26 : f32 to vector<8x384xf32>
    %140 = arith.addf %139, %138 : vector<8x384xf32>
    %141 = arith.divf %139, %140 : vector<8x384xf32>
    %142 = vector.extract_strided_slice %135 {offsets = [0, 384], sizes = [8, 128], strides = [1, 1]} : vector<8x512xf32> to vector<8x128xf32>
    %143 = math.tanh %142 : vector<8x128xf32>
    %144 = vector.extract_strided_slice %141 {offsets = [0, 0], sizes = [8, 128], strides = [1, 1]} : vector<8x384xf32> to vector<8x128xf32>
    %145 = vector.extract_strided_slice %141 {offsets = [0, 128], sizes = [8, 128], strides = [1, 1]} : vector<8x384xf32> to vector<8x128xf32>
    %146 = vector.extract_strided_slice %141 {offsets = [0, 256], sizes = [8, 128], strides = [1, 1]} : vector<8x384xf32> to vector<8x128xf32>
    %147 = arith.mulf %145, %109 : vector<8x128xf32>
    %148 = arith.mulf %144, %143 : vector<8x128xf32>
    %149 = arith.addf %147, %148 : vector<8x128xf32>
    %150 = math.tanh %149 : vector<8x128xf32>
    %151 = arith.mulf %146, %150 : vector<8x128xf32>
    %152 = arith.truncf %151 : vector<8x128xf32> to vector<8x128xbf16>
    %153 = tpu.concatenate %152, %132 in 1 : vector<8x128xbf16>, vector<8x128xbf16> -> vector<8x256xbf16>
    %cst_27 = arith.constant dense<0.000000e+00> : vector<8x512xf32>
    %154 = tpu.matmul %153, %2, %cst_27 {dimension_numbers = #tpu.dot_dimension_numbers<[1], [0], [0], [1], [0, 0, 1, 1], [], []>} : vector<8x256xbf16>, vector<256x512xbf16>, vector<8x512xf32> -> vector<8x512xf32>
    %155 = arith.addf %154, %5 : vector<8x512xf32>
    %156 = vector.extract_strided_slice %155 {offsets = [0, 0], sizes = [8, 384], strides = [1, 1]} : vector<8x512xf32> to vector<8x384xf32>
    %157 = arith.negf %156 : vector<8x384xf32>
    %158 = math.exp %157 : vector<8x384xf32>
    %cst_28 = arith.constant 1.000000e+00 : f32
    %159 = vector.broadcast %cst_28 : f32 to vector<8x384xf32>
    %160 = arith.addf %159, %158 : vector<8x384xf32>
    %161 = arith.divf %159, %160 : vector<8x384xf32>
    %162 = vector.extract_strided_slice %155 {offsets = [0, 384], sizes = [8, 128], strides = [1, 1]} : vector<8x512xf32> to vector<8x128xf32>
    %163 = math.tanh %162 : vector<8x128xf32>
    %164 = vector.extract_strided_slice %161 {offsets = [0, 0], sizes = [8, 128], strides = [1, 1]} : vector<8x384xf32> to vector<8x128xf32>
    %165 = vector.extract_strided_slice %161 {offsets = [0, 128], sizes = [8, 128], strides = [1, 1]} : vector<8x384xf32> to vector<8x128xf32>
    %166 = vector.extract_strided_slice %161 {offsets = [0, 256], sizes = [8, 128], strides = [1, 1]} : vector<8x384xf32> to vector<8x128xf32>
    %167 = arith.mulf %165, %129 : vector<8x128xf32>
    %168 = arith.mulf %164, %163 : vector<8x128xf32>
    %169 = arith.addf %167, %168 : vector<8x128xf32>
    %170 = math.tanh %169 : vector<8x128xf32>
    %171 = arith.mulf %166, %170 : vector<8x128xf32>
    %172 = arith.truncf %171 : vector<8x128xf32> to vector<8x128xbf16>
    %173 = vector.extract_strided_slice %10 {offsets = [32, 0], sizes = [8, 512], strides = [1, 1]} : vector<64x512xf32> to vector<8x512xf32>
    %cst_29 = arith.constant dense<0.000000e+00> : vector<8x512xf32>
    %174 = tpu.matmul %152, %1, %cst_29 {dimension_numbers = #tpu.dot_dimension_numbers<[1], [0], [0], [1], [0, 0, 1, 1], [], []>} : vector<8x128xbf16>, vector<128x512xbf16>, vector<8x512xf32> -> vector<8x512xf32>
    %175 = arith.addf %173, %174 : vector<8x512xf32>
    %176 = vector.extract_strided_slice %175 {offsets = [0, 0], sizes = [8, 384], strides = [1, 1]} : vector<8x512xf32> to vector<8x384xf32>
    %177 = arith.negf %176 : vector<8x384xf32>
    %178 = math.exp %177 : vector<8x384xf32>
    %cst_30 = arith.constant 1.000000e+00 : f32
    %179 = vector.broadcast %cst_30 : f32 to vector<8x384xf32>
    %180 = arith.addf %179, %178 : vector<8x384xf32>
    %181 = arith.divf %179, %180 : vector<8x384xf32>
    %182 = vector.extract_strided_slice %175 {offsets = [0, 384], sizes = [8, 128], strides = [1, 1]} : vector<8x512xf32> to vector<8x128xf32>
    %183 = math.tanh %182 : vector<8x128xf32>
    %184 = vector.extract_strided_slice %181 {offsets = [0, 0], sizes = [8, 128], strides = [1, 1]} : vector<8x384xf32> to vector<8x128xf32>
    %185 = vector.extract_strided_slice %181 {offsets = [0, 128], sizes = [8, 128], strides = [1, 1]} : vector<8x384xf32> to vector<8x128xf32>
    %186 = vector.extract_strided_slice %181 {offsets = [0, 256], sizes = [8, 128], strides = [1, 1]} : vector<8x384xf32> to vector<8x128xf32>
    %187 = arith.mulf %185, %149 : vector<8x128xf32>
    %188 = arith.mulf %184, %183 : vector<8x128xf32>
    %189 = arith.addf %187, %188 : vector<8x128xf32>
    %190 = math.tanh %189 : vector<8x128xf32>
    %191 = arith.mulf %186, %190 : vector<8x128xf32>
    %192 = arith.truncf %191 : vector<8x128xf32> to vector<8x128xbf16>
    %193 = tpu.concatenate %192, %172 in 1 : vector<8x128xbf16>, vector<8x128xbf16> -> vector<8x256xbf16>
    %cst_31 = arith.constant dense<0.000000e+00> : vector<8x512xf32>
    %194 = tpu.matmul %193, %2, %cst_31 {dimension_numbers = #tpu.dot_dimension_numbers<[1], [0], [0], [1], [0, 0, 1, 1], [], []>} : vector<8x256xbf16>, vector<256x512xbf16>, vector<8x512xf32> -> vector<8x512xf32>
    %195 = arith.addf %194, %5 : vector<8x512xf32>
    %196 = vector.extract_strided_slice %195 {offsets = [0, 0], sizes = [8, 384], strides = [1, 1]} : vector<8x512xf32> to vector<8x384xf32>
    %197 = arith.negf %196 : vector<8x384xf32>
    %198 = math.exp %197 : vector<8x384xf32>
    %cst_32 = arith.constant 1.000000e+00 : f32
    %199 = vector.broadcast %cst_32 : f32 to vector<8x384xf32>
    %200 = arith.addf %199, %198 : vector<8x384xf32>
    %201 = arith.divf %199, %200 : vector<8x384xf32>
    %202 = vector.extract_strided_slice %195 {offsets = [0, 384], sizes = [8, 128], strides = [1, 1]} : vector<8x512xf32> to vector<8x128xf32>
    %203 = math.tanh %202 : vector<8x128xf32>
    %204 = vector.extract_strided_slice %201 {offsets = [0, 0], sizes = [8, 128], strides = [1, 1]} : vector<8x384xf32> to vector<8x128xf32>
    %205 = vector.extract_strided_slice %201 {offsets = [0, 128], sizes = [8, 128], strides = [1, 1]} : vector<8x384xf32> to vector<8x128xf32>
    %206 = vector.extract_strided_slice %201 {offsets = [0, 256], sizes = [8, 128], strides = [1, 1]} : vector<8x384xf32> to vector<8x128xf32>
    %207 = arith.mulf %205, %169 : vector<8x128xf32>
    %208 = arith.mulf %204, %203 : vector<8x128xf32>
    %209 = arith.addf %207, %208 : vector<8x128xf32>
    %210 = math.tanh %209 : vector<8x128xf32>
    %211 = arith.mulf %206, %210 : vector<8x128xf32>
    %212 = arith.truncf %211 : vector<8x128xf32> to vector<8x128xbf16>
    %213 = vector.extract_strided_slice %10 {offsets = [40, 0], sizes = [8, 512], strides = [1, 1]} : vector<64x512xf32> to vector<8x512xf32>
    %cst_33 = arith.constant dense<0.000000e+00> : vector<8x512xf32>
    %214 = tpu.matmul %192, %1, %cst_33 {dimension_numbers = #tpu.dot_dimension_numbers<[1], [0], [0], [1], [0, 0, 1, 1], [], []>} : vector<8x128xbf16>, vector<128x512xbf16>, vector<8x512xf32> -> vector<8x512xf32>
    %215 = arith.addf %213, %214 : vector<8x512xf32>
    %216 = vector.extract_strided_slice %215 {offsets = [0, 0], sizes = [8, 384], strides = [1, 1]} : vector<8x512xf32> to vector<8x384xf32>
    %217 = arith.negf %216 : vector<8x384xf32>
    %218 = math.exp %217 : vector<8x384xf32>
    %cst_34 = arith.constant 1.000000e+00 : f32
    %219 = vector.broadcast %cst_34 : f32 to vector<8x384xf32>
    %220 = arith.addf %219, %218 : vector<8x384xf32>
    %221 = arith.divf %219, %220 : vector<8x384xf32>
    %222 = vector.extract_strided_slice %215 {offsets = [0, 384], sizes = [8, 128], strides = [1, 1]} : vector<8x512xf32> to vector<8x128xf32>
    %223 = math.tanh %222 : vector<8x128xf32>
    %224 = vector.extract_strided_slice %221 {offsets = [0, 0], sizes = [8, 128], strides = [1, 1]} : vector<8x384xf32> to vector<8x128xf32>
    %225 = vector.extract_strided_slice %221 {offsets = [0, 128], sizes = [8, 128], strides = [1, 1]} : vector<8x384xf32> to vector<8x128xf32>
    %226 = vector.extract_strided_slice %221 {offsets = [0, 256], sizes = [8, 128], strides = [1, 1]} : vector<8x384xf32> to vector<8x128xf32>
    %227 = arith.mulf %225, %189 : vector<8x128xf32>
    %228 = arith.mulf %224, %223 : vector<8x128xf32>
    %229 = arith.addf %227, %228 : vector<8x128xf32>
    %230 = math.tanh %229 : vector<8x128xf32>
    %231 = arith.mulf %226, %230 : vector<8x128xf32>
    %232 = arith.truncf %231 : vector<8x128xf32> to vector<8x128xbf16>
    %233 = tpu.concatenate %232, %212 in 1 : vector<8x128xbf16>, vector<8x128xbf16> -> vector<8x256xbf16>
    %cst_35 = arith.constant dense<0.000000e+00> : vector<8x512xf32>
    %234 = tpu.matmul %233, %2, %cst_35 {dimension_numbers = #tpu.dot_dimension_numbers<[1], [0], [0], [1], [0, 0, 1, 1], [], []>} : vector<8x256xbf16>, vector<256x512xbf16>, vector<8x512xf32> -> vector<8x512xf32>
    %235 = arith.addf %234, %5 : vector<8x512xf32>
    %236 = vector.extract_strided_slice %235 {offsets = [0, 0], sizes = [8, 384], strides = [1, 1]} : vector<8x512xf32> to vector<8x384xf32>
    %237 = arith.negf %236 : vector<8x384xf32>
    %238 = math.exp %237 : vector<8x384xf32>
    %cst_36 = arith.constant 1.000000e+00 : f32
    %239 = vector.broadcast %cst_36 : f32 to vector<8x384xf32>
    %240 = arith.addf %239, %238 : vector<8x384xf32>
    %241 = arith.divf %239, %240 : vector<8x384xf32>
    %242 = vector.extract_strided_slice %235 {offsets = [0, 384], sizes = [8, 128], strides = [1, 1]} : vector<8x512xf32> to vector<8x128xf32>
    %243 = math.tanh %242 : vector<8x128xf32>
    %244 = vector.extract_strided_slice %241 {offsets = [0, 0], sizes = [8, 128], strides = [1, 1]} : vector<8x384xf32> to vector<8x128xf32>
    %245 = vector.extract_strided_slice %241 {offsets = [0, 128], sizes = [8, 128], strides = [1, 1]} : vector<8x384xf32> to vector<8x128xf32>
    %246 = vector.extract_strided_slice %241 {offsets = [0, 256], sizes = [8, 128], strides = [1, 1]} : vector<8x384xf32> to vector<8x128xf32>
    %247 = arith.mulf %245, %209 : vector<8x128xf32>
    %248 = arith.mulf %244, %243 : vector<8x128xf32>
    %249 = arith.addf %247, %248 : vector<8x128xf32>
    %250 = math.tanh %249 : vector<8x128xf32>
    %251 = arith.mulf %246, %250 : vector<8x128xf32>
    %252 = arith.truncf %251 : vector<8x128xf32> to vector<8x128xbf16>
    %253 = vector.extract_strided_slice %10 {offsets = [48, 0], sizes = [8, 512], strides = [1, 1]} : vector<64x512xf32> to vector<8x512xf32>
    %cst_37 = arith.constant dense<0.000000e+00> : vector<8x512xf32>
    %254 = tpu.matmul %232, %1, %cst_37 {dimension_numbers = #tpu.dot_dimension_numbers<[1], [0], [0], [1], [0, 0, 1, 1], [], []>} : vector<8x128xbf16>, vector<128x512xbf16>, vector<8x512xf32> -> vector<8x512xf32>
    %255 = arith.addf %253, %254 : vector<8x512xf32>
    %256 = vector.extract_strided_slice %255 {offsets = [0, 0], sizes = [8, 384], strides = [1, 1]} : vector<8x512xf32> to vector<8x384xf32>
    %257 = arith.negf %256 : vector<8x384xf32>
    %258 = math.exp %257 : vector<8x384xf32>
    %cst_38 = arith.constant 1.000000e+00 : f32
    %259 = vector.broadcast %cst_38 : f32 to vector<8x384xf32>
    %260 = arith.addf %259, %258 : vector<8x384xf32>
    %261 = arith.divf %259, %260 : vector<8x384xf32>
    %262 = vector.extract_strided_slice %255 {offsets = [0, 384], sizes = [8, 128], strides = [1, 1]} : vector<8x512xf32> to vector<8x128xf32>
    %263 = math.tanh %262 : vector<8x128xf32>
    %264 = vector.extract_strided_slice %261 {offsets = [0, 0], sizes = [8, 128], strides = [1, 1]} : vector<8x384xf32> to vector<8x128xf32>
    %265 = vector.extract_strided_slice %261 {offsets = [0, 128], sizes = [8, 128], strides = [1, 1]} : vector<8x384xf32> to vector<8x128xf32>
    %266 = vector.extract_strided_slice %261 {offsets = [0, 256], sizes = [8, 128], strides = [1, 1]} : vector<8x384xf32> to vector<8x128xf32>
    %267 = arith.mulf %265, %229 : vector<8x128xf32>
    %268 = arith.mulf %264, %263 : vector<8x128xf32>
    %269 = arith.addf %267, %268 : vector<8x128xf32>
    %270 = math.tanh %269 : vector<8x128xf32>
    %271 = arith.mulf %266, %270 : vector<8x128xf32>
    %272 = arith.truncf %271 : vector<8x128xf32> to vector<8x128xbf16>
    %273 = tpu.concatenate %272, %252 in 1 : vector<8x128xbf16>, vector<8x128xbf16> -> vector<8x256xbf16>
    %cst_39 = arith.constant dense<0.000000e+00> : vector<8x512xf32>
    %274 = tpu.matmul %273, %2, %cst_39 {dimension_numbers = #tpu.dot_dimension_numbers<[1], [0], [0], [1], [0, 0, 1, 1], [], []>} : vector<8x256xbf16>, vector<256x512xbf16>, vector<8x512xf32> -> vector<8x512xf32>
    %275 = arith.addf %274, %5 : vector<8x512xf32>
    %276 = vector.extract_strided_slice %275 {offsets = [0, 0], sizes = [8, 384], strides = [1, 1]} : vector<8x512xf32> to vector<8x384xf32>
    %277 = arith.negf %276 : vector<8x384xf32>
    %278 = math.exp %277 : vector<8x384xf32>
    %cst_40 = arith.constant 1.000000e+00 : f32
    %279 = vector.broadcast %cst_40 : f32 to vector<8x384xf32>
    %280 = arith.addf %279, %278 : vector<8x384xf32>
    %281 = arith.divf %279, %280 : vector<8x384xf32>
    %282 = vector.extract_strided_slice %275 {offsets = [0, 384], sizes = [8, 128], strides = [1, 1]} : vector<8x512xf32> to vector<8x128xf32>
    %283 = math.tanh %282 : vector<8x128xf32>
    %284 = vector.extract_strided_slice %281 {offsets = [0, 0], sizes = [8, 128], strides = [1, 1]} : vector<8x384xf32> to vector<8x128xf32>
    %285 = vector.extract_strided_slice %281 {offsets = [0, 128], sizes = [8, 128], strides = [1, 1]} : vector<8x384xf32> to vector<8x128xf32>
    %286 = vector.extract_strided_slice %281 {offsets = [0, 256], sizes = [8, 128], strides = [1, 1]} : vector<8x384xf32> to vector<8x128xf32>
    %287 = arith.mulf %285, %249 : vector<8x128xf32>
    %288 = arith.mulf %284, %283 : vector<8x128xf32>
    %289 = arith.addf %287, %288 : vector<8x128xf32>
    %290 = math.tanh %289 : vector<8x128xf32>
    %291 = arith.mulf %286, %290 : vector<8x128xf32>
    %292 = arith.truncf %291 : vector<8x128xf32> to vector<8x128xbf16>
    %293 = vector.extract_strided_slice %10 {offsets = [56, 0], sizes = [8, 512], strides = [1, 1]} : vector<64x512xf32> to vector<8x512xf32>
    %cst_41 = arith.constant dense<0.000000e+00> : vector<8x512xf32>
    %294 = tpu.matmul %272, %1, %cst_41 {dimension_numbers = #tpu.dot_dimension_numbers<[1], [0], [0], [1], [0, 0, 1, 1], [], []>} : vector<8x128xbf16>, vector<128x512xbf16>, vector<8x512xf32> -> vector<8x512xf32>
    %295 = arith.addf %293, %294 : vector<8x512xf32>
    %296 = vector.extract_strided_slice %295 {offsets = [0, 0], sizes = [8, 384], strides = [1, 1]} : vector<8x512xf32> to vector<8x384xf32>
    %297 = arith.negf %296 : vector<8x384xf32>
    %298 = math.exp %297 : vector<8x384xf32>
    %cst_42 = arith.constant 1.000000e+00 : f32
    %299 = vector.broadcast %cst_42 : f32 to vector<8x384xf32>
    %300 = arith.addf %299, %298 : vector<8x384xf32>
    %301 = arith.divf %299, %300 : vector<8x384xf32>
    %302 = vector.extract_strided_slice %295 {offsets = [0, 384], sizes = [8, 128], strides = [1, 1]} : vector<8x512xf32> to vector<8x128xf32>
    %303 = math.tanh %302 : vector<8x128xf32>
    %304 = vector.extract_strided_slice %301 {offsets = [0, 0], sizes = [8, 128], strides = [1, 1]} : vector<8x384xf32> to vector<8x128xf32>
    %305 = vector.extract_strided_slice %301 {offsets = [0, 128], sizes = [8, 128], strides = [1, 1]} : vector<8x384xf32> to vector<8x128xf32>
    %306 = vector.extract_strided_slice %301 {offsets = [0, 256], sizes = [8, 128], strides = [1, 1]} : vector<8x384xf32> to vector<8x128xf32>
    %307 = arith.mulf %305, %269 : vector<8x128xf32>
    %308 = arith.mulf %304, %303 : vector<8x128xf32>
    %309 = arith.addf %307, %308 : vector<8x128xf32>
    %310 = math.tanh %309 : vector<8x128xf32>
    %311 = arith.mulf %306, %310 : vector<8x128xf32>
    %312 = arith.truncf %311 : vector<8x128xf32> to vector<8x128xbf16>
    %313 = tpu.concatenate %312, %292 in 1 : vector<8x128xbf16>, vector<8x128xbf16> -> vector<8x256xbf16>
    %cst_43 = arith.constant dense<0.000000e+00> : vector<8x512xf32>
    %314 = tpu.matmul %313, %2, %cst_43 {dimension_numbers = #tpu.dot_dimension_numbers<[1], [0], [0], [1], [0, 0, 1, 1], [], []>} : vector<8x256xbf16>, vector<256x512xbf16>, vector<8x512xf32> -> vector<8x512xf32>
    %315 = arith.addf %314, %5 : vector<8x512xf32>
    %316 = vector.extract_strided_slice %315 {offsets = [0, 0], sizes = [8, 384], strides = [1, 1]} : vector<8x512xf32> to vector<8x384xf32>
    %317 = arith.negf %316 : vector<8x384xf32>
    %318 = math.exp %317 : vector<8x384xf32>
    %cst_44 = arith.constant 1.000000e+00 : f32
    %319 = vector.broadcast %cst_44 : f32 to vector<8x384xf32>
    %320 = arith.addf %319, %318 : vector<8x384xf32>
    %321 = arith.divf %319, %320 : vector<8x384xf32>
    %322 = vector.extract_strided_slice %315 {offsets = [0, 384], sizes = [8, 128], strides = [1, 1]} : vector<8x512xf32> to vector<8x128xf32>
    %323 = math.tanh %322 : vector<8x128xf32>
    %324 = vector.extract_strided_slice %321 {offsets = [0, 0], sizes = [8, 128], strides = [1, 1]} : vector<8x384xf32> to vector<8x128xf32>
    %325 = vector.extract_strided_slice %321 {offsets = [0, 128], sizes = [8, 128], strides = [1, 1]} : vector<8x384xf32> to vector<8x128xf32>
    %326 = vector.extract_strided_slice %321 {offsets = [0, 256], sizes = [8, 128], strides = [1, 1]} : vector<8x384xf32> to vector<8x128xf32>
    %327 = arith.mulf %325, %289 : vector<8x128xf32>
    %328 = arith.mulf %324, %323 : vector<8x128xf32>
    %329 = arith.addf %327, %328 : vector<8x128xf32>
    %330 = math.tanh %329 : vector<8x128xf32>
    %331 = arith.mulf %326, %330 : vector<8x128xf32>
    %332 = tpu.iota {dimensions = array<i32: 1>} : vector<1x128xi32>
    %c32_i32 = arith.constant 32 : i32
    %333 = vector.broadcast %c32_i32 : i32 to vector<1x128xi32>
    %334 = arith.cmpi slt, %332, %333 : vector<1x128xi32>
    %cst_45 = arith.constant dense<0.000000e+00> : vector<8xf32>
    %335 = vector.multi_reduction <add>, %331, %cst_45 [1] : vector<8x128xf32> to vector<8xf32>
    %336 = vector.shape_cast %335 : vector<8xf32> to vector<8x1xf32>
    %cst_46 = arith.constant 3.125000e-02 : f32
    %337 = vector.broadcast %cst_46 : f32 to vector<8x1xf32>
    %338 = arith.mulf %336, %337 : vector<8x1xf32>
    %339 = vector.broadcast %338 : vector<8x1xf32> to vector<8x128xf32>
    %340 = arith.subf %331, %339 : vector<8x128xf32>
    %cst_47 = arith.constant 0.000000e+00 : f32
    %341 = vector.shape_cast %334 : vector<1x128xi1> to vector<1x128xi1>
    %342 = vector.broadcast %341 : vector<1x128xi1> to vector<8x128xi1>
    %343 = vector.broadcast %cst_47 : f32 to vector<8x128xf32>
    %344 = arith.select %342, %340, %343 : vector<8x128xi1>, vector<8x128xf32>
    %345 = arith.mulf %344, %344 : vector<8x128xf32>
    %cst_48 = arith.constant dense<0.000000e+00> : vector<8xf32>
    %346 = vector.multi_reduction <add>, %345, %cst_48 [1] : vector<8x128xf32> to vector<8xf32>
    %347 = vector.shape_cast %346 : vector<8xf32> to vector<8x1xf32>
    %cst_49 = arith.constant 3.125000e-02 : f32
    %348 = vector.broadcast %cst_49 : f32 to vector<8x1xf32>
    %349 = arith.mulf %347, %348 : vector<8x1xf32>
    %cst_50 = arith.constant 9.99999974E-6 : f32
    %350 = vector.broadcast %cst_50 : f32 to vector<8x1xf32>
    %351 = arith.addf %349, %350 : vector<8x1xf32>
    %352 = math.rsqrt %351 : vector<8x1xf32>
    %353 = vector.broadcast %352 : vector<8x1xf32> to vector<8x128xf32>
    %354 = arith.mulf %344, %353 : vector<8x128xf32>
    %c0_51 = arith.constant 0 : index
    %c0_52 = arith.constant 0 : index
    %355 = vector.load %arg6[%c0_51, %c0_52] : memref<1x128xf32, #tpu.memory_space<vmem>>, vector<1x128xf32>
    %356 = vector.broadcast %355 : vector<1x128xf32> to vector<8x128xf32>
    %357 = arith.mulf %354, %356 : vector<8x128xf32>
    %c0_53 = arith.constant 0 : index
    %c0_54 = arith.constant 0 : index
    %358 = vector.load %arg7[%c0_53, %c0_54] : memref<1x128xf32, #tpu.memory_space<vmem>>, vector<1x128xf32>
    %359 = vector.broadcast %358 : vector<1x128xf32> to vector<8x128xf32>
    %360 = arith.addf %357, %359 : vector<8x128xf32>
    %cst_55 = arith.constant 0.000000e+00 : f32
    %361 = vector.broadcast %cst_55 : f32 to vector<8x128xf32>
    %362 = arith.maximumf %360, %361 : vector<8x128xf32>
    %363 = arith.truncf %362 : vector<8x128xf32> to vector<8x128xbf16>
    %c0_56 = arith.constant 0 : index
    %c0_57 = arith.constant 0 : index
    %364 = vector.load %arg8[%c0_56, %c0_57] : memref<128x128xbf16, #tpu.memory_space<vmem>>, vector<128x128xbf16>
    %cst_58 = arith.constant dense<0.000000e+00> : vector<8x128xf32>
    %365 = tpu.matmul %363, %364, %cst_58 {dimension_numbers = #tpu.dot_dimension_numbers<[1], [0], [0], [1], [0, 0, 1, 1], [], []>} : vector<8x128xbf16>, vector<128x128xbf16>, vector<8x128xf32> -> vector<8x128xf32>
    %c0_59 = arith.constant 0 : index
    %c0_60 = arith.constant 0 : index
    %366 = vector.load %arg9[%c0_59, %c0_60] : memref<1x128xf32, #tpu.memory_space<vmem>>, vector<1x128xf32>
    %367 = vector.broadcast %366 : vector<1x128xf32> to vector<8x128xf32>
    %368 = arith.addf %365, %367 : vector<8x128xf32>
    %c0_61 = arith.constant 0 : index
    %c0_62 = arith.constant 0 : index
    %369 = vector.load %arg10[%c0_61, %c0_62] : memref<8x128xf32, #tpu.memory_space<vmem>>, vector<8x128xf32>
    tpu.vector_store %arg10[%c0_61, %c0_62], %368 {strides = array<i32>} : memref<8x128xf32, #tpu.memory_space<vmem>>, vector<8x128xf32>,
    return
  }
}

</mosaic_0001>

<bundles_post_ra>
// kernel: tpu_custom_call.1
= control target key start
LH: loop header
LB: loop body
LE: loop exit
PB: predicated region body
PF: predicated region fallthrough
CT: control target
= control target key end

     0   :  { %15 = vsyncpa [#allocation3], 0  ;;  %s5579_s0 = inlined_call_operand.vmem [shape: bf16[64,16], index: 0, kind: input, shape index: {}]   ;;  %s5580_s1 = inlined_call_operand.hbm [shape: bf16[16,512], index: 1, kind: input, shape index: {}]   ;;  %s5581_s2 = inlined_call_operand.hbm [shape: bf16[128,512], index: 2, kind: input, shape index: {}]   ;;  %s5582_s3 = inlined_call_operand.vmem [shape: f32[1,512], index: 3, kind: input, shape index: {}]   ;;  %s5583_s4 = inlined_call_operand.hbm [shape: bf16[256,512], index: 4, kind: input, shape index: {}]   ;;  %s5584_s5 = inlined_call_operand.hbm [shape: f32[1,512], index: 5, kind: input, shape index: {}]   ;;  %s5585_s6 = inlined_call_operand.vmem [shape: f32[1,128], index: 6, kind: input, shape index: {}]   ;;  %s5586_s7 = inlined_call_operand.vmem [shape: f32[1,128], index: 7, kind: input, shape index: {}]   ;;  %s5587_s8 = inlined_call_operand.vmem [shape: bf16[128,128], index: 8, kind: input, shape index: {}]   ;;  %s5588_s9 = inlined_call_operand.vmem [shape: f32[1,128], index: 9, kind: input, shape index: {}]   ;;  %s5589_s10 = inlined_call_operand.hbm [shape: f32[8,128], index: 10, kind: output, shape index: {}]  }
   0x1   :  { %16 = vsyncpa [#allocation6], 0 }
   0x2   :  { %17 = vsyncpa [#allocation9], 0 }
   0x3   :  { %18 = vsyncpa [#allocation4], 0  ;;  %s3768_s13 = smov [#allocation5]   ;;  %s3769_s15 = smov [#allocation2]  }
   0x4   :  { %s38_s14 = sshll.u32 %s3768_s13, 4  ;;  %s26_s16 = sshll.u32 %s3769_s15, 4  ;;  %s39_s14 = int_to_ptr.vmem [resolvable:$true] %s38_s14  ;;  %s3833_s16 = int_to_ptr.vmem [resolvable:$true] %s26_s16 }
   0x5   :  { %s3650_s19 = scalar_lea.hbm %s5581_s2, 4096 }
   0x6   :  { %p3651_p0 = scmp.ne.s32.totalorder %s5581_s2, %s3650_s19  ;;  %p3654_p1 = scmp.lt.u32.totalorder %s3650_s19, %s5581_s2 }
   0x8   :  { %p3656_p2 = pnand %p3654_p1, %p3651_p0 }
   0xa   :  { %3659 = shalt.err (!%p3656_p2)
}
   0xb   :  { %s3660_s24 = scalar_lea.vmem %s39_s14, 4096  ;;  %p3665_p4 = scmp.lt.s32.totalorder %s39_s14, %s39_s14 }
   0xc   :  { %p3661_p3 = scmp.ne.s32.totalorder %s39_s14, %s3660_s24  ;;  %p3666_p5 = scmp.lt.s32.totalorder %s3660_s24, %s3660_s24 }
   0xe   :  { %p3667_p6 = por %p3666_p5, %p3665_p4 }
  0x10   :  { %p3668_p7 = pnand %p3667_p6, %p3661_p3 }
  0x12   :  { %3671 = shalt.err (!%p3668_p7)
}
  0x13   :  { %s3770_s25 = smov 256   ;;  %s3771_s26 = smov 16  }
  0x14   :  { %44 = dma.hbm_to_vmem [thread:$0]  %s5581_s2, 4096, %s39_s14, [#allocation6], %s3770_s25, %s3770_s25, %s3771_s26  }
  0x15   :  { %s3672_s11 = scalar_lea.hbm %s5580_s1, 512 }
  0x16   :  { %p3673_p8 = scmp.ne.s32.totalorder %s5580_s1, %s3672_s11  ;;  %p3676_p9 = scmp.lt.u32.totalorder %s3672_s11, %s5580_s1 }
  0x18   :  { %p3678_p10 = pnand %p3676_p9, %p3673_p8 }
  0x1a   :  { %3681 = shalt.err (!%p3678_p10)
}
  0x1b   :  { %s3682_s18 = scalar_lea.vmem %s3833_s16, 512  ;;  %p3687_p12 = scmp.lt.s32.totalorder %s3833_s16, %s3833_s16 }
  0x1c   :  { %p3683_p11 = scmp.ne.s32.totalorder %s3833_s16, %s3682_s18  ;;  %p3688_p13 = scmp.lt.s32.totalorder %s3682_s18, %s3682_s18 }
  0x1e   :  { %p3689_p0 = por %p3688_p13, %p3687_p12 }
  0x20   :  { %p3690_p1 = pnand %p3689_p0, %p3683_p11 }
  0x22   :  { %3693 = shalt.err (!%p3690_p1)
}
  0x23   :  { %32 = dma.hbm_to_vmem [thread:$0]  %s5580_s1, 512, %s3833_s16, [#allocation3], %s3770_s25, %s3770_s25, %s3771_s26  }
  0x24   :  { %s3772_s19 = smov [#allocation7]   ;;  %s3773_s21 = smov [#allocation8]  }
  0x25   :  { %s52_s20 = sshll.u32 %s3772_s19, 4  ;;  %s65_s22 = sshll.u32 %s3773_s21, 4  ;;  %s53_s20 = int_to_ptr.vmem [resolvable:$true] %s52_s20  ;;  %s66_s22 = int_to_ptr.vmem [resolvable:$true] %s65_s22 }
  0x26   :  { %s3694_s27 = scalar_lea.hbm %s5583_s4, 8192 }
  0x27   :  { %p3695_p2 = scmp.ne.s32.totalorder %s5583_s4, %s3694_s27  ;;  %p3698_p3 = scmp.lt.u32.totalorder %s3694_s27, %s5583_s4 }
  0x29   :  { %p3700_p4 = pnand %p3698_p3, %p3695_p2 }
  0x2b   :  { %3703 = shalt.err (!%p3700_p4)
}
  0x2c   :  { %s3704_s1 = scalar_lea.vmem %s53_s20, 8192  ;;  %p3709_p6 = scmp.lt.s32.totalorder %s53_s20, %s53_s20 }
  0x2d   :  { %p3705_p5 = scmp.ne.s32.totalorder %s53_s20, %s3704_s1  ;;  %p3710_p7 = scmp.lt.s32.totalorder %s3704_s1, %s3704_s1 }
  0x2f   :  { %p3711_p8 = por %p3710_p7, %p3709_p6 }
  0x31   :  { %p3712_p9 = pnand %p3711_p8, %p3705_p5 }
  0x33   :  { %3715 = shalt.err (!%p3712_p9)
}
  0x34   :  { %58 = dma.hbm_to_vmem [thread:$0]  %s5583_s4, 8192, %s53_s20, [#allocation6], %s3770_s25, %s3770_s25, %s3771_s26  }
  0x35   :  { %s3716_s17 = scalar_lea.hbm %s5584_s5, 64 }
  0x36   :  { %p3717_p10 = scmp.ne.s32.totalorder %s5584_s5, %s3716_s17  ;;  %p3720_p11 = scmp.lt.u32.totalorder %s3716_s17, %s5584_s5 }
  0x38   :  { %p3722_p12 = pnand %p3720_p11, %p3717_p10 }
  0x3a   :  { %3725 = shalt.err (!%p3722_p12)
}
  0x3b   :  { %s3726_s21 = scalar_lea.vmem %s66_s22, 64  ;;  %p3731_p0 = scmp.lt.s32.totalorder %s66_s22, %s66_s22 }
  0x3c   :  { %p3727_p13 = scmp.ne.s32.totalorder %s66_s22, %s3726_s21  ;;  %p3732_p1 = scmp.lt.s32.totalorder %s3726_s21, %s3726_s21 }
  0x3e   :  { %p3733_p2 = por %p3732_p1, %p3731_p0 }
  0x40   :  { %p3734_p3 = pnand %p3733_p2, %p3727_p13 }
  0x42   :  { %3737 = shalt.err (!%p3734_p3)
}
  0x43   :  { %68 = dma.hbm_to_vmem [thread:$0]  %s5584_s5, 64, %s66_s22, [#allocation9]  }
  0x44   :  { %3760 = dma.done.wait [#allocation3], 512  }
  0x45   :  { %3761 = vsyncadd [#allocation3], 4294966784 }
  0x46   :  { %3762 = dma.done.wait [#allocation6], 12288  }
  0x47   :  { %3763 = vsyncadd [#allocation6], 4294955008 }
  0x48   :  { %3764 = dma.done.wait [#allocation9], 64  }
  0x49   :  { %3765 = vsyncadd [#allocation9], 4294967232  ;;  %v5590_v0 = vmov 0   ;;  %v3038_v1 = vld [vmem:[#allocation2 + $0x4] ss:$16 sps:$4 sm:$0xff]   ;;  %vm282_vm0 = vcmask 130048  }
  0x4a   :  { %327 = vmatprep.mubr.bf16.mxu0 %v5590_v0  ;;  %400 = vmatprep.mubr.bf16.mxu1 %v5590_v0  ;;  %v3040_v2 = vld [vmem:[#allocation2 + $0xc] ss:$16 sps:$4 sm:$0xff]   ;;  %v3042_v3 = vld [vmem:[#allocation2] ss:$16 sps:$4 sm:$0xff]   ;;  %v3043_v4 = vld [vmem:[#allocation2 + $0x8] ss:$16 sps:$4 sm:$0xff]  }
  0x4b   :  { %295 = vmatprep.subr.bf16.mxu0 %v3038_v1  ;;  %368 = vmatprep.subr.bf16.mxu1 %v3040_v2  ;;  %v3044_v5 = vld [vmem:[%s5579_s0] sm:$0xff]   ;;  %v3904_v7 = vld [vmem:[#allocation5 + $0xc] ss:$16 sps:$4 sm:$0xff]   ;;  %v3909_v9 = vld [vmem:[#allocation5 + $0x8] ss:$16 sps:$4 sm:$0xff]   ;;  %vm3776_vm2 = vmmov 0  }
  0x4c   :  { %296 = vmatpush1.bf16.msra.mxu0 %v3042_v3  ;;  %369 = vmatpush1.bf16.msra.mxu1 %v3043_v4  ;;  %v3902_v6 = vld [vmem:[#allocation5 + $0x4] ss:$16 sps:$4 sm:$0xff]   ;;  %v3906_v8 = vld [vmem:[#allocation5] ss:$16 sps:$4 sm:$0xff]   ;;  %v3917_v11 = vld [vmem:[#allocation5 + $0x2c] ss:$16 sps:$4 sm:$0xff]  }
  0x4d   :  { %601 = vmatprep.subr.bf16.mxu0 %v3902_v6  ;;  %v3913_v10 = vld [vmem:[#allocation5 + $0x24] ss:$16 sps:$4 sm:$0xff]   ;;  %642 = vmatprep.subr.bf16.mxu1 %v3904_v7  ;;  %v3919_v12 = vld [vmem:[#allocation5 + $0x20] ss:$16 sps:$4 sm:$0xff]   ;;  %v3921_v13 = vld [vmem:[#allocation5 + $0x28] ss:$16 sps:$4 sm:$0xff]  }
  0x4e   :  { %v3057_v14 = vld [vmem:[%s5579_s0 + $0x8] sm:$0xff]   ;;  %v3930_v15 = vld [vmem:[#allocation5 + $0x44] ss:$16 sps:$4 sm:$0xff]   ;;  %v3936_v17 = vld [vmem:[#allocation5 + $0x40] ss:$16 sps:$4 sm:$0xff]   ;;  %s3777_s24 = smov [#allocation10]  }
  0x4f   :  { %2836 = vmatmul.mubr.msk.bf16.vlgmr.msra.gmra.mrb[0].mxu0 %vm282_vm0, %v3044_v5  ;;  %2840 = vmatmul.mubr.msk.bf16.vlgmr.msra.gmra.mrb[0].mxu1 %vm282_vm0, %v3044_v5  ;;  %v3933_v16 = vld [vmem:[#allocation5 + $0x4c] ss:$16 sps:$4 sm:$0xff]   ;;  %v3938_v18 = vld [vmem:[#allocation5 + $0x48] ss:$16 sps:$4 sm:$0xff]   ;;  %v3942_v19 = vld [vmem:[#allocation5 + $0x64] ss:$16 sps:$4 sm:$0xff]  }
  0x50   :  { %602 = vmatpush1.bf16.msra.mxu0 %v3906_v8  ;;  %643 = vmatpush1.bf16.msra.mxu1 %v3909_v9  ;;  %v3945_v20 = vld [vmem:[#allocation5 + $0x6c] ss:$16 sps:$4 sm:$0xff]   ;;  %v3949_v21 = vld [vmem:[#allocation5 + $0x60] ss:$16 sps:$4 sm:$0xff]   ;;  %v3952_v22 = vld [vmem:[#allocation5 + $0x68] ss:$16 sps:$4 sm:$0xff]  }
  0x51   :  { %603 = vmatprep.subr.bf16.mxu0 %v3913_v10  ;;  %644 = vmatprep.subr.bf16.mxu1 %v3917_v11  ;;  %v3957_v23 = vld [vmem:[#allocation5 + $0x84] ss:$16 sps:$4 sm:$0xff]   ;;  %v3961_v24 = vld [vmem:[#allocation5 + $0x8c] ss:$16 sps:$4 sm:$0xff]   ;;  %v3967_v26 = vld [vmem:[#allocation5 + $0x80] ss:$16 sps:$4 sm:$0xff]  }
  0x52   :  { %337 = vmatprep.mubr.bf16.mxu0 %v5590_v0  ;;  %410 = vmatprep.mubr.bf16.mxu1 %v5590_v0  ;;  %v3070_v25 = vld [vmem:[%s5579_s0 + $0x10] sm:$0xff]   ;;  %v3971_v27 = vld [vmem:[#allocation5 + $0x88] ss:$16 sps:$4 sm:$0xff]   ;;  %v3976_v29 = vld [vmem:[#allocation5 + $0xac] ss:$16 sps:$4 sm:$0xff]   ;;  %s2817_s27 = sshll.u32 %s3777_s24, 4  ;;  %s2818_s27 = int_to_ptr.vmem [resolvable:$true] %s2817_s27 }
  0x53   :  { %v3973_v28 = vld [vmem:[#allocation5 + $0xa4] ss:$16 sps:$4 sm:$0xff]   ;;  %v3981_v30 = vld [vmem:[#allocation5 + $0xa0] ss:$16 sps:$4 sm:$0xff]   ;;  %v3983_v31 = vld [vmem:[#allocation5 + $0xa8] ss:$16 sps:$4 sm:$0xff]   ;;  %p3743_p5 = scmp.lt.s32.totalorder %s2818_s27, %s2818_s27 }
  0x54   :  { %604 = vmatpush1.bf16.msra.mxu0 %v3919_v12  ;;  %645 = vmatpush1.bf16.msra.mxu1 %v3921_v13  ;;  %v3083_v32 = vld [vmem:[%s5579_s0 + $0x18] sm:$0xff]   ;;  %v3991_v33 = vld [vmem:[#allocation5 + $0xc4] ss:$16 sps:$4 sm:$0xff]   ;;  %v3997_v35 = vld [vmem:[#allocation5 + $0xc0] ss:$16 sps:$4 sm:$0xff]  }
  0x55   :  { %605 = vmatprep.subr.bf16.mxu0 %v3930_v15  ;;  %646 = vmatprep.subr.bf16.mxu1 %v3933_v16  ;;  %v3995_v34 = vld [vmem:[#allocation5 + $0xcc] ss:$16 sps:$4 sm:$0xff]   ;;  %v3999_v36 = vld [vmem:[#allocation5 + $0xc8] ss:$16 sps:$4 sm:$0xff]   ;;  %v4001_v37 = vld [vmem:[#allocation5 + $0xe4] ss:$16 sps:$4 sm:$0xff]  }
  0x56   :  { %v4004_v38 = vld [vmem:[#allocation5 + $0xec] ss:$16 sps:$4 sm:$0xff]   ;;  %v4009_v39 = vld [vmem:[#allocation5 + $0xe0] ss:$16 sps:$4 sm:$0xff]   ;;  %v4013_v40 = vld [vmem:[#allocation5 + $0xe8] ss:$16 sps:$4 sm:$0xff]  }
  0x57   :  { %2837 = vmatmul.mubr.msk.bf16.gmra.mrb[4].mxu0 %vm282_vm0, %v3057_v14  ;;  %2841 = vmatmul.mubr.msk.bf16.gmra.mrb[4].mxu1 %vm282_vm0, %v3057_v14  ;;  %v4027_v41 = vld [vmem:[#allocation7 + $0x4] ss:$16 sps:$4 sm:$0xff]   ;;  %v4029_v42 = vld [vmem:[#allocation7 + $0xc] ss:$16 sps:$4 sm:$0xff]   ;;  %v4031_v43 = vld [vmem:[#allocation7] ss:$16 sps:$4 sm:$0xff]  }
  0x58   :  { %606 = vmatpush1.bf16.msra.mxu0 %v3936_v17  ;;  %347 = vmatprep.mubr.bf16.mxu0 %v5590_v0  ;;  %v4033_v44 = vld [vmem:[#allocation7 + $0x8] ss:$16 sps:$4 sm:$0xff]   ;;  %v4039_v45 = vld [vmem:[#allocation7 + $0x24] ss:$16 sps:$4 sm:$0xff]   ;;  %v4041_v46 = vld [vmem:[#allocation7 + $0x2c] ss:$16 sps:$4 sm:$0xff]  }
  0x59   :  { %647 = vmatpush1.bf16.msra.mxu1 %v3938_v18  ;;  %607 = vmatprep.subr.bf16.mxu0 %v3942_v19  ;;  %v4043_v47 = vld [vmem:[#allocation7 + $0x20] ss:$16 sps:$4 sm:$0xff]   ;;  %v4045_v48 = vld [vmem:[#allocation7 + $0x28] ss:$16 sps:$4 sm:$0xff]   ;;  %v4051_v49 = vld [vmem:[#allocation7 + $0x44] ss:$16 sps:$4 sm:$0xff]  }
  0x5a   :  { %648 = vmatprep.subr.bf16.mxu1 %v3945_v20  ;;  %420 = vmatprep.mubr.bf16.mxu1 %v5590_v0  ;;  %v4053_v50 = vld [vmem:[#allocation7 + $0x4c] ss:$16 sps:$4 sm:$0xff]   ;;  %v4055_v51 = vld [vmem:[#allocation7 + $0x40] ss:$16 sps:$4 sm:$0xff]   ;;  %v4057_v52 = vld [vmem:[#allocation7 + $0x48] ss:$16 sps:$4 sm:$0xff]  }
  0x5b   :  { %5937 = vst [vmem:[#allocation15_spill] sm:$0xff] %v4053_v50  ;;  %5938 = vst [vmem:[#allocation16_spill] sm:$0xff] %v4055_v51  ;;  %v4063_v53 = vld [vmem:[#allocation7 + $0x64] ss:$16 sps:$4 sm:$0xff]   ;;  %v4065_v54 = vld [vmem:[#allocation7 + $0x6c] ss:$16 sps:$4 sm:$0xff]  }
  0x5c   :  { %608 = vmatpush1.bf16.msra.mxu0 %v3949_v21  ;;  %5939 = vst [vmem:[#allocation17_spill] sm:$0xff] %v4057_v52  ;;  %5940 = vst [vmem:[#allocation18_spill] sm:$0xff] %v4063_v53  ;;  %v4067_v55 = vld [vmem:[#allocation7 + $0x60] ss:$16 sps:$4 sm:$0xff]   ;;  %v4069_v56 = vld [vmem:[#allocation7 + $0x68] ss:$16 sps:$4 sm:$0xff]  }
  0x5d   :  { %649 = vmatpush1.bf16.msra.mxu1 %v3952_v22  ;;  %609 = vmatprep.subr.bf16.mxu0 %v3957_v23  ;;  %5941 = vst [vmem:[#allocation19_spill] sm:$0xff] %v4065_v54  ;;  %5942 = vst [vmem:[#allocation20_spill] sm:$0xff] %v4067_v55  ;;  %v4075_v57 = vld [vmem:[#allocation7 + $0x84] ss:$16 sps:$4 sm:$0xff]   ;;  %v4077_v58 = vld [vmem:[#allocation7 + $0x8c] ss:$16 sps:$4 sm:$0xff]  }
  0x5e   :  { %650 = vmatprep.subr.bf16.mxu1 %v3961_v24  ;;  %5943 = vst [vmem:[#allocation21_spill] sm:$0xff] %v4069_v56  ;;  %5944 = vst [vmem:[#allocation22_spill] sm:$0xff] %v4075_v57  ;;  %v4081_v59 = vld [vmem:[#allocation7 + $0x80] ss:$16 sps:$4 sm:$0xff]   ;;  %v4083_v60 = vld [vmem:[#allocation7 + $0x88] ss:$16 sps:$4 sm:$0xff]  }
  0x5f   :  { %2838 = vmatmul.mubr.msk.bf16.gmra.mrb[8].mxu0 %vm282_vm0, %v3070_v25  ;;  %2842 = vmatmul.mubr.msk.bf16.gmra.mrb[8].mxu1 %vm282_vm0, %v3070_v25  ;;  %5945 = vst [vmem:[#allocation23_spill] sm:$0xff] %v4077_v58  ;;  %5946 = vst [vmem:[#allocation24_spill] sm:$0xff] %v4081_v59  ;;  %v4087_v61 = vld [vmem:[#allocation7 + $0xa4] ss:$16 sps:$4 sm:$0xff]   ;;  %v4089_v62 = vld [vmem:[#allocation7 + $0xac] ss:$16 sps:$4 sm:$0xff]  }
  0x60   :  { %610 = vmatpush1.bf16.msra.mxu0 %v3967_v26  ;;  %357 = vmatprep.mubr.bf16.mxu0 %v5590_v0  ;;  %5947 = vst [vmem:[#allocation25_spill] sm:$0xff] %v4083_v60  ;;  %5948 = vst [vmem:[#allocation26_spill] sm:$0xff] %v4087_v61  ;;  %v4091_v63 = vld [vmem:[#allocation7 + $0xa0] ss:$16 sps:$4 sm:$0xff]   ;;  %v4093_v1 = vld [vmem:[#allocation7 + $0xa8] ss:$16 sps:$4 sm:$0xff]  }
  0x61   :  { %651 = vmatpush1.bf16.msra.mxu1 %v3971_v27  ;;  %611 = vmatprep.subr.bf16.mxu0 %v3973_v28  ;;  %5949 = vst [vmem:[#allocation27_spill] sm:$0xff] %v4089_v62  ;;  %5950 = vst [vmem:[#allocation28_spill] sm:$0xff] %v4091_v63  ;;  %v4099_v2 = vld [vmem:[#allocation7 + $0xc4] ss:$16 sps:$4 sm:$0xff]   ;;  %v4101_v3 = vld [vmem:[#allocation7 + $0xcc] ss:$16 sps:$4 sm:$0xff]  }
  0x62   :  { %652 = vmatprep.subr.bf16.mxu1 %v3976_v29  ;;  %430 = vmatprep.mubr.bf16.mxu1 %v5590_v0  ;;  %5951 = vst [vmem:[#allocation29_spill] sm:$0xff] %v4093_v1  ;;  %5952 = vst [vmem:[#allocation30_spill] sm:$0xff] %v4099_v2  ;;  %v4103_v4 = vld [vmem:[#allocation7 + $0xc0] ss:$16 sps:$4 sm:$0xff]   ;;  %v4105_v5 = vld [vmem:[#allocation7 + $0xc8] ss:$16 sps:$4 sm:$0xff]  }
  0x63   :  { %5953 = vst [vmem:[#allocation31_spill] sm:$0xff] %v4101_v3  ;;  %5954 = vst [vmem:[#allocation32_spill] sm:$0xff] %v4103_v4  ;;  %v4111_v14 = vld [vmem:[#allocation7 + $0xe4] ss:$16 sps:$4 sm:$0xff]   ;;  %v4113_v25 = vld [vmem:[#allocation7 + $0xec] ss:$16 sps:$4 sm:$0xff]  }
  0x64   :  { %612 = vmatpush1.bf16.msra.mxu0 %v3981_v30  ;;  %5955 = vst [vmem:[#allocation33_spill] sm:$0xff] %v4105_v5  ;;  %5956 = vst [vmem:[#allocation34_spill] sm:$0xff] %v4111_v14 }
  0x65   :  { %653 = vmatpush1.bf16.msra.mxu1 %v3983_v31  ;;  %613 = vmatprep.subr.bf16.mxu0 %v3991_v33  ;;  %5957 = vst [vmem:[#allocation35_spill] sm:$0xff] %v4113_v25 }
  0x66   :  { %654 = vmatprep.subr.bf16.mxu1 %v3995_v34 }
  0x67   :  { %2839 = vmatmul.mubr.msk.bf16.gmra.mrb[12].mxu0 %vm282_vm0, %v3083_v32  ;;  %2843 = vmatmul.mubr.msk.bf16.gmra.mrb[12].mxu1 %vm282_vm0, %v3083_v32  ;;  %v4115_v32 = vld [vmem:[#allocation7 + $0xe0] ss:$16 sps:$4 sm:$0xff]  }
  0x68   :  { %614 = vmatpush1.bf16.msra.mxu0 %v3997_v35  ;;  %633 = vmatprep.mubr.bf16.mxu0 %v5590_v0  ;;  %5958 = vst [vmem:[#allocation36_spill] sm:$0xff] %v4115_v32 }
  0x69   :  { %655 = vmatpush1.bf16.msra.mxu1 %v3999_v36  ;;  %615 = vmatprep.subr.bf16.mxu0 %v4001_v37 }
  0x6a   :  { %656 = vmatprep.subr.bf16.mxu1 %v4004_v38  ;;  %674 = vmatprep.mubr.bf16.mxu1 %v5590_v0 }
  0x6c   :  { %616 = vmatpush1.bf16.msra.mxu0 %v4009_v39 }
  0x6d   :  { %657 = vmatpush1.bf16.msra.mxu1 %v4013_v40  ;;  %1032 = vmatprep.subr.bf16.mxu0 %v4027_v41 }
  0x6e   :  { %1073 = vmatprep.subr.bf16.mxu1 %v4029_v42 }
  0x6f   :  { %634 = vmatmul.mubr.bf16.vlgmr.msra.gmra.mrb[16].mxu0 %v5590_v0 }
  0x70   :  { %675 = vmatmul.mubr.bf16.vlgmr.msra.gmra.mrb[16].mxu1 %v5590_v0  ;;  %1064 = vmatprep.mubr.bf16.mxu0 %v5590_v0 }
  0x71   :  { %1105 = vmatprep.mubr.bf16.mxu1 %v5590_v0  ;;  %1033 = vmatpush1.bf16.msra.mxu0 %v4031_v43  ;;  %v4117_v0 = vld [vmem:[#allocation7 + $0xe8] ss:$16 sps:$4 sm:$0xff]  }
  0x72   :  { %1074 = vmatpush1.bf16.msra.mxu1 %v4033_v44  ;;  %1034 = vmatprep.subr.bf16.mxu0 %v4039_v45  ;;  %5959 = vst [vmem:[#allocation37_spill] sm:$0xff] %v4117_v0 }
  0x73   :  { %1075 = vmatprep.subr.bf16.mxu1 %v4041_v46 }
  0x75   :  { %1035 = vmatpush1.bf16.msra.mxu0 %v4043_v47 }
  0x76   :  { %1076 = vmatpush1.bf16.msra.mxu1 %v4045_v48  ;;  %1036 = vmatprep.subr.bf16.mxu0 %v4051_v49 }
  0x77   :  { %1077 = vmatprep.subr.bf16.mxu1 %v4053_v50 }
  0x79   :  { %1037 = vmatpush1.bf16.msra.mxu0 %v4055_v51 }
  0x7a   :  { %1078 = vmatpush1.bf16.msra.mxu1 %v4057_v52  ;;  %1038 = vmatprep.subr.bf16.mxu0 %v4063_v53 }
  0x7b   :  { %1079 = vmatprep.subr.bf16.mxu1 %v4065_v54 }
  0x7d   :  { %1039 = vmatpush1.bf16.msra.mxu0 %v4067_v55 }
  0x7e   :  { %1080 = vmatpush1.bf16.msra.mxu1 %v4069_v56  ;;  %1040 = vmatprep.subr.bf16.mxu0 %v4075_v57 }
  0x7f   :  { %1081 = vmatprep.subr.bf16.mxu1 %v4077_v58 }
  0x81   :  { %1041 = vmatpush1.bf16.msra.mxu0 %v4081_v59 }
  0x82   :  { %1082 = vmatpush1.bf16.msra.mxu1 %v4083_v60  ;;  %1042 = vmatprep.subr.bf16.mxu0 %v4087_v61 }
  0x83   :  { %1083 = vmatprep.subr.bf16.mxu1 %v4089_v62 }
  0x85   :  { %1043 = vmatpush1.bf16.msra.mxu0 %v4091_v63  ;;  %v4195_v63 = vld [vmem:[#allocation7 + $0x1cc] ss:$16 sps:$4 sm:$0xff]  }
  0x86   :  { %1084 = vmatpush1.bf16.msra.mxu1 %v4093_v1  ;;  %1044 = vmatprep.subr.bf16.mxu0 %v4099_v2  ;;  %v4129_v2 = vld [vmem:[#allocation7 + $0x108] ss:$16 sps:$4 sm:$0xff]   ;;  %v4179_v1 = vld [vmem:[#allocation7 + $0x1a4] ss:$16 sps:$4 sm:$0xff]   ;;  %5985 = vst [vmem:[#allocation63_spill] sm:$0xff] %v4195_v63 }
  0x87   :  { %1085 = vmatprep.subr.bf16.mxu1 %v4101_v3  ;;  %v4123_v3 = vld [vmem:[#allocation7 + $0x104] ss:$16 sps:$4 sm:$0xff]   ;;  %5963 = vst [vmem:[#allocation41_spill] sm:$0xff] %v4129_v2  ;;  %5980 = vst [vmem:[#allocation58_spill] sm:$0xff] %v4179_v1 }
  0x88   :  { %5960 = vst [vmem:[#allocation38_spill] sm:$0xff] %v4123_v3 }
  0x89   :  { %1045 = vmatpush1.bf16.msra.mxu0 %v4103_v4  ;;  %v4125_v4 = vld [vmem:[#allocation7 + $0x10c] ss:$16 sps:$4 sm:$0xff]  }
  0x8a   :  { %1086 = vmatpush1.bf16.msra.mxu1 %v4105_v5  ;;  %1046 = vmatprep.subr.bf16.mxu0 %v4111_v14  ;;  %5961 = vst [vmem:[#allocation39_spill] sm:$0xff] %v4125_v4  ;;  %v4127_v5 = vld [vmem:[#allocation7 + $0x100] ss:$16 sps:$4 sm:$0xff]   ;;  %v4141_v14 = vld [vmem:[#allocation7 + $0x128] ss:$16 sps:$4 sm:$0xff]  }
  0x8b   :  { %1087 = vmatprep.subr.bf16.mxu1 %v4113_v25  ;;  %5962 = vst [vmem:[#allocation40_spill] sm:$0xff] %v4127_v5  ;;  %v4135_v25 = vld [vmem:[#allocation7 + $0x124] ss:$16 sps:$4 sm:$0xff]   ;;  %5967 = vst [vmem:[#allocation45_spill] sm:$0xff] %v4141_v14 }
  0x8c   :  { %5964 = vst [vmem:[#allocation42_spill] sm:$0xff] %v4135_v25 }
  0x8d   :  { %1047 = vmatpush1.bf16.msra.mxu0 %v4115_v32  ;;  %v4137_v32 = vld [vmem:[#allocation7 + $0x12c] ss:$16 sps:$4 sm:$0xff]  }
  0x8e   :  { %1088 = vmatpush1.bf16.msra.mxu1 %v4117_v0  ;;  %1048 = vmatprep.subr.bf16.mxu0 %v4123_v3  ;;  %5965 = vst [vmem:[#allocation43_spill] sm:$0xff] %v4137_v32  ;;  %v4139_v0 = vld [vmem:[#allocation7 + $0x120] ss:$16 sps:$4 sm:$0xff]   ;;  %v4153_v3 = vld [vmem:[#allocation7 + $0x148] ss:$16 sps:$4 sm:$0xff]  }
  0x8f   :  { %1089 = vmatprep.subr.bf16.mxu1 %v4125_v4  ;;  %5966 = vst [vmem:[#allocation44_spill] sm:$0xff] %v4139_v0  ;;  %v4147_v4 = vld [vmem:[#allocation7 + $0x144] ss:$16 sps:$4 sm:$0xff]   ;;  %5971 = vst [vmem:[#allocation49_spill] sm:$0xff] %v4153_v3 }
  0x90   :  { %5968 = vst [vmem:[#allocation46_spill] sm:$0xff] %v4147_v4 }
  0x91   :  { %1049 = vmatpush1.bf16.msra.mxu0 %v4127_v5  ;;  %v4149_v5 = vld [vmem:[#allocation7 + $0x14c] ss:$16 sps:$4 sm:$0xff]  }
  0x92   :  { %1090 = vmatpush1.bf16.msra.mxu1 %v4129_v2  ;;  %1050 = vmatprep.subr.bf16.mxu0 %v4135_v25  ;;  %5969 = vst [vmem:[#allocation47_spill] sm:$0xff] %v4149_v5  ;;  %v4151_v2 = vld [vmem:[#allocation7 + $0x140] ss:$16 sps:$4 sm:$0xff]   ;;  %v4165_v25 = vld [vmem:[#allocation7 + $0x168] ss:$16 sps:$4 sm:$0xff]  }
  0x93   :  { %1091 = vmatprep.subr.bf16.mxu1 %v4137_v32  ;;  %5970 = vst [vmem:[#allocation48_spill] sm:$0xff] %v4151_v2  ;;  %v4159_v32 = vld [vmem:[#allocation7 + $0x164] ss:$16 sps:$4 sm:$0xff]   ;;  %5975 = vst [vmem:[#allocation53_spill] sm:$0xff] %v4165_v25 }
  0x94   :  { %5972 = vst [vmem:[#allocation50_spill] sm:$0xff] %v4159_v32 }
  0x95   :  { %1051 = vmatpush1.bf16.msra.mxu0 %v4139_v0  ;;  %v4161_v0 = vld [vmem:[#allocation7 + $0x16c] ss:$16 sps:$4 sm:$0xff]  }
  0x96   :  { %1092 = vmatpush1.bf16.msra.mxu1 %v4141_v14  ;;  %1052 = vmatprep.subr.bf16.mxu0 %v4147_v4  ;;  %5973 = vst [vmem:[#allocation51_spill] sm:$0xff] %v4161_v0  ;;  %v4163_v14 = vld [vmem:[#allocation7 + $0x160] ss:$16 sps:$4 sm:$0xff]   ;;  %v4177_v4 = vld [vmem:[#allocation7 + $0x188] ss:$16 sps:$4 sm:$0xff]  }
  0x97   :  { %1093 = vmatprep.subr.bf16.mxu1 %v4149_v5  ;;  %5974 = vst [vmem:[#allocation52_spill] sm:$0xff] %v4163_v14  ;;  %v4171_v5 = vld [vmem:[#allocation7 + $0x184] ss:$16 sps:$4 sm:$0xff]   ;;  %5979 = vst [vmem:[#allocation57_spill] sm:$0xff] %v4177_v4 }
  0x98   :  { %5976 = vst [vmem:[#allocation54_spill] sm:$0xff] %v4171_v5 }
  0x99   :  { %1053 = vmatpush1.bf16.msra.mxu0 %v4151_v2  ;;  %v4173_v2 = vld [vmem:[#allocation7 + $0x18c] ss:$16 sps:$4 sm:$0xff]  }
  0x9a   :  { %1094 = vmatpush1.bf16.msra.mxu1 %v4153_v3  ;;  %1054 = vmatprep.subr.bf16.mxu0 %v4159_v32  ;;  %5977 = vst [vmem:[#allocation55_spill] sm:$0xff] %v4173_v2  ;;  %v4175_v3 = vld [vmem:[#allocation7 + $0x180] ss:$16 sps:$4 sm:$0xff]   ;;  %v4183_v32 = vld [vmem:[#allocation7 + $0x1ac] ss:$16 sps:$4 sm:$0xff]  }
  0x9b   :  { %1095 = vmatprep.subr.bf16.mxu1 %v4161_v0  ;;  %5978 = vst [vmem:[#allocation56_spill] sm:$0xff] %v4175_v3  ;;  %5981 = vst [vmem:[#allocation59_spill] sm:$0xff] %v4183_v32  ;;  %v4193_v0 = vld [vmem:[#allocation7 + $0x1c4] ss:$16 sps:$4 sm:$0xff]  }
  0x9c   :  { %5984 = vst [vmem:[#allocation62_spill] sm:$0xff] %v4193_v0 }
  0x9d   :  { %1055 = vmatpush1.bf16.msra.mxu0 %v4163_v14  ;;  %v4189_v14 = vld [vmem:[#allocation7 + $0x1a8] ss:$16 sps:$4 sm:$0xff]  }
  0x9e   :  { %1096 = vmatpush1.bf16.msra.mxu1 %v4165_v25  ;;  %1056 = vmatprep.subr.bf16.mxu0 %v4171_v5  ;;  %v4187_v25 = vld [vmem:[#allocation7 + $0x1a0] ss:$16 sps:$4 sm:$0xff]   ;;  %5983 = vst [vmem:[#allocation61_spill] sm:$0xff] %v4189_v14 }
  0x9f   :  { %1097 = vmatprep.subr.bf16.mxu1 %v4173_v2  ;;  %5982 = vst [vmem:[#allocation60_spill] sm:$0xff] %v4187_v25  ;;  %v4199_v2 = vld [vmem:[#allocation7 + $0x1c0] ss:$16 sps:$4 sm:$0xff]  }
  0xa0   :  { %5986 = vst [vmem:[#allocation64_spill] sm:$0xff] %v4199_v2 }
  0xa1   :  { %1057 = vmatpush1.bf16.msra.mxu0 %v4175_v3  ;;  %v4201_v3 = vld [vmem:[#allocation7 + $0x1c8] ss:$16 sps:$4 sm:$0xff]  }
  0xa2   :  { %1098 = vmatpush1.bf16.msra.mxu1 %v4177_v4  ;;  %1058 = vmatprep.subr.bf16.mxu0 %v4179_v1  ;;  %5987 = vst [vmem:[#allocation65_spill] sm:$0xff] %v4201_v3  ;;  %v4205_v4 = vld [vmem:[#allocation7 + $0x1e4] ss:$16 sps:$4 sm:$0xff]   ;;  %v4207_v1 = vld [vmem:[#allocation7 + $0x1ec] ss:$16 sps:$4 sm:$0xff]  }
  0xa3   :  { %1099 = vmatprep.subr.bf16.mxu1 %v4183_v32  ;;  %5988 = vst [vmem:[#allocation66_spill] sm:$0xff] %v4205_v4  ;;  %5989 = vst [vmem:[#allocation67_spill] sm:$0xff] %v4207_v1  ;;  %v4211_v32 = vld [vmem:[#allocation7 + $0x1e0] ss:$16 sps:$4 sm:$0xff]  }
  0xa4   :  { %5990 = vst [vmem:[#allocation68_spill] sm:$0xff] %v4211_v32 }
  0xa5   :  { %1059 = vmatpush1.bf16.msra.mxu0 %v4187_v25  ;;  %v4213_v25 = vld [vmem:[#allocation7 + $0x1e8] ss:$16 sps:$4 sm:$0xff]  }
  0xa6   :  { %1100 = vmatpush1.bf16.msra.mxu1 %v4189_v14  ;;  %1060 = vmatprep.subr.bf16.mxu0 %v4193_v0  ;;  %5991 = vst [vmem:[#allocation69_spill] sm:$0xff] %v4213_v25 }
  0xa7   :  { %1101 = vmatprep.subr.bf16.mxu1 %v4195_v63  ;;  %v5670_v63 = vlaneseq }
  0xa9   :  { %1061 = vmatpush1.bf16.msra.mxu0 %v4199_v2  ;;  %v4222_v2 = vshrl.u32 %v5670_v63, 7 }
  0xaa   :  { %1102 = vmatpush1.bf16.msra.mxu1 %v4201_v3  ;;  %1062 = vmatprep.subr.bf16.mxu0 %v4205_v4 }
  0xab   :  { %1103 = vmatprep.subr.bf16.mxu1 %v4207_v1  ;;  %5992 = vst [vmem:[#allocation70_spill] sm:$0xff] %v4222_v2  ;;  %v5685_v3 = vsub.s32 2, %v4222_v2  ;;  %v5694_v0 = vsub.s32 3, %v4222_v2  ;;  %v5695_v4 = vsub.s32 0, %v4222_v2 }
  0xad   :  { %1063 = vmatpush1.bf16.msra.mxu0 %v4211_v32  ;;  %v220_v32 = vld [vmem:[%s5582_s3] sm:$0xf] }
  0xae   :  { %1104 = vmatpush1.bf16.msra.mxu1 %v4213_v25  ;;  %1139 = vmatprep.subr.bf16.mxu0 %v3902_v6  ;;  %v5702_v25 = vsub.s32 1, %v4222_v2  ;;  %v4233_v6 = vrot.slane %v220_v32, %v5685_v3  ;;  %v4241_v1 = vrot.slane %v220_v32, %v5694_v0  ;;  %v225_v14 = vrot.slane %v220_v32, %v5695_v4 }
  0xaf   :  { %1180 = vmatprep.subr.bf16.mxu1 %v3904_v7 }
  0xb0   :  { %v229_v61 = vrot.slane %v220_v32, %v5702_v25 }
 0x122   :  { %v4235_v7 = vpop.f32.mrb[0].mxu0  ;;  %v4237_v63 = vpop.f32.mrb[0].mxu1 }
 0x123   :  { %v331_v5 = vpop.f32.mrb[1].mxu0  ;;  %v404_v62 = vpop.f32.mrb[1].mxu1 }
 0x124   :  { %v333_v60 = vpop.f32.mrb[2].mxu0  ;;  %v406_v59 = vpop.f32.mrb[2].mxu1 }
 0x125   :  { %v4247_v3 = vadd.f32 %v333_v60, %v225_v14  ;;  %v335_v58 = vpop.f32.mrb[3].mxu0  ;;  %v4250_v57 = vadd.f32 %v406_v59, %v4233_v6  ;;  %v408_v56 = vpop.f32.mrb[3].mxu1 }
 0x126   :  { %v4252_v55 = vadd.f32 %v335_v58, %v229_v61  ;;  %v4255_v0 = vadd.f32 %v408_v56, %v4241_v1 }
 0x127   :  { %5993 = vst [vmem:[#allocation71_spill] sm:$0xff] %v4247_v3  ;;  %5994 = vst [vmem:[#allocation72_spill] sm:$0xff] %v4250_v57 }
 0x128   :  { %5995 = vst [vmem:[#allocation73_spill] sm:$0xff] %v4252_v55  ;;  %5996 = vst [vmem:[#allocation74_spill] sm:$0xff] %v4255_v0 }
 0x12a   :  { %v339_v4 = vpop.f32.mrb[4].mxu0  ;;  %v412_v54 = vpop.f32.mrb[4].mxu1 }
 0x12b   :  { %v4257_v53 = vadd.f32 %v339_v4, %v225_v14  ;;  %v341_v2 = vpop.f32.mrb[5].mxu0  ;;  %v4260_v32 = vadd.f32 %v412_v54, %v4233_v6  ;;  %v414_v60 = vpop.f32.mrb[5].mxu1 }
 0x12c   :  { %v4262_v25 = vadd.f32 %v341_v2, %v229_v61  ;;  %v343_v3 = vpop.f32.mrb[6].mxu0  ;;  %v4265_v59 = vadd.f32 %v414_v60, %v4241_v1  ;;  %v416_v58 = vpop.f32.mrb[6].mxu1 }
 0x12d   :  { %5997 = vst [vmem:[#allocation75_spill] sm:$0xff] %v4257_v53  ;;  %5998 = vst [vmem:[#allocation76_spill] sm:$0xff] %v4260_v32  ;;  %v4267_v55 = vadd.f32 %v343_v3, %v225_v14  ;;  %v345_v56 = vpop.f32.mrb[7].mxu0  ;;  %v4270_v0 = vadd.f32 %v416_v58, %v4233_v6  ;;  %v418_v4 = vpop.f32.mrb[7].mxu1 }
 0x12e   :  { %5999 = vst [vmem:[#allocation77_spill] sm:$0xff] %v4262_v25  ;;  %6000 = vst [vmem:[#allocation78_spill] sm:$0xff] %v4265_v59  ;;  %v4272_v53 = vadd.f32 %v345_v56, %v229_v61  ;;  %v4275_v54 = vadd.f32 %v418_v4, %v4241_v1 }
 0x12f   :  { %6001 = vst [vmem:[#allocation79_spill] sm:$0xff] %v4267_v55  ;;  %6002 = vst [vmem:[#allocation80_spill] sm:$0xff] %v4270_v0 }
 0x130   :  { %6003 = vst [vmem:[#allocation81_spill] sm:$0xff] %v4272_v53  ;;  %6004 = vst [vmem:[#allocation82_spill] sm:$0xff] %v4275_v54 }
 0x132   :  { %v349_v32 = vpop.f32.mrb[8].mxu0  ;;  %v422_v2 = vpop.f32.mrb[8].mxu1 }
 0x133   :  { %v4277_v25 = vadd.f32 %v349_v32, %v225_v14  ;;  %v351_v57 = vpop.f32.mrb[9].mxu0  ;;  %v4280_v60 = vadd.f32 %v422_v2, %v4233_v6  ;;  %v424_v3 = vpop.f32.mrb[9].mxu1 }
 0x134   :  { %v4282_v55 = vadd.f32 %v351_v57, %v229_v61  ;;  %v353_v59 = vpop.f32.mrb[10].mxu0  ;;  %v4285_v58 = vadd.f32 %v424_v3, %v4241_v1  ;;  %v426_v56 = vpop.f32.mrb[10].mxu1 }
 0x135   :  { %6005 = vst [vmem:[#allocation83_spill] sm:$0xff] %v4277_v25  ;;  %6006 = vst [vmem:[#allocation84_spill] sm:$0xff] %v4280_v60  ;;  %v4287_v53 = vadd.f32 %v353_v59, %v225_v14  ;;  %v355_v4 = vpop.f32.mrb[11].mxu0  ;;  %v4290_v54 = vadd.f32 %v426_v56, %v4233_v6  ;;  %v428_v32 = vpop.f32.mrb[11].mxu1 }
 0x136   :  { %6007 = vst [vmem:[#allocation85_spill] sm:$0xff] %v4282_v55  ;;  %6008 = vst [vmem:[#allocation86_spill] sm:$0xff] %v4285_v58  ;;  %v4292_v25 = vadd.f32 %v355_v4, %v229_v61  ;;  %v4295_v2 = vadd.f32 %v428_v32, %v4241_v1 }
 0x137   :  { %6009 = vst [vmem:[#allocation87_spill] sm:$0xff] %v4287_v53  ;;  %6010 = vst [vmem:[#allocation88_spill] sm:$0xff] %v4290_v54 }
 0x138   :  { %6011 = vst [vmem:[#allocation89_spill] sm:$0xff] %v4292_v25  ;;  %6012 = vst [vmem:[#allocation90_spill] sm:$0xff] %v4295_v2 }
 0x13a   :  { %v359_v60 = vpop.f32.mrb[12].mxu0  ;;  %v432_v57 = vpop.f32.mrb[12].mxu1 }
 0x13b   :  { %v4297_v55 = vadd.f32 %v359_v60, %v225_v14  ;;  %v361_v0 = vpop.f32.mrb[13].mxu0  ;;  %v4300_v3 = vadd.f32 %v432_v57, %v4233_v6  ;;  %v434_v59 = vpop.f32.mrb[13].mxu1 }
 0x13c   :  { %v4302_v53 = vadd.f32 %v361_v0, %v229_v61  ;;  %v363_v58 = vpop.f32.mrb[14].mxu0  ;;  %v4305_v56 = vadd.f32 %v434_v59, %v4241_v1  ;;  %v436_v4 = vpop.f32.mrb[14].mxu1  ;;  %v330_v0 = vadd.f32 %v4235_v7, %v225_v14  ;;  %v403_v59 = vadd.f32 %v4237_v63, %v4233_v6 }
 0x13d   :  { %6013 = vst [vmem:[#allocation91_spill] sm:$0xff] %v4297_v55  ;;  %6014 = vst [vmem:[#allocation92_spill] sm:$0xff] %v4300_v3  ;;  %v4307_v25 = vadd.f32 %v363_v58, %v225_v14  ;;  %v365_v32 = vpop.f32.mrb[15].mxu0  ;;  %v4310_v2 = vadd.f32 %v436_v4, %v4233_v6  ;;  %v438_v60 = vpop.f32.mrb[15].mxu1  ;;  %v405_v58 = vadd.f32 %v404_v62, %v4241_v1 }
 0x13e   :  { %6015 = vst [vmem:[#allocation93_spill] sm:$0xff] %v4302_v53  ;;  %6016 = vst [vmem:[#allocation94_spill] sm:$0xff] %v4305_v56  ;;  %v4312_v55 = vadd.f32 %v365_v32, %v229_v61  ;;  %v4315_v57 = vadd.f32 %v438_v60, %v4241_v1  ;;  %v332_v53 = vadd.f32 %v331_v5, %v229_v61 }
 0x13f   :  { %6017 = vst [vmem:[#allocation95_spill] sm:$0xff] %v4307_v25  ;;  %6018 = vst [vmem:[#allocation96_spill] sm:$0xff] %v4310_v2 }
 0x140   :  { %6019 = vst [vmem:[#allocation97_spill] sm:$0xff] %v4312_v55  ;;  %6020 = vst [vmem:[#allocation98_spill] sm:$0xff] %v4315_v57 }
 0x142   :  { %v635_v56 = vpop.f32.mrb[16].mxu0 }
 0x143   :  { %v683_v25 = vadd.f32 %v635_v56, %v330_v0  ;;  %v676_v3 = vpop.f32.mrb[16].mxu1  ;;  %v637_v54 = vpop.f32.mrb[17].mxu0  ;;  %v6052_v0 = vld [vmem:[#allocation45_spill] sm:$0xff] }
 0x144   :  { %v685_v4 = vadd.f32 %v676_v3, %v403_v59  ;;  %v684_v2 = vadd.f32 %v637_v54, %v332_v53  ;;  %v678_v52 = vpop.f32.mrb[17].mxu1  ;;  %v639_v32 = vpop.f32.mrb[18].mxu0  ;;  %v6053_v59 = vld [vmem:[#allocation46_spill] sm:$0xff] }
 0x145   :  { %v2876_v55 = vmul.f32 -1.442695, %v683_v25  ;;  %v686_v51 = vadd.f32 %v678_v52, %v405_v58  ;;  %v640_v60 = vpop.f32.mrb[19].mxu0  ;;  %v680_v57 = vpop.f32.mrb[18].mxu1  ;;  %v6054_v58 = vld [vmem:[#allocation47_spill] sm:$0xff]  ;;  %v6056_v32 = vld [vmem:[#allocation49_spill] sm:$0xff] }
 0x146   :  { %v2877_v50 = vmul.f32 -1.442695, %v684_v2  ;;  %v681_v14 = vpop.f32.mrb[19].mxu1  ;;  %v2878_v61 = vmul.f32 -1.442695, %v685_v4  ;;  %v6055_v4 = vld [vmem:[#allocation48_spill] sm:$0xff] }
 0x147   :  { %3200 = vpow2.f32 %v2876_v55  ;;  %v6057_v60 = vld [vmem:[#allocation50_spill] sm:$0xff]  ;;  %v6058_v14 = vld [vmem:[#allocation51_spill] sm:$0xff] }
 0x148   :  { %3202 = vpow2.f32 %v2877_v50 }
 0x149   :  { %3204 = vpow2.f32 %v2878_v61  ;;  %v6059_v61 = vld [vmem:[#allocation52_spill] sm:$0xff] }
 0x14a   :  { %3206 = vtanh.f32 %v686_v51  ;;  %v6021_v51 = vmov 0  }
 0x151   :  { %v3201_v63 = vpop.eup %3200 }
 0x152   :  { %v696_v5 = vadd.f32 1.0, %v3201_v63  ;;  %v3203_v62 = vpop.eup %3202  ;;  %v6060_v63 = vld [vmem:[#allocation53_spill] sm:$0xff] }
 0x153   :  { %v697_v1 = vadd.f32 1.0, %v3203_v62  ;;  %v3205_v53 = vpop.eup %3204  ;;  %v6062_v62 = vld [vmem:[#allocation55_spill] sm:$0xff] }
 0x154   :  { %3208 = vrcp.f32 %v696_v5  ;;  %v3207_v6 = vpop.eup %3206  ;;  %v698_v54 = vadd.f32 1.0, %v3205_v53  ;;  %v6061_v5 = vld [vmem:[#allocation54_spill] sm:$0xff]  ;;  %v6064_v53 = vld [vmem:[#allocation57_spill] sm:$0xff] }
 0x155   :  { %3210 = vrcp.f32 %v697_v1  ;;  %v6063_v1 = vld [vmem:[#allocation56_spill] sm:$0xff] }
 0x156   :  { %3212 = vrcp.f32 %v698_v54  ;;  %v6069_v54 = vld [vmem:[#allocation62_spill] sm:$0xff] }
 0x15e   :  { %v3209_v7 = vpop.eup %3208 }
 0x15f   :  { %v707_v25 = vmul.f32 %v3209_v7, %v3207_v6  ;;  %v3211_v52 = vpop.eup %3210  ;;  %v6065_v6 = vld [vmem:[#allocation58_spill] sm:$0xff]  ;;  %v6066_v7 = vld [vmem:[#allocation59_spill] sm:$0xff] }
 0x160   :  { %v706_v3 = vmul.f32 0.0, %v3211_v52  ;;  %v3213_v50 = vpop.eup %3212  ;;  %v6068_v52 = vld [vmem:[#allocation61_spill] sm:$0xff] }
 0x162   :  { %v4321_v2 = vadd.f32 %v707_v25, %v706_v3  ;;  %v6067_v25 = vld [vmem:[#allocation60_spill] sm:$0xff]  ;;  %v6070_v3 = vld [vmem:[#allocation63_spill] sm:$0xff] }
 0x164   :  { %3214 = vtanh.f32 %v4321_v2 }
 0x16e   :  { %v3215_v55 = vpop.eup %3214 }
 0x16f   :  { %v710_v56 = vmul.f32 %v3215_v55, %v3213_v50  ;;  %v6071_v50 = vld [vmem:[#allocation64_spill] sm:$0xff]  ;;  %v6072_v55 = vld [vmem:[#allocation65_spill] sm:$0xff] }
 0x171   :  { %v711_v57 = vpack.c.bf16 %v710_v56, %v710_v56  ;;  %v6073_v56 = vld [vmem:[#allocation66_spill] sm:$0xff] }
 0x173   :  { %1065 = vmatmul.mubr.bf16.vlgmr.msra.gmra.mrb[20].mxu0 %v711_v57  ;;  %1106 = vmatmul.mubr.bf16.vlgmr.msra.gmra.mrb[20].mxu1 %v711_v57 }
 0x174   :  { %1140 = vmatpush1.bf16.msra.mxu0 %v3906_v8  ;;  %1181 = vmatpush1.bf16.msra.mxu1 %v3909_v9  ;;  %v6022_v8 = vld [vmem:[#allocation15_spill] sm:$0xff]  ;;  %v6023_v9 = vld [vmem:[#allocation16_spill] sm:$0xff] }
 0x175   :  { %1141 = vmatprep.subr.bf16.mxu0 %v3913_v10  ;;  %1182 = vmatprep.subr.bf16.mxu1 %v3917_v11  ;;  %v6024_v10 = vld [vmem:[#allocation17_spill] sm:$0xff]  ;;  %v6025_v11 = vld [vmem:[#allocation18_spill] sm:$0xff] }
 0x176   :  { %1171 = vmatprep.mubr.bf16.mxu0 %v6021_v51  ;;  %1212 = vmatprep.mubr.bf16.mxu1 %v6021_v51 }
 0x178   :  { %1142 = vmatpush1.bf16.msra.mxu0 %v3919_v12  ;;  %1183 = vmatpush1.bf16.msra.mxu1 %v3921_v13  ;;  %v6026_v12 = vld [vmem:[#allocation19_spill] sm:$0xff]  ;;  %v6027_v13 = vld [vmem:[#allocation20_spill] sm:$0xff] }
 0x179   :  { %1143 = vmatprep.subr.bf16.mxu0 %v3930_v15  ;;  %1184 = vmatprep.subr.bf16.mxu1 %v3933_v16  ;;  %v6028_v15 = vld [vmem:[#allocation21_spill] sm:$0xff]  ;;  %v6029_v16 = vld [vmem:[#allocation22_spill] sm:$0xff] }
 0x17c   :  { %1144 = vmatpush1.bf16.msra.mxu0 %v3936_v17  ;;  %1185 = vmatpush1.bf16.msra.mxu1 %v3938_v18  ;;  %v6030_v17 = vld [vmem:[#allocation23_spill] sm:$0xff]  ;;  %v6031_v18 = vld [vmem:[#allocation24_spill] sm:$0xff] }
 0x17d   :  { %1145 = vmatprep.subr.bf16.mxu0 %v3942_v19  ;;  %1186 = vmatprep.subr.bf16.mxu1 %v3945_v20  ;;  %v6032_v19 = vld [vmem:[#allocation25_spill] sm:$0xff]  ;;  %v6033_v20 = vld [vmem:[#allocation26_spill] sm:$0xff] }
 0x180   :  { %1146 = vmatpush1.bf16.msra.mxu0 %v3949_v21  ;;  %1187 = vmatpush1.bf16.msra.mxu1 %v3952_v22  ;;  %v6034_v21 = vld [vmem:[#allocation27_spill] sm:$0xff]  ;;  %v6035_v22 = vld [vmem:[#allocation28_spill] sm:$0xff] }
 0x181   :  { %1147 = vmatprep.subr.bf16.mxu0 %v3957_v23  ;;  %1188 = vmatprep.subr.bf16.mxu1 %v3961_v24  ;;  %v6036_v23 = vld [vmem:[#allocation29_spill] sm:$0xff]  ;;  %v6037_v24 = vld [vmem:[#allocation30_spill] sm:$0xff] }
 0x184   :  { %1148 = vmatpush1.bf16.msra.mxu0 %v3967_v26  ;;  %1189 = vmatpush1.bf16.msra.mxu1 %v3971_v27  ;;  %v6038_v26 = vld [vmem:[#allocation31_spill] sm:$0xff]  ;;  %v6039_v27 = vld [vmem:[#allocation32_spill] sm:$0xff] }
 0x185   :  { %1149 = vmatprep.subr.bf16.mxu0 %v3973_v28  ;;  %1190 = vmatprep.subr.bf16.mxu1 %v3976_v29  ;;  %v6040_v28 = vld [vmem:[#allocation33_spill] sm:$0xff]  ;;  %v6041_v29 = vld [vmem:[#allocation34_spill] sm:$0xff] }
 0x188   :  { %1150 = vmatpush1.bf16.msra.mxu0 %v3981_v30  ;;  %1191 = vmatpush1.bf16.msra.mxu1 %v3983_v31  ;;  %v6042_v30 = vld [vmem:[#allocation35_spill] sm:$0xff]  ;;  %v6043_v31 = vld [vmem:[#allocation36_spill] sm:$0xff] }
 0x189   :  { %1151 = vmatprep.subr.bf16.mxu0 %v3991_v33  ;;  %1192 = vmatprep.subr.bf16.mxu1 %v3995_v34  ;;  %v6044_v33 = vld [vmem:[#allocation37_spill] sm:$0xff]  ;;  %v6045_v34 = vld [vmem:[#allocation38_spill] sm:$0xff] }
 0x18c   :  { %1152 = vmatpush1.bf16.msra.mxu0 %v3997_v35  ;;  %1193 = vmatpush1.bf16.msra.mxu1 %v3999_v36  ;;  %v6046_v35 = vld [vmem:[#allocation39_spill] sm:$0xff]  ;;  %v6047_v36 = vld [vmem:[#allocation40_spill] sm:$0xff] }
 0x18d   :  { %1153 = vmatprep.subr.bf16.mxu0 %v4001_v37  ;;  %1194 = vmatprep.subr.bf16.mxu1 %v4004_v38  ;;  %v6048_v37 = vld [vmem:[#allocation41_spill] sm:$0xff]  ;;  %v6049_v38 = vld [vmem:[#allocation42_spill] sm:$0xff] }
 0x190   :  { %1154 = vmatpush1.bf16.msra.mxu0 %v4009_v39  ;;  %1195 = vmatpush1.bf16.msra.mxu1 %v4013_v40  ;;  %v6050_v39 = vld [vmem:[#allocation43_spill] sm:$0xff]  ;;  %v6051_v40 = vld [vmem:[#allocation44_spill] sm:$0xff] }
 0x191   :  { %1250 = vmatprep.subr.bf16.mxu0 %v4027_v41  ;;  %1291 = vmatprep.subr.bf16.mxu1 %v4029_v42 }
 0x193   :  { %1172 = vmatmul.mubr.bf16.vlgmr.msra.gmra.mrb[24].mxu0 %v711_v57  ;;  %1213 = vmatmul.mubr.bf16.vlgmr.msra.gmra.mrb[24].mxu1 %v711_v57  ;;  %v6074_v57 = vld [vmem:[#allocation67_spill] sm:$0xff] }
 0x194   :  { %1251 = vmatpush1.bf16.msra.mxu0 %v4031_v43  ;;  %1292 = vmatpush1.bf16.msra.mxu1 %v4033_v44 }
 0x195   :  { %1252 = vmatprep.subr.bf16.mxu0 %v4039_v45  ;;  %1293 = vmatprep.subr.bf16.mxu1 %v4041_v46 }
 0x198   :  { %1253 = vmatpush1.bf16.msra.mxu0 %v4043_v47  ;;  %1294 = vmatpush1.bf16.msra.mxu1 %v4045_v48 }
 0x199   :  { %1254 = vmatprep.subr.bf16.mxu0 %v4051_v49  ;;  %1295 = vmatprep.subr.bf16.mxu1 %v6022_v8 }
 0x19c   :  { %1255 = vmatpush1.bf16.msra.mxu0 %v6023_v9  ;;  %1296 = vmatpush1.bf16.msra.mxu1 %v6024_v10 }
 0x19d   :  { %1256 = vmatprep.subr.bf16.mxu0 %v6025_v11  ;;  %1297 = vmatprep.subr.bf16.mxu1 %v6026_v12 }
 0x1a0   :  { %1257 = vmatpush1.bf16.msra.mxu0 %v6027_v13  ;;  %1298 = vmatpush1.bf16.msra.mxu1 %v6028_v15 }
 0x1a1   :  { %1258 = vmatprep.subr.bf16.mxu0 %v6029_v16  ;;  %1299 = vmatprep.subr.bf16.mxu1 %v6030_v17 }
 0x1a4   :  { %1259 = vmatpush1.bf16.msra.mxu0 %v6031_v18  ;;  %1300 = vmatpush1.bf16.msra.mxu1 %v6032_v19 }
 0x1a5   :  { %1260 = vmatprep.subr.bf16.mxu0 %v6033_v20  ;;  %1301 = vmatprep.subr.bf16.mxu1 %v6034_v21 }
 0x1a8   :  { %1261 = vmatpush1.bf16.msra.mxu0 %v6035_v22  ;;  %1302 = vmatpush1.bf16.msra.mxu1 %v6036_v23 }
 0x1a9   :  { %1262 = vmatprep.subr.bf16.mxu0 %v6037_v24  ;;  %1303 = vmatprep.subr.bf16.mxu1 %v6038_v26 }
 0x1ac   :  { %1263 = vmatpush1.bf16.msra.mxu0 %v6039_v27  ;;  %1304 = vmatpush1.bf16.msra.mxu1 %v6040_v28 }
 0x1ad   :  { %1264 = vmatprep.subr.bf16.mxu0 %v6041_v29  ;;  %1305 = vmatprep.subr.bf16.mxu1 %v6042_v30 }
 0x1b0   :  { %1265 = vmatpush1.bf16.msra.mxu0 %v6043_v31  ;;  %1306 = vmatpush1.bf16.msra.mxu1 %v6044_v33 }
 0x1b1   :  { %1266 = vmatprep.subr.bf16.mxu0 %v6045_v34  ;;  %1307 = vmatprep.subr.bf16.mxu1 %v6046_v35 }
 0x1b4   :  { %1267 = vmatpush1.bf16.msra.mxu0 %v6047_v36  ;;  %1308 = vmatpush1.bf16.msra.mxu1 %v6048_v37 }
 0x1b5   :  { %1268 = vmatprep.subr.bf16.mxu0 %v6049_v38  ;;  %1309 = vmatprep.subr.bf16.mxu1 %v6050_v39 }
 0x1b8   :  { %1269 = vmatpush1.bf16.msra.mxu0 %v6051_v40  ;;  %1310 = vmatpush1.bf16.msra.mxu1 %v6052_v0 }
 0x1b9   :  { %1270 = vmatprep.subr.bf16.mxu0 %v6053_v59  ;;  %1311 = vmatprep.subr.bf16.mxu1 %v6054_v58 }
 0x1bc   :  { %1271 = vmatpush1.bf16.msra.mxu0 %v6055_v4  ;;  %1312 = vmatpush1.bf16.msra.mxu1 %v6056_v32 }
 0x1bd   :  { %1272 = vmatprep.subr.bf16.mxu0 %v6057_v60  ;;  %1313 = vmatprep.subr.bf16.mxu1 %v6058_v14 }
 0x1c0   :  { %1273 = vmatpush1.bf16.msra.mxu0 %v6059_v61  ;;  %1314 = vmatpush1.bf16.msra.mxu1 %v6060_v63 }
 0x1c1   :  { %1274 = vmatprep.subr.bf16.mxu0 %v6061_v5  ;;  %1315 = vmatprep.subr.bf16.mxu1 %v6062_v62 }
 0x1c4   :  { %1275 = vmatpush1.bf16.msra.mxu0 %v6063_v1  ;;  %1316 = vmatpush1.bf16.msra.mxu1 %v6064_v53  ;;  %v6075_v53 = vld [vmem:[#allocation68_spill] sm:$0xff] }
 0x1c5   :  { %1276 = vmatprep.subr.bf16.mxu0 %v6065_v6  ;;  %1317 = vmatprep.subr.bf16.mxu1 %v6066_v7  ;;  %v6076_v6 = vld [vmem:[#allocation69_spill] sm:$0xff]  ;;  %v4420_v7 = vld [vmem:[#allocation5 + $0x4] ss:$16 sps:$4 sm:$0xff]  }
 0x1c6   :  { %6077 = vst [vmem:[#allocation15_spill] sm:$0xff] %v4420_v7 }
 0x1c8   :  { %1277 = vmatpush1.bf16.msra.mxu0 %v6067_v25  ;;  %1318 = vmatpush1.bf16.msra.mxu1 %v6068_v52  ;;  %v4423_v52 = vld [vmem:[#allocation5 + $0xc] ss:$16 sps:$4 sm:$0xff]  }
 0x1c9   :  { %1278 = vmatprep.subr.bf16.mxu0 %v6069_v54  ;;  %1319 = vmatprep.subr.bf16.mxu1 %v6070_v3  ;;  %6078 = vst [vmem:[#allocation16_spill] sm:$0xff] %v4423_v52  ;;  %v190_v3 = vld [vmem:[#allocation8] sm:$0xf] }
 0x1cc   :  { %1279 = vmatpush1.bf16.msra.mxu0 %v6071_v50  ;;  %1320 = vmatpush1.bf16.msra.mxu1 %v6072_v55  ;;  %v6079_v50 = vld [vmem:[#allocation70_spill] sm:$0xff] }
 0x1cd   :  { %1280 = vmatprep.subr.bf16.mxu0 %v6073_v56  ;;  %1321 = vmatprep.subr.bf16.mxu1 %v6074_v57  ;;  %v6080_v54 = vsub.s32 0, %v6079_v50  ;;  %v6082_v56 = vsub.s32 1, %v6079_v50 }
 0x1cf   :  { %v4428_v55 = vrot.slane %v190_v3, %v6080_v54  ;;  %v4432_v57 = vrot.slane %v190_v3, %v6082_v56  ;;  %v6084_v54 = vsub.s32 2, %v6079_v50  ;;  %v6086_v56 = vsub.s32 3, %v6079_v50 }
 0x1d0   :  { %1281 = vmatpush1.bf16.msra.mxu0 %v6075_v53  ;;  %1322 = vmatpush1.bf16.msra.mxu1 %v6076_v6 }
 0x1d1   :  { %1357 = vmatprep.subr.bf16.mxu0 %v4420_v7  ;;  %1398 = vmatprep.subr.bf16.mxu1 %v4423_v52  ;;  %6081 = vst [vmem:[#allocation17_spill] sm:$0xff] %v4428_v55  ;;  %6083 = vst [vmem:[#allocation18_spill] sm:$0xff] %v4432_v57  ;;  %v4438_v32 = vrot.slane %v190_v3, %v6084_v54  ;;  %v4442_v4 = vrot.slane %v190_v3, %v6086_v56 }
 0x1d3   :  { %6085 = vst [vmem:[#allocation19_spill] sm:$0xff] %v4438_v32  ;;  %6087 = vst [vmem:[#allocation20_spill] sm:$0xff] %v4442_v4 }
 0x246   :  { %v1066_v53 = vpop.f32.mrb[20].mxu0  ;;  %v1107_v25 = vpop.f32.mrb[20].mxu1 }
 0x247   :  { %v1067_v6 = vadd.f32 %v1066_v53, %v4428_v55  ;;  %v1068_v1 = vpop.f32.mrb[21].mxu0  ;;  %v1109_v62 = vpop.f32.mrb[21].mxu1  ;;  %v1108_v53 = vadd.f32 %v1107_v25, %v4438_v32 }
 0x248   :  { %v1069_v7 = vadd.f32 %v1068_v1, %v4432_v57  ;;  %v1070_v5 = vpop.f32.mrb[22].mxu0  ;;  %v1111_v63 = vpop.f32.mrb[22].mxu1  ;;  %v1110_v1 = vadd.f32 %v1109_v62, %v4442_v4  ;;  %v6088_v62 = vld [vmem:[#allocation71_spill] sm:$0xff] }
 0x249   :  { %v2943_v52 = vmul.f32 -1.442695, %v1067_v6  ;;  %v1071_v61 = vpop.f32.mrb[23].mxu0  ;;  %v1112_v14 = vpop.f32.mrb[23].mxu1  ;;  %v2945_v5 = vmul.f32 -1.442695, %v1108_v53 }
 0x24a   :  { %v2944_v60 = vmul.f32 -1.442695, %v1069_v7 }
 0x24b   :  { %3216 = vpow2.f32 %v2943_v52 }
 0x24c   :  { %3218 = vpow2.f32 %v2944_v60 }
 0x24d   :  { %3220 = vtanh.f32 %v1110_v1 }
 0x24e   :  { %3222 = vpow2.f32 %v2945_v5 }
 0x255   :  { %v3217_v63 = vpop.eup %3216 }
 0x256   :  { %v1123_v6 = vadd.f32 1.0, %v3217_v63  ;;  %v3219_v14 = vpop.eup %3218  ;;  %v6089_v63 = vld [vmem:[#allocation72_spill] sm:$0xff] }
 0x257   :  { %v1124_v61 = vadd.f32 1.0, %v3219_v14  ;;  %v3221_v7 = vpop.eup %3220 }
 0x258   :  { %3224 = vrcp.f32 %v1123_v6  ;;  %v3223_v52 = vpop.eup %3222  ;;  %v6090_v6 = vld [vmem:[#allocation73_spill] sm:$0xff] }
 0x259   :  { %3226 = vrcp.f32 %v1124_v61  ;;  %v1125_v3 = vadd.f32 1.0, %v3223_v52  ;;  %v6091_v61 = vld [vmem:[#allocation74_spill] sm:$0xff] }
 0x25b   :  { %3228 = vrcp.f32 %v1125_v3 }
 0x262   :  { %v3225_v60 = vpop.eup %3224 }
 0x263   :  { %v1134_v54 = vmul.f32 %v3225_v60, %v3221_v7  ;;  %v3227_v50 = vpop.eup %3226 }
 0x264   :  { %v1133_v56 = vmul.f32 0.0, %v3227_v50 }
 0x266   :  { %v1173_v57 = vpop.f32.mrb[24].mxu0  ;;  %v1214_v25 = vpop.f32.mrb[24].mxu1  ;;  %v4446_v32 = vadd.f32 %v1134_v54, %v1133_v56 }
 0x267   :  { %v1221_v53 = vadd.f32 %v1173_v57, %v6088_v62  ;;  %v1223_v1 = vadd.f32 %v1214_v25, %v6089_v63  ;;  %v1175_v4 = vpop.f32.mrb[25].mxu0  ;;  %v1216_v5 = vpop.f32.mrb[25].mxu1 }
 0x268   :  { %v1222_v14 = vadd.f32 %v1175_v4, %v6090_v6  ;;  %v1224_v55 = vadd.f32 %v1216_v5, %v6091_v61  ;;  %v1177_v58 = vpop.f32.mrb[26].mxu0  ;;  %v1218_v7 = vpop.f32.mrb[26].mxu1  ;;  %3230 = vtanh.f32 %v4446_v32 }
 0x269   :  { %v2946_v60 = vmul.f32 -1.442695, %v1221_v53  ;;  %v1178_v52 = vpop.f32.mrb[27].mxu0  ;;  %v1219_v50 = vpop.f32.mrb[27].mxu1  ;;  %v2948_v25 = vmul.f32 -1.442695, %v1223_v1 }
 0x26a   :  { %v2947_v54 = vmul.f32 -1.442695, %v1222_v14  ;;  %v3229_v57 = vpop.eup %3228 }
 0x26b   :  { %3232 = vpow2.f32 %v2946_v60 }
 0x26c   :  { %3234 = vpow2.f32 %v2947_v54 }
 0x26d   :  { %3236 = vtanh.f32 %v1224_v55 }
 0x26e   :  { %3238 = vpow2.f32 %v2948_v25  ;;  %v4464_v25 = vld [vmem:[#allocation5 + $0x8] ss:$16 sps:$4 sm:$0xff]  }
 0x272   :  { %v3231_v56 = vpop.eup %3230 }
 0x273   :  { %v1137_v62 = vmul.f32 %v3231_v56, %v3229_v57  ;;  %v4461_v56 = vld [vmem:[#allocation5] ss:$16 sps:$4 sm:$0xff]  }
 0x275   :  { %v3233_v63 = vpop.eup %3232  ;;  %v1138_v4 = vpack.c.bf16 %v1137_v62, %v1137_v62  ;;  %v4470_v62 = vld [vmem:[#allocation5 + $0x2c] ss:$16 sps:$4 sm:$0xff]  }
 0x276   :  { %v1234_v3 = vadd.f32 1.0, %v3233_v63  ;;  %v3235_v6 = vpop.eup %3234  ;;  %v4475_v63 = vld [vmem:[#allocation5 + $0x20] ss:$16 sps:$4 sm:$0xff]  }
 0x277   :  { %v1235_v58 = vadd.f32 1.0, %v3235_v6  ;;  %1282 = vmatprep.mubr.bf16.mxu0 %v1138_v4  ;;  %1323 = vmatprep.mubr.bf16.mxu1 %v1138_v4  ;;  %v3237_v53 = vpop.eup %3236  ;;  %v4481_v4 = vld [vmem:[#allocation5 + $0x44] ss:$16 sps:$4 sm:$0xff]   ;;  %v4484_v6 = vld [vmem:[#allocation5 + $0x4c] ss:$16 sps:$4 sm:$0xff]  }
 0x278   :  { %3240 = vrcp.f32 %v1234_v3  ;;  %v3239_v5 = vpop.eup %3238  ;;  %v4478_v3 = vld [vmem:[#allocation5 + $0x28] ss:$16 sps:$4 sm:$0xff]  }
 0x279   :  { %3242 = vrcp.f32 %v1235_v58  ;;  %v1236_v60 = vadd.f32 1.0, %v3239_v5  ;;  %v4487_v58 = vld [vmem:[#allocation5 + $0x40] ss:$16 sps:$4 sm:$0xff]   ;;  %v4493_v5 = vld [vmem:[#allocation5 + $0x64] ss:$16 sps:$4 sm:$0xff]  }
 0x27b   :  { %3244 = vrcp.f32 %v1236_v60  ;;  %v4505_v60 = vld [vmem:[#allocation5 + $0x84] ss:$16 sps:$4 sm:$0xff]  }
 0x27c   :  { %6093 = vst [vmem:[#allocation22_spill] sm:$0xff] %v4505_v60 }
 0x282   :  { %v3241_v14 = vpop.eup %3240 }
 0x283   :  { %v1245_v61 = vmul.f32 %v3241_v14, %v3237_v53  ;;  %v3243_v7 = vpop.eup %3242  ;;  %v4490_v53 = vld [vmem:[#allocation5 + $0x48] ss:$16 sps:$4 sm:$0xff]   ;;  %v4496_v14 = vld [vmem:[#allocation5 + $0x6c] ss:$16 sps:$4 sm:$0xff]  }
 0x284   :  { %v1244_v1 = vmul.f32 %v3243_v7, %v4321_v2  ;;  %v4467_v2 = vld [vmem:[#allocation5 + $0x24] ss:$16 sps:$4 sm:$0xff]   ;;  %v4502_v7 = vld [vmem:[#allocation5 + $0x68] ss:$16 sps:$4 sm:$0xff]  }
 0x285   :  { %v3245_v55 = vpop.eup %3244  ;;  %6092 = vst [vmem:[#allocation21_spill] sm:$0xff] %v4502_v7 }
 0x286   :  { %v4454_v52 = vadd.f32 %v1245_v61, %v1244_v1  ;;  %v4499_v61 = vld [vmem:[#allocation5 + $0x60] ss:$16 sps:$4 sm:$0xff]   ;;  %v4508_v1 = vld [vmem:[#allocation5 + $0x8c] ss:$16 sps:$4 sm:$0xff]  }
 0x287   :  { %6094 = vst [vmem:[#allocation23_spill] sm:$0xff] %v4508_v1 }
 0x288   :  { %3246 = vtanh.f32 %v4454_v52 }
 0x292   :  { %v3247_v50 = vpop.eup %3246 }
 0x293   :  { %v1248_v54 = vmul.f32 %v3247_v50, %v3245_v55  ;;  %v4511_v55 = vld [vmem:[#allocation5 + $0x80] ss:$16 sps:$4 sm:$0xff]   ;;  %v4514_v50 = vld [vmem:[#allocation5 + $0x88] ss:$16 sps:$4 sm:$0xff]  }
 0x294   :  { %6095 = vst [vmem:[#allocation24_spill] sm:$0xff] %v4511_v55  ;;  %6096 = vst [vmem:[#allocation25_spill] sm:$0xff] %v4514_v50 }
 0x295   :  { %v4457_v57 = vpack.c.bf16 %v1248_v54, %v1248_v54  ;;  %v4517_v54 = vld [vmem:[#allocation5 + $0xa4] ss:$16 sps:$4 sm:$0xff]  }
 0x296   :  { %6097 = vst [vmem:[#allocation26_spill] sm:$0xff] %v4517_v54 }
 0x297   :  { %1283 = vmatmul.mubr.bf16.vlgmr.msra.gmra.mrb[28].mxu0 %v4457_v57  ;;  %1324 = vmatmul.mubr.bf16.vlgmr.msra.gmra.mrb[28].mxu1 %v4457_v57 }
 0x298   :  { %1358 = vmatpush1.bf16.msra.mxu0 %v4461_v56  ;;  %1399 = vmatpush1.bf16.msra.mxu1 %v4464_v25 }
 0x299   :  { %1359 = vmatprep.subr.bf16.mxu0 %v4467_v2  ;;  %1400 = vmatprep.subr.bf16.mxu1 %v4470_v62 }
 0x29a   :  { %1389 = vmatprep.mubr.bf16.mxu0 %v6021_v51  ;;  %1430 = vmatprep.mubr.bf16.mxu1 %v6021_v51 }
 0x29c   :  { %1360 = vmatpush1.bf16.msra.mxu0 %v4475_v63  ;;  %1401 = vmatpush1.bf16.msra.mxu1 %v4478_v3 }
 0x29d   :  { %1361 = vmatprep.subr.bf16.mxu0 %v4481_v4  ;;  %1402 = vmatprep.subr.bf16.mxu1 %v4484_v6 }
 0x2a0   :  { %1362 = vmatpush1.bf16.msra.mxu0 %v4487_v58  ;;  %1403 = vmatpush1.bf16.msra.mxu1 %v4490_v53 }
 0x2a1   :  { %1363 = vmatprep.subr.bf16.mxu0 %v4493_v5  ;;  %1404 = vmatprep.subr.bf16.mxu1 %v4496_v14 }
 0x2a4   :  { %1364 = vmatpush1.bf16.msra.mxu0 %v4499_v61  ;;  %1405 = vmatpush1.bf16.msra.mxu1 %v4502_v7  ;;  %v4520_v7 = vld [vmem:[#allocation5 + $0xac] ss:$16 sps:$4 sm:$0xff]  }
 0x2a5   :  { %1365 = vmatprep.subr.bf16.mxu0 %v4505_v60  ;;  %1406 = vmatprep.subr.bf16.mxu1 %v4508_v1  ;;  %6098 = vst [vmem:[#allocation27_spill] sm:$0xff] %v4520_v7  ;;  %v4523_v60 = vld [vmem:[#allocation5 + $0xa0] ss:$16 sps:$4 sm:$0xff]   ;;  %v4526_v1 = vld [vmem:[#allocation5 + $0xa8] ss:$16 sps:$4 sm:$0xff]  }
 0x2a6   :  { %6099 = vst [vmem:[#allocation28_spill] sm:$0xff] %v4523_v60  ;;  %6100 = vst [vmem:[#allocation29_spill] sm:$0xff] %v4526_v1 }
 0x2a8   :  { %1366 = vmatpush1.bf16.msra.mxu0 %v4511_v55  ;;  %1407 = vmatpush1.bf16.msra.mxu1 %v4514_v50  ;;  %v4529_v55 = vld [vmem:[#allocation5 + $0xc4] ss:$16 sps:$4 sm:$0xff]   ;;  %v4532_v50 = vld [vmem:[#allocation5 + $0xcc] ss:$16 sps:$4 sm:$0xff]  }
 0x2a9   :  { %1367 = vmatprep.subr.bf16.mxu0 %v4517_v54  ;;  %1408 = vmatprep.subr.bf16.mxu1 %v4520_v7  ;;  %6101 = vst [vmem:[#allocation30_spill] sm:$0xff] %v4529_v55  ;;  %6102 = vst [vmem:[#allocation31_spill] sm:$0xff] %v4532_v50  ;;  %v4535_v54 = vld [vmem:[#allocation5 + $0xc0] ss:$16 sps:$4 sm:$0xff]   ;;  %v4538_v7 = vld [vmem:[#allocation5 + $0xc8] ss:$16 sps:$4 sm:$0xff]  }
 0x2ac   :  { %1368 = vmatpush1.bf16.msra.mxu0 %v4523_v60  ;;  %1409 = vmatpush1.bf16.msra.mxu1 %v4526_v1  ;;  %v4541_v60 = vld [vmem:[#allocation5 + $0xe4] ss:$16 sps:$4 sm:$0xff]   ;;  %v4544_v1 = vld [vmem:[#allocation5 + $0xec] ss:$16 sps:$4 sm:$0xff]  }
 0x2ad   :  { %1369 = vmatprep.subr.bf16.mxu0 %v4529_v55  ;;  %1410 = vmatprep.subr.bf16.mxu1 %v4532_v50  ;;  %v4547_v55 = vld [vmem:[#allocation5 + $0xe0] ss:$16 sps:$4 sm:$0xff]   ;;  %v4550_v50 = vld [vmem:[#allocation5 + $0xe8] ss:$16 sps:$4 sm:$0xff]  }
 0x2b0   :  { %1370 = vmatpush1.bf16.msra.mxu0 %v4535_v54  ;;  %1411 = vmatpush1.bf16.msra.mxu1 %v4538_v7 }
 0x2b1   :  { %1371 = vmatprep.subr.bf16.mxu0 %v4541_v60  ;;  %1412 = vmatprep.subr.bf16.mxu1 %v4544_v1 }
 0x2b4   :  { %1372 = vmatpush1.bf16.msra.mxu0 %v4547_v55  ;;  %1413 = vmatpush1.bf16.msra.mxu1 %v4550_v50 }
 0x2b5   :  { %1468 = vmatprep.subr.bf16.mxu0 %v4027_v41  ;;  %1509 = vmatprep.subr.bf16.mxu1 %v4029_v42  ;;  %v6103_v41 = vld [vmem:[#allocation47_spill] sm:$0xff]  ;;  %v6104_v42 = vld [vmem:[#allocation48_spill] sm:$0xff] }
 0x2b7   :  { %1390 = vmatmul.mubr.bf16.vlgmr.msra.gmra.mrb[32].mxu0 %v4457_v57  ;;  %1431 = vmatmul.mubr.bf16.vlgmr.msra.gmra.mrb[32].mxu1 %v4457_v57  ;;  %v6131_v57 = vld [vmem:[#allocation20_spill] sm:$0xff] }
 0x2b8   :  { %1469 = vmatpush1.bf16.msra.mxu0 %v4031_v43  ;;  %1510 = vmatpush1.bf16.msra.mxu1 %v4033_v44  ;;  %v6105_v43 = vld [vmem:[#allocation49_spill] sm:$0xff]  ;;  %v6106_v44 = vld [vmem:[#allocation50_spill] sm:$0xff] }
 0x2b9   :  { %1470 = vmatprep.subr.bf16.mxu0 %v4039_v45  ;;  %1511 = vmatprep.subr.bf16.mxu1 %v4041_v46  ;;  %v6107_v45 = vld [vmem:[#allocation51_spill] sm:$0xff]  ;;  %v6108_v46 = vld [vmem:[#allocation52_spill] sm:$0xff] }
 0x2bc   :  { %1471 = vmatpush1.bf16.msra.mxu0 %v4043_v47  ;;  %1512 = vmatpush1.bf16.msra.mxu1 %v4045_v48  ;;  %v6109_v47 = vld [vmem:[#allocation53_spill] sm:$0xff]  ;;  %v6110_v48 = vld [vmem:[#allocation54_spill] sm:$0xff] }
 0x2bd   :  { %1472 = vmatprep.subr.bf16.mxu0 %v4051_v49  ;;  %1513 = vmatprep.subr.bf16.mxu1 %v6022_v8  ;;  %v6111_v49 = vld [vmem:[#allocation55_spill] sm:$0xff]  ;;  %v6112_v8 = vld [vmem:[#allocation56_spill] sm:$0xff] }
 0x2c0   :  { %1473 = vmatpush1.bf16.msra.mxu0 %v6023_v9  ;;  %1514 = vmatpush1.bf16.msra.mxu1 %v6024_v10  ;;  %v6113_v9 = vld [vmem:[#allocation57_spill] sm:$0xff]  ;;  %v6114_v10 = vld [vmem:[#allocation58_spill] sm:$0xff] }
 0x2c1   :  { %1474 = vmatprep.subr.bf16.mxu0 %v6025_v11  ;;  %1515 = vmatprep.subr.bf16.mxu1 %v6026_v12  ;;  %v6115_v11 = vld [vmem:[#allocation59_spill] sm:$0xff]  ;;  %v6116_v12 = vld [vmem:[#allocation60_spill] sm:$0xff] }
 0x2c4   :  { %1475 = vmatpush1.bf16.msra.mxu0 %v6027_v13  ;;  %1516 = vmatpush1.bf16.msra.mxu1 %v6028_v15  ;;  %v6117_v13 = vld [vmem:[#allocation61_spill] sm:$0xff]  ;;  %v6118_v15 = vld [vmem:[#allocation62_spill] sm:$0xff] }
 0x2c5   :  { %1476 = vmatprep.subr.bf16.mxu0 %v6029_v16  ;;  %1517 = vmatprep.subr.bf16.mxu1 %v6030_v17  ;;  %v6119_v16 = vld [vmem:[#allocation63_spill] sm:$0xff]  ;;  %v6120_v17 = vld [vmem:[#allocation64_spill] sm:$0xff] }
 0x2c8   :  { %1477 = vmatpush1.bf16.msra.mxu0 %v6031_v18  ;;  %1518 = vmatpush1.bf16.msra.mxu1 %v6032_v19  ;;  %v6121_v18 = vld [vmem:[#allocation65_spill] sm:$0xff]  ;;  %v6122_v19 = vld [vmem:[#allocation66_spill] sm:$0xff] }
 0x2c9   :  { %1478 = vmatprep.subr.bf16.mxu0 %v6033_v20  ;;  %1519 = vmatprep.subr.bf16.mxu1 %v6034_v21  ;;  %v6123_v20 = vld [vmem:[#allocation67_spill] sm:$0xff]  ;;  %v6124_v21 = vld [vmem:[#allocation68_spill] sm:$0xff] }
 0x2cc   :  { %1479 = vmatpush1.bf16.msra.mxu0 %v6035_v22  ;;  %1520 = vmatpush1.bf16.msra.mxu1 %v6036_v23  ;;  %v6125_v22 = vld [vmem:[#allocation69_spill] sm:$0xff]  ;;  %v6126_v23 = vld [vmem:[#allocation15_spill] sm:$0xff] }
 0x2cd   :  { %1480 = vmatprep.subr.bf16.mxu0 %v6037_v24  ;;  %1521 = vmatprep.subr.bf16.mxu1 %v6038_v26  ;;  %v6127_v24 = vld [vmem:[#allocation16_spill] sm:$0xff] }
 0x2d0   :  { %1481 = vmatpush1.bf16.msra.mxu0 %v6039_v27  ;;  %1522 = vmatpush1.bf16.msra.mxu1 %v6040_v28  ;;  %v6128_v28 = vld [vmem:[#allocation17_spill] sm:$0xff] }
 0x2d1   :  { %1482 = vmatprep.subr.bf16.mxu0 %v6041_v29  ;;  %1523 = vmatprep.subr.bf16.mxu1 %v6042_v30 }
 0x2d4   :  { %1483 = vmatpush1.bf16.msra.mxu0 %v6043_v31  ;;  %1524 = vmatpush1.bf16.msra.mxu1 %v6044_v33  ;;  %v6129_v33 = vld [vmem:[#allocation18_spill] sm:$0xff] }
 0x2d5   :  { %1484 = vmatprep.subr.bf16.mxu0 %v6045_v34  ;;  %1525 = vmatprep.subr.bf16.mxu1 %v6046_v35 }
 0x2d8   :  { %1485 = vmatpush1.bf16.msra.mxu0 %v6047_v36  ;;  %1526 = vmatpush1.bf16.msra.mxu1 %v6048_v37 }
 0x2d9   :  { %1486 = vmatprep.subr.bf16.mxu0 %v6049_v38  ;;  %1527 = vmatprep.subr.bf16.mxu1 %v6050_v39 }
 0x2dc   :  { %1487 = vmatpush1.bf16.msra.mxu0 %v6051_v40  ;;  %1528 = vmatpush1.bf16.msra.mxu1 %v6052_v0  ;;  %v6130_v0 = vld [vmem:[#allocation19_spill] sm:$0xff] }
 0x2dd   :  { %1488 = vmatprep.subr.bf16.mxu0 %v6053_v59  ;;  %1529 = vmatprep.subr.bf16.mxu1 %v6103_v41 }
 0x2e0   :  { %1489 = vmatpush1.bf16.msra.mxu0 %v6104_v42  ;;  %1530 = vmatpush1.bf16.msra.mxu1 %v6105_v43 }
 0x2e1   :  { %1490 = vmatprep.subr.bf16.mxu0 %v6106_v44  ;;  %1531 = vmatprep.subr.bf16.mxu1 %v6107_v45 }
 0x2e4   :  { %1491 = vmatpush1.bf16.msra.mxu0 %v6108_v46  ;;  %1532 = vmatpush1.bf16.msra.mxu1 %v6109_v47 }
 0x2e5   :  { %1492 = vmatprep.subr.bf16.mxu0 %v6110_v48  ;;  %1533 = vmatprep.subr.bf16.mxu1 %v6111_v49 }
 0x2e8   :  { %1493 = vmatpush1.bf16.msra.mxu0 %v6112_v8  ;;  %1534 = vmatpush1.bf16.msra.mxu1 %v6113_v9 }
 0x2e9   :  { %1494 = vmatprep.subr.bf16.mxu0 %v6114_v10  ;;  %1535 = vmatprep.subr.bf16.mxu1 %v6115_v11 }
 0x2ec   :  { %1495 = vmatpush1.bf16.msra.mxu0 %v6116_v12  ;;  %1536 = vmatpush1.bf16.msra.mxu1 %v6117_v13 }
 0x2ed   :  { %1496 = vmatprep.subr.bf16.mxu0 %v6118_v15  ;;  %1537 = vmatprep.subr.bf16.mxu1 %v6119_v16  ;;  %v6132_v16 = vld [vmem:[#allocation75_spill] sm:$0xff] }
 0x2f0   :  { %1497 = vmatpush1.bf16.msra.mxu0 %v6120_v17  ;;  %1538 = vmatpush1.bf16.msra.mxu1 %v6121_v18  ;;  %v6133_v18 = vld [vmem:[#allocation76_spill] sm:$0xff] }
 0x2f1   :  { %1498 = vmatprep.subr.bf16.mxu0 %v6122_v19  ;;  %1539 = vmatprep.subr.bf16.mxu1 %v6123_v20 }
 0x2f4   :  { %1499 = vmatpush1.bf16.msra.mxu0 %v6124_v21  ;;  %1540 = vmatpush1.bf16.msra.mxu1 %v6125_v22  ;;  %v6134_v22 = vld [vmem:[#allocation77_spill] sm:$0xff] }
 0x2f5   :  { %1575 = vmatprep.subr.bf16.mxu0 %v6126_v23  ;;  %1616 = vmatprep.subr.bf16.mxu1 %v6127_v24 }
 0x36a   :  { %v1284_v26 = vpop.f32.mrb[28].mxu0  ;;  %v1325_v27 = vpop.f32.mrb[28].mxu1 }
 0x36b   :  { %v1285_v29 = vadd.f32 %v1284_v26, %v6128_v28  ;;  %v1286_v30 = vpop.f32.mrb[29].mxu0  ;;  %v1327_v31 = vpop.f32.mrb[29].mxu1  ;;  %v1326_v59 = vadd.f32 %v1325_v27, %v6130_v0  ;;  %v6135_v27 = vld [vmem:[#allocation78_spill] sm:$0xff] }
 0x36c   :  { %v1287_v34 = vadd.f32 %v1286_v30, %v6129_v33  ;;  %v1288_v35 = vpop.f32.mrb[30].mxu0  ;;  %v1329_v36 = vpop.f32.mrb[30].mxu1  ;;  %v1328_v41 = vadd.f32 %v1327_v31, %v6131_v57 }
 0x36d   :  { %v2949_v37 = vmul.f32 -1.442695, %v1285_v29  ;;  %v1289_v38 = vpop.f32.mrb[31].mxu0  ;;  %v1330_v39 = vpop.f32.mrb[31].mxu1  ;;  %v2951_v42 = vmul.f32 -1.442695, %v1326_v59 }
 0x36e   :  { %v2950_v40 = vmul.f32 -1.442695, %v1287_v34 }
 0x36f   :  { %3248 = vpow2.f32 %v2949_v37 }
 0x370   :  { %3250 = vpow2.f32 %v2950_v40 }
 0x371   :  { %3252 = vtanh.f32 %v1328_v41 }
 0x372   :  { %3254 = vpow2.f32 %v2951_v42 }
 0x379   :  { %v3249_v43 = vpop.eup %3248 }
 0x37a   :  { %v1341_v44 = vadd.f32 1.0, %v3249_v43  ;;  %v3251_v45 = vpop.eup %3250 }
 0x37b   :  { %v1342_v46 = vadd.f32 1.0, %v3251_v45  ;;  %v3253_v47 = vpop.eup %3252 }
 0x37c   :  { %3256 = vrcp.f32 %v1341_v44  ;;  %v3255_v48 = vpop.eup %3254 }
 0x37d   :  { %3258 = vrcp.f32 %v1342_v46  ;;  %v1343_v10 = vadd.f32 1.0, %v3255_v48 }
 0x37f   :  { %3260 = vrcp.f32 %v1343_v10 }
 0x386   :  { %v3257_v49 = vpop.eup %3256 }
 0x387   :  { %v1352_v8 = vmul.f32 %v3257_v49, %v3253_v47  ;;  %v3259_v9 = vpop.eup %3258 }
 0x388   :  { %v1351_v11 = vmul.f32 %v3259_v9, %v4446_v32 }
 0x389   :  { %v3261_v37 = vpop.eup %3260 }
 0x38a   :  { %v1391_v12 = vpop.f32.mrb[32].mxu0  ;;  %v1432_v13 = vpop.f32.mrb[32].mxu1  ;;  %v4626_v15 = vadd.f32 %v1352_v8, %v1351_v11 }
 0x38b   :  { %v1439_v17 = vadd.f32 %v1391_v12, %v6132_v16  ;;  %v1441_v19 = vadd.f32 %v1432_v13, %v6133_v18  ;;  %v1393_v20 = vpop.f32.mrb[33].mxu0  ;;  %v1434_v21 = vpop.f32.mrb[33].mxu1  ;;  %v6138_v18 = vld [vmem:[#allocation23_spill] sm:$0xff] }
 0x38c   :  { %v1440_v26 = vadd.f32 %v1393_v20, %v6134_v22  ;;  %v1442_v29 = vadd.f32 %v1434_v21, %v6135_v27  ;;  %v1395_v30 = vpop.f32.mrb[34].mxu0  ;;  %v1436_v31 = vpop.f32.mrb[34].mxu1  ;;  %3262 = vtanh.f32 %v4626_v15  ;;  %v6140_v20 = vld [vmem:[#allocation25_spill] sm:$0xff]  ;;  %v6141_v21 = vld [vmem:[#allocation26_spill] sm:$0xff]  ;;  %v6142_v22 = vld [vmem:[#allocation27_spill] sm:$0xff] }
 0x38d   :  { %v2952_v34 = vmul.f32 -1.442695, %v1439_v17  ;;  %v1396_v35 = vpop.f32.mrb[35].mxu0  ;;  %v1437_v32 = vpop.f32.mrb[35].mxu1  ;;  %v2954_v39 = vmul.f32 -1.442695, %v1441_v19 }
 0x38e   :  { %v2953_v36 = vmul.f32 -1.442695, %v1440_v26  ;;  %v6137_v17 = vld [vmem:[#allocation22_spill] sm:$0xff]  ;;  %v6139_v19 = vld [vmem:[#allocation24_spill] sm:$0xff]  ;;  %v6144_v27 = vld [vmem:[#allocation29_spill] sm:$0xff] }
 0x38f   :  { %3264 = vpow2.f32 %v2952_v34  ;;  %v6143_v26 = vld [vmem:[#allocation28_spill] sm:$0xff]  ;;  %v6146_v30 = vld [vmem:[#allocation31_spill] sm:$0xff] }
 0x390   :  { %3266 = vpow2.f32 %v2953_v36  ;;  %v4669_v31 = vld [vmem:[#allocation7 + $0x4] ss:$16 sps:$4 sm:$0xff]   ;;  %v4672_v34 = vld [vmem:[#allocation7 + $0xc] ss:$16 sps:$4 sm:$0xff]   ;;  %v4675_v35 = vld [vmem:[#allocation7] ss:$16 sps:$4 sm:$0xff]  }
 0x391   :  { %3268 = vtanh.f32 %v1442_v29  ;;  %v6145_v29 = vld [vmem:[#allocation30_spill] sm:$0xff] }
 0x392   :  { %3270 = vpow2.f32 %v2954_v39  ;;  %v4678_v32 = vld [vmem:[#allocation7 + $0x8] ss:$16 sps:$4 sm:$0xff]   ;;  %v4681_v36 = vld [vmem:[#allocation7 + $0x24] ss:$16 sps:$4 sm:$0xff]  }
 0x393   :  { %v4690_v39 = vld [vmem:[#allocation7 + $0x28] ss:$16 sps:$4 sm:$0xff]  }
 0x396   :  { %v3263_v38 = vpop.eup %3262 }
 0x397   :  { %v1355_v40 = vmul.f32 %v3263_v38, %v3261_v37  ;;  %v4684_v37 = vld [vmem:[#allocation7 + $0x2c] ss:$16 sps:$4 sm:$0xff]   ;;  %v4687_v38 = vld [vmem:[#allocation7 + $0x20] ss:$16 sps:$4 sm:$0xff]  }
 0x399   :  { %v3265_v59 = vpop.eup %3264  ;;  %v1356_v42 = vpack.c.bf16 %v1355_v40, %v1355_v40  ;;  %v4693_v40 = vld [vmem:[#allocation7 + $0x44] ss:$16 sps:$4 sm:$0xff]  }
 0x39a   :  { %v1452_v41 = vadd.f32 1.0, %v3265_v59  ;;  %v3267_v43 = vpop.eup %3266  ;;  %v4696_v59 = vld [vmem:[#allocation7 + $0x4c] ss:$16 sps:$4 sm:$0xff]  }
 0x39b   :  { %v1453_v44 = vadd.f32 1.0, %v3267_v43  ;;  %1500 = vmatprep.mubr.bf16.mxu0 %v1356_v42  ;;  %1541 = vmatprep.mubr.bf16.mxu1 %v1356_v42  ;;  %v3269_v45 = vpop.eup %3268  ;;  %v4702_v42 = vld [vmem:[#allocation7 + $0x48] ss:$16 sps:$4 sm:$0xff]   ;;  %v4705_v43 = vld [vmem:[#allocation7 + $0x64] ss:$16 sps:$4 sm:$0xff]  }
 0x39c   :  { %3272 = vrcp.f32 %v1452_v41  ;;  %v3271_v46 = vpop.eup %3270  ;;  %v4699_v41 = vld [vmem:[#allocation7 + $0x40] ss:$16 sps:$4 sm:$0xff]   ;;  %6148 = vst [vmem:[#allocation33_spill] sm:$0xff] %v4702_v42  ;;  %6149 = vst [vmem:[#allocation34_spill] sm:$0xff] %v4705_v43 }
 0x39d   :  { %3274 = vrcp.f32 %v1453_v44  ;;  %v1454_v8 = vadd.f32 1.0, %v3271_v46  ;;  %6147 = vst [vmem:[#allocation32_spill] sm:$0xff] %v4699_v41  ;;  %v4708_v44 = vld [vmem:[#allocation7 + $0x6c] ss:$16 sps:$4 sm:$0xff]   ;;  %v4714_v46 = vld [vmem:[#allocation7 + $0x68] ss:$16 sps:$4 sm:$0xff]  }
 0x39e   :  { %6150 = vst [vmem:[#allocation35_spill] sm:$0xff] %v4708_v44  ;;  %6152 = vst [vmem:[#allocation37_spill] sm:$0xff] %v4714_v46 }
 0x39f   :  { %3276 = vrcp.f32 %v1454_v8  ;;  %v4726_v8 = vld [vmem:[#allocation7 + $0x88] ss:$16 sps:$4 sm:$0xff]  }
 0x3a0   :  { %6156 = vst [vmem:[#allocation41_spill] sm:$0xff] %v4726_v8 }
 0x3a6   :  { %v3273_v47 = vpop.eup %3272 }
 0x3a7   :  { %v1463_v48 = vmul.f32 %v3273_v47, %v3269_v45  ;;  %v3275_v49 = vpop.eup %3274  ;;  %v4711_v45 = vld [vmem:[#allocation7 + $0x60] ss:$16 sps:$4 sm:$0xff]   ;;  %v4717_v47 = vld [vmem:[#allocation7 + $0x84] ss:$16 sps:$4 sm:$0xff]  }
 0x3a8   :  { %v1462_v9 = vmul.f32 %v3275_v49, %v4454_v52  ;;  %v6136_v52 = vld [vmem:[#allocation21_spill] sm:$0xff]  ;;  %6151 = vst [vmem:[#allocation36_spill] sm:$0xff] %v4711_v45  ;;  %6153 = vst [vmem:[#allocation38_spill] sm:$0xff] %v4717_v47 }
 0x3a9   :  { %v3277_v11 = vpop.eup %3276  ;;  %v4723_v49 = vld [vmem:[#allocation7 + $0x80] ss:$16 sps:$4 sm:$0xff]  }
 0x3aa   :  { %v4634_v10 = vadd.f32 %v1463_v48, %v1462_v9  ;;  %v4720_v48 = vld [vmem:[#allocation7 + $0x8c] ss:$16 sps:$4 sm:$0xff]   ;;  %6155 = vst [vmem:[#allocation40_spill] sm:$0xff] %v4723_v49  ;;  %v4729_v9 = vld [vmem:[#allocation7 + $0xa4] ss:$16 sps:$4 sm:$0xff]  }
 0x3ab   :  { %6154 = vst [vmem:[#allocation39_spill] sm:$0xff] %v4720_v48  ;;  %6157 = vst [vmem:[#allocation42_spill] sm:$0xff] %v4729_v9 }
 0x3ac   :  { %3278 = vtanh.f32 %v4634_v10 }
 0x3b6   :  { %v3279_v12 = vpop.eup %3278 }
 0x3b7   :  { %v1466_v13 = vmul.f32 %v3279_v12, %v3277_v11  ;;  %v4732_v11 = vld [vmem:[#allocation7 + $0xac] ss:$16 sps:$4 sm:$0xff]   ;;  %v4735_v12 = vld [vmem:[#allocation7 + $0xa0] ss:$16 sps:$4 sm:$0xff]  }
 0x3b8   :  { %6158 = vst [vmem:[#allocation43_spill] sm:$0xff] %v4732_v11  ;;  %6159 = vst [vmem:[#allocation44_spill] sm:$0xff] %v4735_v12 }
 0x3b9   :  { %v1467_v16 = vpack.c.bf16 %v1466_v13, %v1466_v13  ;;  %v4738_v13 = vld [vmem:[#allocation7 + $0xa8] ss:$16 sps:$4 sm:$0xff]  }
 0x3ba   :  { %6160 = vst [vmem:[#allocation45_spill] sm:$0xff] %v4738_v13 }
 0x3bb   :  { %1501 = vmatmul.mubr.bf16.vlgmr.msra.gmra.mrb[36].mxu0 %v1467_v16  ;;  %1542 = vmatmul.mubr.bf16.vlgmr.msra.gmra.mrb[36].mxu1 %v1467_v16 }
 0x3bc   :  { %1576 = vmatpush1.bf16.msra.mxu0 %v4461_v56  ;;  %1617 = vmatpush1.bf16.msra.mxu1 %v4464_v25 }
 0x3bd   :  { %1577 = vmatprep.subr.bf16.mxu0 %v4467_v2  ;;  %1618 = vmatprep.subr.bf16.mxu1 %v4470_v62 }
 0x3be   :  { %1607 = vmatprep.mubr.bf16.mxu0 %v6021_v51  ;;  %1648 = vmatprep.mubr.bf16.mxu1 %v6021_v51 }
 0x3c0   :  { %1578 = vmatpush1.bf16.msra.mxu0 %v4475_v63  ;;  %1619 = vmatpush1.bf16.msra.mxu1 %v4478_v3 }
 0x3c1   :  { %1579 = vmatprep.subr.bf16.mxu0 %v4481_v4  ;;  %1620 = vmatprep.subr.bf16.mxu1 %v4484_v6 }
 0x3c4   :  { %1580 = vmatpush1.bf16.msra.mxu0 %v4487_v58  ;;  %1621 = vmatpush1.bf16.msra.mxu1 %v4490_v53 }
 0x3c5   :  { %1581 = vmatprep.subr.bf16.mxu0 %v4493_v5  ;;  %1622 = vmatprep.subr.bf16.mxu1 %v4496_v14 }
 0x3c8   :  { %1582 = vmatpush1.bf16.msra.mxu0 %v4499_v61  ;;  %1623 = vmatpush1.bf16.msra.mxu1 %v6136_v52 }
 0x3c9   :  { %1583 = vmatprep.subr.bf16.mxu0 %v6137_v17  ;;  %1624 = vmatprep.subr.bf16.mxu1 %v6138_v18 }
 0x3cc   :  { %1584 = vmatpush1.bf16.msra.mxu0 %v6139_v19  ;;  %1625 = vmatpush1.bf16.msra.mxu1 %v6140_v20 }
 0x3cd   :  { %1585 = vmatprep.subr.bf16.mxu0 %v6141_v21  ;;  %1626 = vmatprep.subr.bf16.mxu1 %v6142_v22 }
 0x3d0   :  { %1586 = vmatpush1.bf16.msra.mxu0 %v6143_v26  ;;  %1627 = vmatpush1.bf16.msra.mxu1 %v6144_v27 }
 0x3d1   :  { %1587 = vmatprep.subr.bf16.mxu0 %v6145_v29  ;;  %1628 = vmatprep.subr.bf16.mxu1 %v6146_v30 }
 0x3d4   :  { %1588 = vmatpush1.bf16.msra.mxu0 %v4535_v54  ;;  %1629 = vmatpush1.bf16.msra.mxu1 %v4538_v7 }
 0x3d5   :  { %1589 = vmatprep.subr.bf16.mxu0 %v4541_v60  ;;  %1630 = vmatprep.subr.bf16.mxu1 %v4544_v1 }
 0x3d8   :  { %1590 = vmatpush1.bf16.msra.mxu0 %v4547_v55  ;;  %1631 = vmatpush1.bf16.msra.mxu1 %v4550_v50 }
 0x3d9   :  { %1686 = vmatprep.subr.bf16.mxu0 %v4669_v31  ;;  %1727 = vmatprep.subr.bf16.mxu1 %v4672_v34 }
 0x3db   :  { %1608 = vmatmul.mubr.bf16.vlgmr.msra.gmra.mrb[40].mxu0 %v1467_v16  ;;  %1649 = vmatmul.mubr.bf16.vlgmr.msra.gmra.mrb[40].mxu1 %v1467_v16  ;;  %v4741_v16 = vld [vmem:[#allocation7 + $0xc4] ss:$16 sps:$4 sm:$0xff]  }
 0x3dc   :  { %1687 = vmatpush1.bf16.msra.mxu0 %v4675_v35  ;;  %1728 = vmatpush1.bf16.msra.mxu1 %v4678_v32  ;;  %6161 = vst [vmem:[#allocation46_spill] sm:$0xff] %v4741_v16 }
 0x3dd   :  { %1688 = vmatprep.subr.bf16.mxu0 %v4681_v36  ;;  %1729 = vmatprep.subr.bf16.mxu1 %v4684_v37 }
 0x3e0   :  { %1689 = vmatpush1.bf16.msra.mxu0 %v4687_v38  ;;  %1730 = vmatpush1.bf16.msra.mxu1 %v4690_v39 }
 0x3e1   :  { %1690 = vmatprep.subr.bf16.mxu0 %v4693_v40  ;;  %1731 = vmatprep.subr.bf16.mxu1 %v4696_v59 }
 0x3e4   :  { %1691 = vmatpush1.bf16.msra.mxu0 %v4699_v41  ;;  %1732 = vmatpush1.bf16.msra.mxu1 %v4702_v42 }
 0x3e5   :  { %1692 = vmatprep.subr.bf16.mxu0 %v4705_v43  ;;  %1733 = vmatprep.subr.bf16.mxu1 %v4708_v44 }
 0x3e8   :  { %1693 = vmatpush1.bf16.msra.mxu0 %v4711_v45  ;;  %1734 = vmatpush1.bf16.msra.mxu1 %v4714_v46 }
 0x3e9   :  { %1694 = vmatprep.subr.bf16.mxu0 %v4717_v47  ;;  %1735 = vmatprep.subr.bf16.mxu1 %v4720_v48 }
 0x3ec   :  { %1695 = vmatpush1.bf16.msra.mxu0 %v4723_v49  ;;  %1736 = vmatpush1.bf16.msra.mxu1 %v4726_v8  ;;  %v4744_v8 = vld [vmem:[#allocation7 + $0xcc] ss:$16 sps:$4 sm:$0xff]  }
 0x3ed   :  { %1696 = vmatprep.subr.bf16.mxu0 %v4729_v9  ;;  %1737 = vmatprep.subr.bf16.mxu1 %v4732_v11  ;;  %6162 = vst [vmem:[#allocation70_spill] sm:$0xff] %v4744_v8  ;;  %v4747_v9 = vld [vmem:[#allocation7 + $0xc0] ss:$16 sps:$4 sm:$0xff]   ;;  %v4750_v11 = vld [vmem:[#allocation7 + $0xc8] ss:$16 sps:$4 sm:$0xff]  }
 0x3ee   :  { %6163 = vst [vmem:[#allocation71_spill] sm:$0xff] %v4747_v9  ;;  %6164 = vst [vmem:[#allocation72_spill] sm:$0xff] %v4750_v11 }
 0x3f0   :  { %1697 = vmatpush1.bf16.msra.mxu0 %v4735_v12  ;;  %1738 = vmatpush1.bf16.msra.mxu1 %v4738_v13  ;;  %v4753_v12 = vld [vmem:[#allocation7 + $0xe4] ss:$16 sps:$4 sm:$0xff]   ;;  %v4756_v13 = vld [vmem:[#allocation7 + $0xec] ss:$16 sps:$4 sm:$0xff]  }
 0x3f1   :  { %1698 = vmatprep.subr.bf16.mxu0 %v4741_v16  ;;  %1739 = vmatprep.subr.bf16.mxu1 %v4744_v8  ;;  %6165 = vst [vmem:[#allocation73_spill] sm:$0xff] %v4753_v12  ;;  %6166 = vst [vmem:[#allocation74_spill] sm:$0xff] %v4756_v13  ;;  %v4759_v16 = vld [vmem:[#allocation7 + $0xe0] ss:$16 sps:$4 sm:$0xff]   ;;  %v4762_v8 = vld [vmem:[#allocation7 + $0xe8] ss:$16 sps:$4 sm:$0xff]  }
 0x3f2   :  { %6167 = vst [vmem:[#allocation47_spill] sm:$0xff] %v4759_v16  ;;  %6168 = vst [vmem:[#allocation48_spill] sm:$0xff] %v4762_v8 }
 0x3f4   :  { %1699 = vmatpush1.bf16.msra.mxu0 %v4747_v9  ;;  %1740 = vmatpush1.bf16.msra.mxu1 %v4750_v11  ;;  %v4765_v9 = vld [vmem:[#allocation7 + $0x104] ss:$16 sps:$4 sm:$0xff]   ;;  %v4768_v11 = vld [vmem:[#allocation7 + $0x10c] ss:$16 sps:$4 sm:$0xff]  }
 0x3f5   :  { %1700 = vmatprep.subr.bf16.mxu0 %v4753_v12  ;;  %1741 = vmatprep.subr.bf16.mxu1 %v4756_v13  ;;  %6169 = vst [vmem:[#allocation49_spill] sm:$0xff] %v4765_v9  ;;  %6170 = vst [vmem:[#allocation50_spill] sm:$0xff] %v4768_v11  ;;  %v4771_v12 = vld [vmem:[#allocation7 + $0x100] ss:$16 sps:$4 sm:$0xff]   ;;  %v4774_v13 = vld [vmem:[#allocation7 + $0x108] ss:$16 sps:$4 sm:$0xff]  }
 0x3f6   :  { %6171 = vst [vmem:[#allocation51_spill] sm:$0xff] %v4771_v12  ;;  %6172 = vst [vmem:[#allocation52_spill] sm:$0xff] %v4774_v13 }
 0x3f8   :  { %1701 = vmatpush1.bf16.msra.mxu0 %v4759_v16  ;;  %1742 = vmatpush1.bf16.msra.mxu1 %v4762_v8  ;;  %v4777_v16 = vld [vmem:[#allocation7 + $0x124] ss:$16 sps:$4 sm:$0xff]   ;;  %v4780_v8 = vld [vmem:[#allocation7 + $0x12c] ss:$16 sps:$4 sm:$0xff]  }
 0x3f9   :  { %1702 = vmatprep.subr.bf16.mxu0 %v4765_v9  ;;  %1743 = vmatprep.subr.bf16.mxu1 %v4768_v11  ;;  %6173 = vst [vmem:[#allocation53_spill] sm:$0xff] %v4777_v16  ;;  %6174 = vst [vmem:[#allocation54_spill] sm:$0xff] %v4780_v8  ;;  %v4783_v9 = vld [vmem:[#allocation7 + $0x120] ss:$16 sps:$4 sm:$0xff]   ;;  %v4786_v11 = vld [vmem:[#allocation7 + $0x128] ss:$16 sps:$4 sm:$0xff]  }
 0x3fa   :  { %6175 = vst [vmem:[#allocation55_spill] sm:$0xff] %v4783_v9  ;;  %6176 = vst [vmem:[#allocation56_spill] sm:$0xff] %v4786_v11 }
 0x3fc   :  { %1703 = vmatpush1.bf16.msra.mxu0 %v4771_v12  ;;  %1744 = vmatpush1.bf16.msra.mxu1 %v4774_v13  ;;  %v4789_v12 = vld [vmem:[#allocation7 + $0x144] ss:$16 sps:$4 sm:$0xff]   ;;  %v4792_v13 = vld [vmem:[#allocation7 + $0x14c] ss:$16 sps:$4 sm:$0xff]  }
 0x3fd   :  { %1704 = vmatprep.subr.bf16.mxu0 %v4777_v16  ;;  %1745 = vmatprep.subr.bf16.mxu1 %v4780_v8  ;;  %6177 = vst [vmem:[#allocation57_spill] sm:$0xff] %v4789_v12  ;;  %6178 = vst [vmem:[#allocation58_spill] sm:$0xff] %v4792_v13  ;;  %v4795_v16 = vld [vmem:[#allocation7 + $0x140] ss:$16 sps:$4 sm:$0xff]   ;;  %v4798_v8 = vld [vmem:[#allocation7 + $0x148] ss:$16 sps:$4 sm:$0xff]  }
 0x3fe   :  { %6179 = vst [vmem:[#allocation59_spill] sm:$0xff] %v4795_v16  ;;  %6180 = vst [vmem:[#allocation60_spill] sm:$0xff] %v4798_v8 }
 0x400   :  { %1705 = vmatpush1.bf16.msra.mxu0 %v4783_v9  ;;  %1746 = vmatpush1.bf16.msra.mxu1 %v4786_v11  ;;  %v4801_v9 = vld [vmem:[#allocation7 + $0x164] ss:$16 sps:$4 sm:$0xff]   ;;  %v4804_v11 = vld [vmem:[#allocation7 + $0x16c] ss:$16 sps:$4 sm:$0xff]  }
 0x401   :  { %1706 = vmatprep.subr.bf16.mxu0 %v4789_v12  ;;  %1747 = vmatprep.subr.bf16.mxu1 %v4792_v13  ;;  %6181 = vst [vmem:[#allocation61_spill] sm:$0xff] %v4801_v9  ;;  %6182 = vst [vmem:[#allocation62_spill] sm:$0xff] %v4804_v11  ;;  %v4807_v12 = vld [vmem:[#allocation7 + $0x160] ss:$16 sps:$4 sm:$0xff]   ;;  %v4810_v13 = vld [vmem:[#allocation7 + $0x168] ss:$16 sps:$4 sm:$0xff]  }
 0x402   :  { %6183 = vst [vmem:[#allocation63_spill] sm:$0xff] %v4807_v12  ;;  %6184 = vst [vmem:[#allocation64_spill] sm:$0xff] %v4810_v13 }
 0x404   :  { %1707 = vmatpush1.bf16.msra.mxu0 %v4795_v16  ;;  %1748 = vmatpush1.bf16.msra.mxu1 %v4798_v8  ;;  %v4813_v16 = vld [vmem:[#allocation7 + $0x184] ss:$16 sps:$4 sm:$0xff]   ;;  %v4816_v8 = vld [vmem:[#allocation7 + $0x18c] ss:$16 sps:$4 sm:$0xff]  }
 0x405   :  { %1708 = vmatprep.subr.bf16.mxu0 %v4801_v9  ;;  %1749 = vmatprep.subr.bf16.mxu1 %v4804_v11  ;;  %6185 = vst [vmem:[#allocation65_spill] sm:$0xff] %v4813_v16  ;;  %6186 = vst [vmem:[#allocation66_spill] sm:$0xff] %v4816_v8  ;;  %v4819_v9 = vld [vmem:[#allocation7 + $0x180] ss:$16 sps:$4 sm:$0xff]   ;;  %v4822_v11 = vld [vmem:[#allocation7 + $0x188] ss:$16 sps:$4 sm:$0xff]  }
 0x406   :  { %6187 = vst [vmem:[#allocation67_spill] sm:$0xff] %v4819_v9  ;;  %6188 = vst [vmem:[#allocation68_spill] sm:$0xff] %v4822_v11 }
 0x408   :  { %1709 = vmatpush1.bf16.msra.mxu0 %v4807_v12  ;;  %1750 = vmatpush1.bf16.msra.mxu1 %v4810_v13  ;;  %v4825_v12 = vld [vmem:[#allocation7 + $0x1a4] ss:$16 sps:$4 sm:$0xff]   ;;  %v4828_v13 = vld [vmem:[#allocation7 + $0x1ac] ss:$16 sps:$4 sm:$0xff]  }
 0x409   :  { %1710 = vmatprep.subr.bf16.mxu0 %v4813_v16  ;;  %1751 = vmatprep.subr.bf16.mxu1 %v4816_v8  ;;  %6189 = vst [vmem:[#allocation69_spill] sm:$0xff] %v4825_v12  ;;  %6190 = vst [vmem:[#allocation15_spill] sm:$0xff] %v4828_v13  ;;  %v4831_v16 = vld [vmem:[#allocation7 + $0x1a0] ss:$16 sps:$4 sm:$0xff]   ;;  %v4834_v8 = vld [vmem:[#allocation7 + $0x1a8] ss:$16 sps:$4 sm:$0xff]  }
 0x40a   :  { %6191 = vst [vmem:[#allocation16_spill] sm:$0xff] %v4831_v16  ;;  %6192 = vst [vmem:[#allocation75_spill] sm:$0xff] %v4834_v8 }
 0x40c   :  { %1711 = vmatpush1.bf16.msra.mxu0 %v4819_v9  ;;  %1752 = vmatpush1.bf16.msra.mxu1 %v4822_v11  ;;  %v4837_v9 = vld [vmem:[#allocation7 + $0x1c4] ss:$16 sps:$4 sm:$0xff]   ;;  %v4840_v11 = vld [vmem:[#allocation7 + $0x1cc] ss:$16 sps:$4 sm:$0xff]  }
 0x40d   :  { %1712 = vmatprep.subr.bf16.mxu0 %v4825_v12  ;;  %1753 = vmatprep.subr.bf16.mxu1 %v4828_v13  ;;  %6193 = vst [vmem:[#allocation76_spill] sm:$0xff] %v4837_v9  ;;  %6194 = vst [vmem:[#allocation77_spill] sm:$0xff] %v4840_v11  ;;  %v4843_v12 = vld [vmem:[#allocation7 + $0x1c0] ss:$16 sps:$4 sm:$0xff]   ;;  %v4846_v13 = vld [vmem:[#allocation7 + $0x1c8] ss:$16 sps:$4 sm:$0xff]  }
 0x40e   :  { %6195 = vst [vmem:[#allocation78_spill] sm:$0xff] %v4843_v12  ;;  %6196 = vst [vmem:[#allocation21_spill] sm:$0xff] %v4846_v13 }
 0x410   :  { %1713 = vmatpush1.bf16.msra.mxu0 %v4831_v16  ;;  %1754 = vmatpush1.bf16.msra.mxu1 %v4834_v8  ;;  %v4849_v16 = vld [vmem:[#allocation7 + $0x1e4] ss:$16 sps:$4 sm:$0xff]   ;;  %v4852_v8 = vld [vmem:[#allocation7 + $0x1ec] ss:$16 sps:$4 sm:$0xff]  }
 0x411   :  { %1714 = vmatprep.subr.bf16.mxu0 %v4837_v9  ;;  %1755 = vmatprep.subr.bf16.mxu1 %v4840_v11  ;;  %6197 = vst [vmem:[#allocation22_spill] sm:$0xff] %v4849_v16  ;;  %6198 = vst [vmem:[#allocation23_spill] sm:$0xff] %v4852_v8  ;;  %v4855_v9 = vld [vmem:[#allocation7 + $0x1e0] ss:$16 sps:$4 sm:$0xff]   ;;  %v4858_v11 = vld [vmem:[#allocation7 + $0x1e8] ss:$16 sps:$4 sm:$0xff]  }
 0x412   :  { %6199 = vst [vmem:[#allocation24_spill] sm:$0xff] %v4855_v9  ;;  %6200 = vst [vmem:[#allocation25_spill] sm:$0xff] %v4858_v11 }
 0x414   :  { %1715 = vmatpush1.bf16.msra.mxu0 %v4843_v12  ;;  %1756 = vmatpush1.bf16.msra.mxu1 %v4846_v13 }
 0x415   :  { %1716 = vmatprep.subr.bf16.mxu0 %v4849_v16  ;;  %1757 = vmatprep.subr.bf16.mxu1 %v4852_v8 }
 0x418   :  { %1717 = vmatpush1.bf16.msra.mxu0 %v4855_v9  ;;  %1758 = vmatpush1.bf16.msra.mxu1 %v4858_v11 }
 0x419   :  { %1793 = vmatprep.subr.bf16.mxu0 %v6126_v23  ;;  %1834 = vmatprep.subr.bf16.mxu1 %v6127_v24 }
 0x48e   :  { %v1502_v13 = vpop.f32.mrb[36].mxu0  ;;  %v1543_v12 = vpop.f32.mrb[36].mxu1 }
 0x48f   :  { %v1503_v16 = vadd.f32 %v1502_v13, %v6128_v28  ;;  %v1504_v49 = vpop.f32.mrb[37].mxu0  ;;  %v1545_v48 = vpop.f32.mrb[37].mxu1  ;;  %v1544_v23 = vadd.f32 %v1543_v12, %v6130_v0  ;;  %v6204_v0 = vld [vmem:[#allocation82_spill] sm:$0xff] }
 0x490   :  { %v1505_v8 = vadd.f32 %v1504_v49, %v6129_v33  ;;  %v1506_v47 = vpop.f32.mrb[38].mxu0  ;;  %v1547_v46 = vpop.f32.mrb[38].mxu1  ;;  %v1546_v24 = vadd.f32 %v1545_v48, %v6131_v57 }
 0x491   :  { %v2955_v45 = vmul.f32 -1.442695, %v1503_v16  ;;  %v1507_v9 = vpop.f32.mrb[39].mxu0  ;;  %v1548_v44 = vpop.f32.mrb[39].mxu1  ;;  %v2957_v11 = vmul.f32 -1.442695, %v1544_v23 }
 0x492   :  { %v2956_v43 = vmul.f32 -1.442695, %v1505_v8  ;;  %v6201_v23 = vld [vmem:[#allocation79_spill] sm:$0xff] }
 0x493   :  { %3280 = vpow2.f32 %v2955_v45 }
 0x494   :  { %3282 = vpow2.f32 %v2956_v43 }
 0x495   :  { %3284 = vtanh.f32 %v1546_v24  ;;  %v6202_v24 = vld [vmem:[#allocation80_spill] sm:$0xff] }
 0x496   :  { %3286 = vpow2.f32 %v2957_v11 }
 0x49d   :  { %v3281_v42 = vpop.eup %3280 }
 0x49e   :  { %v1559_v41 = vadd.f32 1.0, %v3281_v42  ;;  %v3283_v13 = vpop.eup %3282 }
 0x49f   :  { %v1560_v49 = vadd.f32 1.0, %v3283_v13  ;;  %v3285_v46 = vpop.eup %3284  ;;  %v6203_v13 = vld [vmem:[#allocation81_spill] sm:$0xff] }
 0x4a0   :  { %3288 = vrcp.f32 %v1559_v41  ;;  %v3287_v47 = vpop.eup %3286 }
 0x4a1   :  { %3290 = vrcp.f32 %v1560_v49  ;;  %v1561_v45 = vadd.f32 1.0, %v3287_v47 }
 0x4a3   :  { %3292 = vrcp.f32 %v1561_v45 }
 0x4aa   :  { %v3289_v9 = vpop.eup %3288 }
 0x4ab   :  { %v1570_v44 = vmul.f32 %v3289_v9, %v3285_v46  ;;  %v3291_v8 = vpop.eup %3290 }
 0x4ac   :  { %v1569_v43 = vmul.f32 %v3291_v8, %v4626_v15 }
 0x4ad   :  { %v3293_v8 = vpop.eup %3292 }
 0x4ae   :  { %v1609_v12 = vpop.f32.mrb[40].mxu0  ;;  %v1650_v16 = vpop.f32.mrb[40].mxu1  ;;  %v4868_v48 = vadd.f32 %v1570_v44, %v1569_v43 }
 0x4af   :  { %v1657_v42 = vadd.f32 %v1609_v12, %v6201_v23  ;;  %v1659_v57 = vadd.f32 %v1650_v16, %v6202_v24  ;;  %v1611_v11 = vpop.f32.mrb[41].mxu0  ;;  %v1652_v41 = vpop.f32.mrb[41].mxu1 }
 0x4b0   :  { %v1658_v49 = vadd.f32 %v1611_v11, %v6203_v13  ;;  %v1660_v33 = vadd.f32 %v1652_v41, %v6204_v0  ;;  %v1613_v46 = vpop.f32.mrb[42].mxu0  ;;  %v1654_v9 = vpop.f32.mrb[42].mxu1  ;;  %3294 = vtanh.f32 %v4868_v48 }
 0x4b1   :  { %v2958_v47 = vmul.f32 -1.442695, %v1657_v42  ;;  %v1614_v28 = vpop.f32.mrb[43].mxu0  ;;  %v1655_v15 = vpop.f32.mrb[43].mxu1  ;;  %v2960_v12 = vmul.f32 -1.442695, %v1659_v57 }
 0x4b2   :  { %v2959_v44 = vmul.f32 -1.442695, %v1658_v49 }
 0x4b3   :  { %3296 = vpow2.f32 %v2958_v47 }
 0x4b4   :  { %3298 = vpow2.f32 %v2959_v44 }
 0x4b5   :  { %3300 = vtanh.f32 %v1660_v33 }
 0x4b6   :  { %3302 = vpow2.f32 %v2960_v12  ;;  %v6238_v12 = vld [vmem:[#allocation60_spill] sm:$0xff] }
 0x4ba   :  { %v3295_v43 = vpop.eup %3294 }
 0x4bb   :  { %v1573_v16 = vmul.f32 %v3295_v43, %v3293_v8  ;;  %v6236_v8 = vld [vmem:[#allocation58_spill] sm:$0xff]  ;;  %v6237_v43 = vld [vmem:[#allocation59_spill] sm:$0xff] }
 0x4bd   :  { %v3297_v23 = vpop.eup %3296  ;;  %v1574_v24 = vpack.c.bf16 %v1573_v16, %v1573_v16  ;;  %v6239_v16 = vld [vmem:[#allocation61_spill] sm:$0xff] }
 0x4be   :  { %v1670_v45 = vadd.f32 1.0, %v3297_v23  ;;  %v3299_v11 = vpop.eup %3298  ;;  %v6240_v23 = vld [vmem:[#allocation62_spill] sm:$0xff] }
 0x4bf   :  { %v1671_v0 = vadd.f32 1.0, %v3299_v11  ;;  %1718 = vmatprep.mubr.bf16.mxu0 %v1574_v24  ;;  %1759 = vmatprep.mubr.bf16.mxu1 %v1574_v24  ;;  %v3301_v28 = vpop.eup %3300  ;;  %v6242_v24 = vld [vmem:[#allocation64_spill] sm:$0xff]  ;;  %v6243_v11 = vld [vmem:[#allocation65_spill] sm:$0xff] }
 0x4c0   :  { %3304 = vrcp.f32 %v1670_v45  ;;  %v3303_v42 = vpop.eup %3302  ;;  %v6241_v45 = vld [vmem:[#allocation63_spill] sm:$0xff] }
 0x4c1   :  { %3306 = vrcp.f32 %v1671_v0  ;;  %v1672_v46 = vadd.f32 1.0, %v3303_v42  ;;  %v6244_v0 = vld [vmem:[#allocation66_spill] sm:$0xff]  ;;  %v6246_v42 = vld [vmem:[#allocation68_spill] sm:$0xff] }
 0x4c3   :  { %3308 = vrcp.f32 %v1672_v46  ;;  %v6250_v46 = vld [vmem:[#allocation75_spill] sm:$0xff] }
 0x4ca   :  { %v3305_v41 = vpop.eup %3304 }
 0x4cb   :  { %v1681_v13 = vmul.f32 %v3305_v41, %v3301_v28  ;;  %v3307_v49 = vpop.eup %3306  ;;  %v6245_v28 = vld [vmem:[#allocation67_spill] sm:$0xff]  ;;  %v6247_v41 = vld [vmem:[#allocation69_spill] sm:$0xff] }
 0x4cc   :  { %v1680_v57 = vmul.f32 %v3307_v49, %v4634_v10  ;;  %v6224_v10 = vld [vmem:[#allocation74_spill] sm:$0xff]  ;;  %v6249_v49 = vld [vmem:[#allocation16_spill] sm:$0xff] }
 0x4cd   :  { %v3309_v33 = vpop.eup %3308 }
 0x4ce   :  { %v4876_v9 = vadd.f32 %v1681_v13, %v1680_v57  ;;  %v6248_v13 = vld [vmem:[#allocation15_spill] sm:$0xff]  ;;  %v6251_v57 = vld [vmem:[#allocation76_spill] sm:$0xff] }
 0x4d0   :  { %3310 = vtanh.f32 %v4876_v9 }
 0x4da   :  { %v3311_v47 = vpop.eup %3310 }
 0x4db   :  { %v1684_v15 = vmul.f32 %v3311_v47, %v3309_v33  ;;  %v6252_v33 = vld [vmem:[#allocation77_spill] sm:$0xff]  ;;  %v6253_v47 = vld [vmem:[#allocation78_spill] sm:$0xff] }
 0x4dd   :  { %v1685_v44 = vpack.c.bf16 %v1684_v15, %v1684_v15  ;;  %v6254_v15 = vld [vmem:[#allocation21_spill] sm:$0xff] }
 0x4df   :  { %1719 = vmatmul.mubr.bf16.vlgmr.msra.gmra.mrb[44].mxu0 %v1685_v44  ;;  %1760 = vmatmul.mubr.bf16.vlgmr.msra.gmra.mrb[44].mxu1 %v1685_v44 }
 0x4e0   :  { %1794 = vmatpush1.bf16.msra.mxu0 %v4461_v56  ;;  %1835 = vmatpush1.bf16.msra.mxu1 %v4464_v25  ;;  %v6205_v56 = vld [vmem:[#allocation32_spill] sm:$0xff]  ;;  %v6206_v25 = vld [vmem:[#allocation33_spill] sm:$0xff] }
 0x4e1   :  { %1795 = vmatprep.subr.bf16.mxu0 %v4467_v2  ;;  %1836 = vmatprep.subr.bf16.mxu1 %v4470_v62  ;;  %v6207_v2 = vld [vmem:[#allocation34_spill] sm:$0xff]  ;;  %v6208_v62 = vld [vmem:[#allocation35_spill] sm:$0xff] }
 0x4e2   :  { %1825 = vmatprep.mubr.bf16.mxu0 %v6021_v51  ;;  %1866 = vmatprep.mubr.bf16.mxu1 %v6021_v51 }
 0x4e4   :  { %1796 = vmatpush1.bf16.msra.mxu0 %v4475_v63  ;;  %1837 = vmatpush1.bf16.msra.mxu1 %v4478_v3  ;;  %v6209_v63 = vld [vmem:[#allocation36_spill] sm:$0xff]  ;;  %v6210_v3 = vld [vmem:[#allocation37_spill] sm:$0xff] }
 0x4e5   :  { %1797 = vmatprep.subr.bf16.mxu0 %v4481_v4  ;;  %1838 = vmatprep.subr.bf16.mxu1 %v4484_v6  ;;  %v6211_v4 = vld [vmem:[#allocation38_spill] sm:$0xff]  ;;  %v6212_v6 = vld [vmem:[#allocation39_spill] sm:$0xff] }
 0x4e8   :  { %1798 = vmatpush1.bf16.msra.mxu0 %v4487_v58  ;;  %1839 = vmatpush1.bf16.msra.mxu1 %v4490_v53  ;;  %v6213_v58 = vld [vmem:[#allocation40_spill] sm:$0xff]  ;;  %v6214_v53 = vld [vmem:[#allocation41_spill] sm:$0xff] }
 0x4e9   :  { %1799 = vmatprep.subr.bf16.mxu0 %v4493_v5  ;;  %1840 = vmatprep.subr.bf16.mxu1 %v4496_v14  ;;  %v6215_v5 = vld [vmem:[#allocation42_spill] sm:$0xff]  ;;  %v6216_v14 = vld [vmem:[#allocation43_spill] sm:$0xff] }
 0x4ec   :  { %1800 = vmatpush1.bf16.msra.mxu0 %v4499_v61  ;;  %1841 = vmatpush1.bf16.msra.mxu1 %v6136_v52  ;;  %v6217_v61 = vld [vmem:[#allocation44_spill] sm:$0xff]  ;;  %v6225_v52 = vld [vmem:[#allocation47_spill] sm:$0xff] }
 0x4ed   :  { %1801 = vmatprep.subr.bf16.mxu0 %v6137_v17  ;;  %1842 = vmatprep.subr.bf16.mxu1 %v6138_v18  ;;  %v6226_v17 = vld [vmem:[#allocation48_spill] sm:$0xff]  ;;  %v6227_v18 = vld [vmem:[#allocation49_spill] sm:$0xff] }
 0x4f0   :  { %1802 = vmatpush1.bf16.msra.mxu0 %v6139_v19  ;;  %1843 = vmatpush1.bf16.msra.mxu1 %v6140_v20  ;;  %v6228_v19 = vld [vmem:[#allocation50_spill] sm:$0xff]  ;;  %v6229_v20 = vld [vmem:[#allocation51_spill] sm:$0xff] }
 0x4f1   :  { %1803 = vmatprep.subr.bf16.mxu0 %v6141_v21  ;;  %1844 = vmatprep.subr.bf16.mxu1 %v6142_v22  ;;  %v6230_v21 = vld [vmem:[#allocation52_spill] sm:$0xff]  ;;  %v6231_v22 = vld [vmem:[#allocation53_spill] sm:$0xff] }
 0x4f4   :  { %1804 = vmatpush1.bf16.msra.mxu0 %v6143_v26  ;;  %1845 = vmatpush1.bf16.msra.mxu1 %v6144_v27  ;;  %v6232_v26 = vld [vmem:[#allocation54_spill] sm:$0xff]  ;;  %v6233_v27 = vld [vmem:[#allocation55_spill] sm:$0xff] }
 0x4f5   :  { %1805 = vmatprep.subr.bf16.mxu0 %v6145_v29  ;;  %1846 = vmatprep.subr.bf16.mxu1 %v6146_v30  ;;  %v6234_v29 = vld [vmem:[#allocation56_spill] sm:$0xff]  ;;  %v6235_v30 = vld [vmem:[#allocation57_spill] sm:$0xff] }
 0x4f8   :  { %1806 = vmatpush1.bf16.msra.mxu0 %v4535_v54  ;;  %1847 = vmatpush1.bf16.msra.mxu1 %v4538_v7  ;;  %v6218_v7 = vld [vmem:[#allocation45_spill] sm:$0xff] }
 0x4f9   :  { %1807 = vmatprep.subr.bf16.mxu0 %v4541_v60  ;;  %1848 = vmatprep.subr.bf16.mxu1 %v4544_v1  ;;  %v6219_v60 = vld [vmem:[#allocation46_spill] sm:$0xff]  ;;  %v6223_v54 = vld [vmem:[#allocation73_spill] sm:$0xff] }
 0x4fa   :  { %v6220_v1 = vld [vmem:[#allocation70_spill] sm:$0xff] }
 0x4fc   :  { %1808 = vmatpush1.bf16.msra.mxu0 %v4547_v55  ;;  %1849 = vmatpush1.bf16.msra.mxu1 %v4550_v50  ;;  %v6221_v55 = vld [vmem:[#allocation71_spill] sm:$0xff]  ;;  %v6222_v50 = vld [vmem:[#allocation72_spill] sm:$0xff] }
 0x4fd   :  { %1904 = vmatprep.subr.bf16.mxu0 %v4669_v31  ;;  %1945 = vmatprep.subr.bf16.mxu1 %v4672_v34 }
 0x4ff   :  { %1826 = vmatmul.mubr.bf16.vlgmr.msra.gmra.mrb[48].mxu0 %v1685_v44  ;;  %1867 = vmatmul.mubr.bf16.vlgmr.msra.gmra.mrb[48].mxu1 %v1685_v44  ;;  %v6255_v44 = vld [vmem:[#allocation22_spill] sm:$0xff] }
 0x500   :  { %1905 = vmatpush1.bf16.msra.mxu0 %v4675_v35  ;;  %1946 = vmatpush1.bf16.msra.mxu1 %v4678_v32 }
 0x501   :  { %1906 = vmatprep.subr.bf16.mxu0 %v4681_v36  ;;  %1947 = vmatprep.subr.bf16.mxu1 %v4684_v37 }
 0x504   :  { %1907 = vmatpush1.bf16.msra.mxu0 %v4687_v38  ;;  %1948 = vmatpush1.bf16.msra.mxu1 %v4690_v39 }
 0x505   :  { %1908 = vmatprep.subr.bf16.mxu0 %v4693_v40  ;;  %1949 = vmatprep.subr.bf16.mxu1 %v4696_v59 }
 0x508   :  { %1909 = vmatpush1.bf16.msra.mxu0 %v6205_v56  ;;  %1950 = vmatpush1.bf16.msra.mxu1 %v6206_v25 }
 0x509   :  { %1910 = vmatprep.subr.bf16.mxu0 %v6207_v2  ;;  %1951 = vmatprep.subr.bf16.mxu1 %v6208_v62 }
 0x50c   :  { %1911 = vmatpush1.bf16.msra.mxu0 %v6209_v63  ;;  %1952 = vmatpush1.bf16.msra.mxu1 %v6210_v3 }
 0x50d   :  { %1912 = vmatprep.subr.bf16.mxu0 %v6211_v4  ;;  %1953 = vmatprep.subr.bf16.mxu1 %v6212_v6 }
 0x510   :  { %1913 = vmatpush1.bf16.msra.mxu0 %v6213_v58  ;;  %1954 = vmatpush1.bf16.msra.mxu1 %v6214_v53 }
 0x511   :  { %1914 = vmatprep.subr.bf16.mxu0 %v6215_v5  ;;  %1955 = vmatprep.subr.bf16.mxu1 %v6216_v14 }
 0x514   :  { %1915 = vmatpush1.bf16.msra.mxu0 %v6217_v61  ;;  %1956 = vmatpush1.bf16.msra.mxu1 %v6218_v7 }
 0x515   :  { %1916 = vmatprep.subr.bf16.mxu0 %v6219_v60  ;;  %1957 = vmatprep.subr.bf16.mxu1 %v6220_v1 }
 0x518   :  { %1917 = vmatpush1.bf16.msra.mxu0 %v6221_v55  ;;  %1958 = vmatpush1.bf16.msra.mxu1 %v6222_v50 }
 0x519   :  { %1918 = vmatprep.subr.bf16.mxu0 %v6223_v54  ;;  %1959 = vmatprep.subr.bf16.mxu1 %v6224_v10 }
 0x51c   :  { %1919 = vmatpush1.bf16.msra.mxu0 %v6225_v52  ;;  %1960 = vmatpush1.bf16.msra.mxu1 %v6226_v17 }
 0x51d   :  { %1920 = vmatprep.subr.bf16.mxu0 %v6227_v18  ;;  %1961 = vmatprep.subr.bf16.mxu1 %v6228_v19 }
 0x520   :  { %1921 = vmatpush1.bf16.msra.mxu0 %v6229_v20  ;;  %1962 = vmatpush1.bf16.msra.mxu1 %v6230_v21 }
 0x521   :  { %1922 = vmatprep.subr.bf16.mxu0 %v6231_v22  ;;  %1963 = vmatprep.subr.bf16.mxu1 %v6232_v26 }
 0x524   :  { %1923 = vmatpush1.bf16.msra.mxu0 %v6233_v27  ;;  %1964 = vmatpush1.bf16.msra.mxu1 %v6234_v29 }
 0x525   :  { %1924 = vmatprep.subr.bf16.mxu0 %v6235_v30  ;;  %1965 = vmatprep.subr.bf16.mxu1 %v6236_v8 }
 0x528   :  { %1925 = vmatpush1.bf16.msra.mxu0 %v6237_v43  ;;  %1966 = vmatpush1.bf16.msra.mxu1 %v6238_v12  ;;  %v6264_v12 = vld [vmem:[#allocation20_spill] sm:$0xff] }
 0x529   :  { %1926 = vmatprep.subr.bf16.mxu0 %v6239_v16  ;;  %1967 = vmatprep.subr.bf16.mxu1 %v6240_v23 }
 0x52c   :  { %1927 = vmatpush1.bf16.msra.mxu0 %v6241_v45  ;;  %1968 = vmatpush1.bf16.msra.mxu1 %v6242_v24 }
 0x52d   :  { %1928 = vmatprep.subr.bf16.mxu0 %v6243_v11  ;;  %1969 = vmatprep.subr.bf16.mxu1 %v6244_v0  ;;  %v6262_v0 = vld [vmem:[#allocation18_spill] sm:$0xff] }
 0x530   :  { %1929 = vmatpush1.bf16.msra.mxu0 %v6245_v28  ;;  %1970 = vmatpush1.bf16.msra.mxu1 %v6246_v42  ;;  %v6256_v28 = vld [vmem:[#allocation23_spill] sm:$0xff]  ;;  %v6257_v42 = vld [vmem:[#allocation24_spill] sm:$0xff] }
 0x531   :  { %1930 = vmatprep.subr.bf16.mxu0 %v6247_v41  ;;  %1971 = vmatprep.subr.bf16.mxu1 %v6248_v13  ;;  %v6258_v41 = vld [vmem:[#allocation25_spill] sm:$0xff]  ;;  %v4975_v13 = vld [vmem:[#allocation5 + $0x4] ss:$16 sps:$4 sm:$0xff]  }
 0x532   :  { %6259 = vst [vmem:[#allocation26_spill] sm:$0xff] %v4975_v13 }
 0x534   :  { %1931 = vmatpush1.bf16.msra.mxu0 %v6249_v49  ;;  %1972 = vmatpush1.bf16.msra.mxu1 %v6250_v46  ;;  %v4978_v46 = vld [vmem:[#allocation5 + $0xc] ss:$16 sps:$4 sm:$0xff]  }
 0x535   :  { %1932 = vmatprep.subr.bf16.mxu0 %v6251_v57  ;;  %1973 = vmatprep.subr.bf16.mxu1 %v6252_v33  ;;  %6260 = vst [vmem:[#allocation27_spill] sm:$0xff] %v4978_v46  ;;  %v6261_v57 = vld [vmem:[#allocation17_spill] sm:$0xff] }
 0x538   :  { %1933 = vmatpush1.bf16.msra.mxu0 %v6253_v47  ;;  %1974 = vmatpush1.bf16.msra.mxu1 %v6254_v15 }
 0x539   :  { %1934 = vmatprep.subr.bf16.mxu0 %v6255_v44  ;;  %1975 = vmatprep.subr.bf16.mxu1 %v6256_v28 }
 0x53c   :  { %1935 = vmatpush1.bf16.msra.mxu0 %v6257_v42  ;;  %1976 = vmatpush1.bf16.msra.mxu1 %v6258_v41 }
 0x53d   :  { %2011 = vmatprep.subr.bf16.mxu0 %v4975_v13  ;;  %2052 = vmatprep.subr.bf16.mxu1 %v4978_v46  ;;  %v6263_v13 = vld [vmem:[#allocation19_spill] sm:$0xff] }
 0x5b2   :  { %v1720_v33 = vpop.f32.mrb[44].mxu0  ;;  %v1761_v47 = vpop.f32.mrb[44].mxu1 }
 0x5b3   :  { %v1721_v15 = vadd.f32 %v1720_v33, %v6261_v57  ;;  %v1722_v49 = vpop.f32.mrb[45].mxu0  ;;  %v1763_v44 = vpop.f32.mrb[45].mxu1  ;;  %v1762_v16 = vadd.f32 %v1761_v47, %v6263_v13  ;;  %v6268_v13 = vld [vmem:[#allocation86_spill] sm:$0xff] }
 0x5b4   :  { %v1723_v28 = vadd.f32 %v1722_v49, %v6262_v0  ;;  %v1724_v11 = vpop.f32.mrb[46].mxu0  ;;  %v1765_v42 = vpop.f32.mrb[46].mxu1  ;;  %v1764_v46 = vadd.f32 %v1763_v44, %v6264_v12 }
 0x5b5   :  { %v2961_v24 = vmul.f32 -1.442695, %v1721_v15  ;;  %v1725_v41 = vpop.f32.mrb[47].mxu0  ;;  %v1766_v45 = vpop.f32.mrb[47].mxu1  ;;  %v2963_v43 = vmul.f32 -1.442695, %v1762_v16 }
 0x5b6   :  { %v2962_v23 = vmul.f32 -1.442695, %v1723_v28  ;;  %v6265_v16 = vld [vmem:[#allocation83_spill] sm:$0xff] }
 0x5b7   :  { %3312 = vpow2.f32 %v2961_v24 }
 0x5b8   :  { %3314 = vpow2.f32 %v2962_v23 }
 0x5b9   :  { %3316 = vtanh.f32 %v1764_v46  ;;  %v6266_v46 = vld [vmem:[#allocation84_spill] sm:$0xff] }
 0x5ba   :  { %3318 = vpow2.f32 %v2963_v43 }
 0x5c1   :  { %v3313_v8 = vpop.eup %3312 }
 0x5c2   :  { %v1777_v30 = vadd.f32 1.0, %v3313_v8  ;;  %v3315_v33 = vpop.eup %3314 }
 0x5c3   :  { %v1778_v49 = vadd.f32 1.0, %v3315_v33  ;;  %v3317_v11 = vpop.eup %3316  ;;  %v6267_v33 = vld [vmem:[#allocation85_spill] sm:$0xff] }
 0x5c4   :  { %3320 = vrcp.f32 %v1777_v30  ;;  %v3319_v42 = vpop.eup %3318 }
 0x5c5   :  { %3322 = vrcp.f32 %v1778_v49  ;;  %v1779_v24 = vadd.f32 1.0, %v3319_v42 }
 0x5c7   :  { %3324 = vrcp.f32 %v1779_v24 }
 0x5ce   :  { %v3321_v41 = vpop.eup %3320 }
 0x5cf   :  { %v1788_v45 = vmul.f32 %v3321_v41, %v3317_v11  ;;  %v3323_v28 = vpop.eup %3322 }
 0x5d0   :  { %v1787_v23 = vmul.f32 %v3323_v28, %v4868_v48 }
 0x5d1   :  { %v3325_v28 = vpop.eup %3324 }
 0x5d2   :  { %v1827_v47 = vpop.f32.mrb[48].mxu0  ;;  %v1868_v15 = vpop.f32.mrb[48].mxu1  ;;  %v4986_v44 = vadd.f32 %v1788_v45, %v1787_v23 }
 0x5d3   :  { %v1875_v8 = vadd.f32 %v1827_v47, %v6265_v16  ;;  %v1877_v12 = vadd.f32 %v1868_v15, %v6266_v46  ;;  %v1829_v43 = vpop.f32.mrb[49].mxu0  ;;  %v1870_v30 = vpop.f32.mrb[49].mxu1 }
 0x5d4   :  { %v1876_v49 = vadd.f32 %v1829_v43, %v6267_v33  ;;  %v1878_v0 = vadd.f32 %v1870_v30, %v6268_v13  ;;  %v1831_v11 = vpop.f32.mrb[50].mxu0  ;;  %v1872_v41 = vpop.f32.mrb[50].mxu1  ;;  %3326 = vtanh.f32 %v4986_v44 }
 0x5d5   :  { %v2964_v42 = vmul.f32 -1.442695, %v1875_v8  ;;  %v1832_v57 = vpop.f32.mrb[51].mxu0  ;;  %v1873_v48 = vpop.f32.mrb[51].mxu1  ;;  %v2966_v47 = vmul.f32 -1.442695, %v1877_v12 }
 0x5d6   :  { %v2965_v45 = vmul.f32 -1.442695, %v1876_v49 }
 0x5d7   :  { %3328 = vpow2.f32 %v2964_v42 }
 0x5d8   :  { %3330 = vpow2.f32 %v2965_v45 }
 0x5d9   :  { %3332 = vtanh.f32 %v1878_v0 }
 0x5da   :  { %3334 = vpow2.f32 %v2966_v47  ;;  %v5010_v47 = vld [vmem:[#allocation5 + $0x2c] ss:$16 sps:$4 sm:$0xff]  }
 0x5de   :  { %v3327_v23 = vpop.eup %3326 }
 0x5df   :  { %v1791_v15 = vmul.f32 %v3327_v23, %v3325_v28  ;;  %v5001_v28 = vld [vmem:[#allocation5] ss:$16 sps:$4 sm:$0xff]   ;;  %v5004_v23 = vld [vmem:[#allocation5 + $0x8] ss:$16 sps:$4 sm:$0xff]  }
 0x5e1   :  { %v3329_v16 = vpop.eup %3328  ;;  %v1792_v46 = vpack.c.bf16 %v1791_v15, %v1791_v15  ;;  %v5015_v15 = vld [vmem:[#allocation5 + $0x20] ss:$16 sps:$4 sm:$0xff]  }
 0x5e2   :  { %v1888_v24 = vadd.f32 1.0, %v3329_v16  ;;  %v3331_v43 = vpop.eup %3330  ;;  %v5018_v16 = vld [vmem:[#allocation5 + $0x28] ss:$16 sps:$4 sm:$0xff]  }
 0x5e3   :  { %v1889_v13 = vadd.f32 1.0, %v3331_v43  ;;  %1936 = vmatprep.mubr.bf16.mxu0 %v1792_v46  ;;  %1977 = vmatprep.mubr.bf16.mxu1 %v1792_v46  ;;  %v3333_v57 = vpop.eup %3332  ;;  %v5024_v46 = vld [vmem:[#allocation5 + $0x4c] ss:$16 sps:$4 sm:$0xff]   ;;  %v5027_v43 = vld [vmem:[#allocation5 + $0x40] ss:$16 sps:$4 sm:$0xff]  }
 0x5e4   :  { %3336 = vrcp.f32 %v1888_v24  ;;  %v3335_v8 = vpop.eup %3334  ;;  %v5021_v24 = vld [vmem:[#allocation5 + $0x44] ss:$16 sps:$4 sm:$0xff]  }
 0x5e5   :  { %3338 = vrcp.f32 %v1889_v13  ;;  %v1890_v11 = vadd.f32 1.0, %v3335_v8  ;;  %v5030_v13 = vld [vmem:[#allocation5 + $0x48] ss:$16 sps:$4 sm:$0xff]   ;;  %v5036_v8 = vld [vmem:[#allocation5 + $0x6c] ss:$16 sps:$4 sm:$0xff]  }
 0x5e7   :  { %3340 = vrcp.f32 %v1890_v11  ;;  %v5048_v11 = vld [vmem:[#allocation5 + $0x8c] ss:$16 sps:$4 sm:$0xff]  }
 0x5e8   :  { %6270 = vst [vmem:[#allocation29_spill] sm:$0xff] %v5048_v11 }
 0x5ee   :  { %v3337_v30 = vpop.eup %3336 }
 0x5ef   :  { %v1899_v33 = vmul.f32 %v3337_v30, %v3333_v57  ;;  %v3339_v49 = vpop.eup %3338  ;;  %v5033_v57 = vld [vmem:[#allocation5 + $0x64] ss:$16 sps:$4 sm:$0xff]   ;;  %v5039_v30 = vld [vmem:[#allocation5 + $0x60] ss:$16 sps:$4 sm:$0xff]  }
 0x5f0   :  { %v1898_v12 = vmul.f32 %v3339_v49, %v4876_v9  ;;  %v5007_v9 = vld [vmem:[#allocation5 + $0x24] ss:$16 sps:$4 sm:$0xff]  }
 0x5f1   :  { %v3341_v0 = vpop.eup %3340  ;;  %v5045_v49 = vld [vmem:[#allocation5 + $0x84] ss:$16 sps:$4 sm:$0xff]  }
 0x5f2   :  { %v4994_v41 = vadd.f32 %v1899_v33, %v1898_v12  ;;  %v5042_v33 = vld [vmem:[#allocation5 + $0x68] ss:$16 sps:$4 sm:$0xff]   ;;  %6269 = vst [vmem:[#allocation28_spill] sm:$0xff] %v5045_v49  ;;  %v5051_v12 = vld [vmem:[#allocation5 + $0x80] ss:$16 sps:$4 sm:$0xff]  }
 0x5f3   :  { %6271 = vst [vmem:[#allocation30_spill] sm:$0xff] %v5051_v12 }
 0x5f4   :  { %3342 = vtanh.f32 %v4994_v41 }
 0x5fe   :  { %v3343_v42 = vpop.eup %3342 }
 0x5ff   :  { %v1902_v48 = vmul.f32 %v3343_v42, %v3341_v0  ;;  %v5054_v0 = vld [vmem:[#allocation5 + $0x88] ss:$16 sps:$4 sm:$0xff]   ;;  %v5057_v42 = vld [vmem:[#allocation5 + $0xa4] ss:$16 sps:$4 sm:$0xff]  }
 0x600   :  { %6272 = vst [vmem:[#allocation31_spill] sm:$0xff] %v5054_v0  ;;  %6273 = vst [vmem:[#allocation79_spill] sm:$0xff] %v5057_v42 }
 0x601   :  { %v4997_v45 = vpack.c.bf16 %v1902_v48, %v1902_v48  ;;  %v5060_v48 = vld [vmem:[#allocation5 + $0xac] ss:$16 sps:$4 sm:$0xff]  }
 0x602   :  { %6274 = vst [vmem:[#allocation80_spill] sm:$0xff] %v5060_v48 }
 0x603   :  { %1937 = vmatmul.mubr.bf16.vlgmr.msra.gmra.mrb[52].mxu0 %v4997_v45  ;;  %1978 = vmatmul.mubr.bf16.vlgmr.msra.gmra.mrb[52].mxu1 %v4997_v45 }
 0x604   :  { %2012 = vmatpush1.bf16.msra.mxu0 %v5001_v28  ;;  %2053 = vmatpush1.bf16.msra.mxu1 %v5004_v23 }
 0x605   :  { %2013 = vmatprep.subr.bf16.mxu0 %v5007_v9  ;;  %2054 = vmatprep.subr.bf16.mxu1 %v5010_v47 }
 0x606   :  { %2043 = vmatprep.mubr.bf16.mxu0 %v6021_v51  ;;  %2084 = vmatprep.mubr.bf16.mxu1 %v6021_v51 }
 0x608   :  { %2014 = vmatpush1.bf16.msra.mxu0 %v5015_v15  ;;  %2055 = vmatpush1.bf16.msra.mxu1 %v5018_v16 }
 0x609   :  { %2015 = vmatprep.subr.bf16.mxu0 %v5021_v24  ;;  %2056 = vmatprep.subr.bf16.mxu1 %v5024_v46 }
 0x60c   :  { %2016 = vmatpush1.bf16.msra.mxu0 %v5027_v43  ;;  %2057 = vmatpush1.bf16.msra.mxu1 %v5030_v13 }
 0x60d   :  { %2017 = vmatprep.subr.bf16.mxu0 %v5033_v57  ;;  %2058 = vmatprep.subr.bf16.mxu1 %v5036_v8 }
 0x610   :  { %2018 = vmatpush1.bf16.msra.mxu0 %v5039_v30  ;;  %2059 = vmatpush1.bf16.msra.mxu1 %v5042_v33 }
 0x611   :  { %2019 = vmatprep.subr.bf16.mxu0 %v5045_v49  ;;  %2060 = vmatprep.subr.bf16.mxu1 %v5048_v11  ;;  %v5063_v49 = vld [vmem:[#allocation5 + $0xa0] ss:$16 sps:$4 sm:$0xff]   ;;  %v5066_v11 = vld [vmem:[#allocation5 + $0xa8] ss:$16 sps:$4 sm:$0xff]  }
 0x612   :  { %6275 = vst [vmem:[#allocation81_spill] sm:$0xff] %v5063_v49  ;;  %6276 = vst [vmem:[#allocation82_spill] sm:$0xff] %v5066_v11 }
 0x614   :  { %2020 = vmatpush1.bf16.msra.mxu0 %v5051_v12  ;;  %2061 = vmatpush1.bf16.msra.mxu1 %v5054_v0  ;;  %v5069_v12 = vld [vmem:[#allocation5 + $0xc4] ss:$16 sps:$4 sm:$0xff]   ;;  %v5072_v0 = vld [vmem:[#allocation5 + $0xcc] ss:$16 sps:$4 sm:$0xff]  }
 0x615   :  { %2021 = vmatprep.subr.bf16.mxu0 %v5057_v42  ;;  %2062 = vmatprep.subr.bf16.mxu1 %v5060_v48  ;;  %6277 = vst [vmem:[#allocation32_spill] sm:$0xff] %v5069_v12  ;;  %6278 = vst [vmem:[#allocation33_spill] sm:$0xff] %v5072_v0  ;;  %v5075_v42 = vld [vmem:[#allocation5 + $0xc0] ss:$16 sps:$4 sm:$0xff]   ;;  %v5078_v48 = vld [vmem:[#allocation5 + $0xc8] ss:$16 sps:$4 sm:$0xff]  }
 0x618   :  { %2022 = vmatpush1.bf16.msra.mxu0 %v5063_v49  ;;  %2063 = vmatpush1.bf16.msra.mxu1 %v5066_v11  ;;  %v5081_v49 = vld [vmem:[#allocation5 + $0xe4] ss:$16 sps:$4 sm:$0xff]   ;;  %v5084_v11 = vld [vmem:[#allocation5 + $0xec] ss:$16 sps:$4 sm:$0xff]  }
 0x619   :  { %2023 = vmatprep.subr.bf16.mxu0 %v5069_v12  ;;  %2064 = vmatprep.subr.bf16.mxu1 %v5072_v0  ;;  %v5087_v12 = vld [vmem:[#allocation5 + $0xe0] ss:$16 sps:$4 sm:$0xff]   ;;  %v5090_v0 = vld [vmem:[#allocation5 + $0xe8] ss:$16 sps:$4 sm:$0xff]  }
 0x61c   :  { %2024 = vmatpush1.bf16.msra.mxu0 %v5075_v42  ;;  %2065 = vmatpush1.bf16.msra.mxu1 %v5078_v48 }
 0x61d   :  { %2025 = vmatprep.subr.bf16.mxu0 %v5081_v49  ;;  %2066 = vmatprep.subr.bf16.mxu1 %v5084_v11 }
 0x620   :  { %2026 = vmatpush1.bf16.msra.mxu0 %v5087_v12  ;;  %2067 = vmatpush1.bf16.msra.mxu1 %v5090_v0 }
 0x621   :  { %2122 = vmatprep.subr.bf16.mxu0 %v4669_v31  ;;  %2163 = vmatprep.subr.bf16.mxu1 %v4672_v34  ;;  %v6279_v31 = vld [vmem:[#allocation57_spill] sm:$0xff]  ;;  %v6280_v34 = vld [vmem:[#allocation58_spill] sm:$0xff] }
 0x623   :  { %2044 = vmatmul.mubr.bf16.vlgmr.msra.gmra.mrb[56].mxu0 %v4997_v45  ;;  %2085 = vmatmul.mubr.bf16.vlgmr.msra.gmra.mrb[56].mxu1 %v4997_v45  ;;  %v6307_v45 = vld [vmem:[#allocation19_spill] sm:$0xff] }
 0x624   :  { %2123 = vmatpush1.bf16.msra.mxu0 %v4675_v35  ;;  %2164 = vmatpush1.bf16.msra.mxu1 %v4678_v32  ;;  %v6281_v35 = vld [vmem:[#allocation59_spill] sm:$0xff]  ;;  %v6282_v32 = vld [vmem:[#allocation60_spill] sm:$0xff] }
 0x625   :  { %2124 = vmatprep.subr.bf16.mxu0 %v4681_v36  ;;  %2165 = vmatprep.subr.bf16.mxu1 %v4684_v37  ;;  %v6283_v36 = vld [vmem:[#allocation61_spill] sm:$0xff]  ;;  %v6284_v37 = vld [vmem:[#allocation62_spill] sm:$0xff] }
 0x628   :  { %2125 = vmatpush1.bf16.msra.mxu0 %v4687_v38  ;;  %2166 = vmatpush1.bf16.msra.mxu1 %v4690_v39  ;;  %v6285_v38 = vld [vmem:[#allocation63_spill] sm:$0xff]  ;;  %v6286_v39 = vld [vmem:[#allocation64_spill] sm:$0xff] }
 0x629   :  { %2126 = vmatprep.subr.bf16.mxu0 %v4693_v40  ;;  %2167 = vmatprep.subr.bf16.mxu1 %v4696_v59  ;;  %v6287_v40 = vld [vmem:[#allocation65_spill] sm:$0xff]  ;;  %v6288_v59 = vld [vmem:[#allocation66_spill] sm:$0xff] }
 0x62c   :  { %2127 = vmatpush1.bf16.msra.mxu0 %v6205_v56  ;;  %2168 = vmatpush1.bf16.msra.mxu1 %v6206_v25  ;;  %v6289_v56 = vld [vmem:[#allocation67_spill] sm:$0xff]  ;;  %v6290_v25 = vld [vmem:[#allocation68_spill] sm:$0xff] }
 0x62d   :  { %2128 = vmatprep.subr.bf16.mxu0 %v6207_v2  ;;  %2169 = vmatprep.subr.bf16.mxu1 %v6208_v62  ;;  %v6291_v2 = vld [vmem:[#allocation69_spill] sm:$0xff]  ;;  %v6292_v62 = vld [vmem:[#allocation15_spill] sm:$0xff] }
 0x630   :  { %2129 = vmatpush1.bf16.msra.mxu0 %v6209_v63  ;;  %2170 = vmatpush1.bf16.msra.mxu1 %v6210_v3  ;;  %v6293_v63 = vld [vmem:[#allocation16_spill] sm:$0xff]  ;;  %v6294_v3 = vld [vmem:[#allocation75_spill] sm:$0xff] }
 0x631   :  { %2130 = vmatprep.subr.bf16.mxu0 %v6211_v4  ;;  %2171 = vmatprep.subr.bf16.mxu1 %v6212_v6  ;;  %v6295_v4 = vld [vmem:[#allocation76_spill] sm:$0xff]  ;;  %v6296_v6 = vld [vmem:[#allocation77_spill] sm:$0xff] }
 0x634   :  { %2131 = vmatpush1.bf16.msra.mxu0 %v6213_v58  ;;  %2172 = vmatpush1.bf16.msra.mxu1 %v6214_v53  ;;  %v6297_v58 = vld [vmem:[#allocation78_spill] sm:$0xff]  ;;  %v6298_v53 = vld [vmem:[#allocation21_spill] sm:$0xff] }
 0x635   :  { %2132 = vmatprep.subr.bf16.mxu0 %v6215_v5  ;;  %2173 = vmatprep.subr.bf16.mxu1 %v6216_v14  ;;  %v6299_v5 = vld [vmem:[#allocation22_spill] sm:$0xff]  ;;  %v6300_v14 = vld [vmem:[#allocation23_spill] sm:$0xff] }
 0x638   :  { %2133 = vmatpush1.bf16.msra.mxu0 %v6217_v61  ;;  %2174 = vmatpush1.bf16.msra.mxu1 %v6218_v7  ;;  %v6301_v61 = vld [vmem:[#allocation24_spill] sm:$0xff]  ;;  %v6302_v7 = vld [vmem:[#allocation25_spill] sm:$0xff] }
 0x639   :  { %2134 = vmatprep.subr.bf16.mxu0 %v6219_v60  ;;  %2175 = vmatprep.subr.bf16.mxu1 %v6220_v1  ;;  %v6303_v60 = vld [vmem:[#allocation26_spill] sm:$0xff]  ;;  %v6304_v1 = vld [vmem:[#allocation27_spill] sm:$0xff] }
 0x63c   :  { %2135 = vmatpush1.bf16.msra.mxu0 %v6221_v55  ;;  %2176 = vmatpush1.bf16.msra.mxu1 %v6222_v50 }
 0x63d   :  { %2136 = vmatprep.subr.bf16.mxu0 %v6223_v54  ;;  %2177 = vmatprep.subr.bf16.mxu1 %v6224_v10  ;;  %v6305_v54 = vld [vmem:[#allocation17_spill] sm:$0xff] }
 0x640   :  { %2137 = vmatpush1.bf16.msra.mxu0 %v6225_v52  ;;  %2178 = vmatpush1.bf16.msra.mxu1 %v6226_v17 }
 0x641   :  { %2138 = vmatprep.subr.bf16.mxu0 %v6227_v18  ;;  %2179 = vmatprep.subr.bf16.mxu1 %v6228_v19  ;;  %v6306_v18 = vld [vmem:[#allocation18_spill] sm:$0xff] }
 0x644   :  { %2139 = vmatpush1.bf16.msra.mxu0 %v6229_v20  ;;  %2180 = vmatpush1.bf16.msra.mxu1 %v6230_v21 }
 0x645   :  { %2140 = vmatprep.subr.bf16.mxu0 %v6231_v22  ;;  %2181 = vmatprep.subr.bf16.mxu1 %v6232_v26 }
 0x648   :  { %2141 = vmatpush1.bf16.msra.mxu0 %v6233_v27  ;;  %2182 = vmatpush1.bf16.msra.mxu1 %v6234_v29 }
 0x649   :  { %2142 = vmatprep.subr.bf16.mxu0 %v6279_v31  ;;  %2183 = vmatprep.subr.bf16.mxu1 %v6280_v34  ;;  %v6308_v34 = vld [vmem:[#allocation20_spill] sm:$0xff] }
 0x64c   :  { %2143 = vmatpush1.bf16.msra.mxu0 %v6281_v35  ;;  %2184 = vmatpush1.bf16.msra.mxu1 %v6282_v32 }
 0x64d   :  { %2144 = vmatprep.subr.bf16.mxu0 %v6283_v36  ;;  %2185 = vmatprep.subr.bf16.mxu1 %v6284_v37 }
 0x650   :  { %2145 = vmatpush1.bf16.msra.mxu0 %v6285_v38  ;;  %2186 = vmatpush1.bf16.msra.mxu1 %v6286_v39 }
 0x651   :  { %2146 = vmatprep.subr.bf16.mxu0 %v6287_v40  ;;  %2187 = vmatprep.subr.bf16.mxu1 %v6288_v59 }
 0x654   :  { %2147 = vmatpush1.bf16.msra.mxu0 %v6289_v56  ;;  %2188 = vmatpush1.bf16.msra.mxu1 %v6290_v25 }
 0x655   :  { %2148 = vmatprep.subr.bf16.mxu0 %v6291_v2  ;;  %2189 = vmatprep.subr.bf16.mxu1 %v6292_v62 }
 0x658   :  { %2149 = vmatpush1.bf16.msra.mxu0 %v6293_v63  ;;  %2190 = vmatpush1.bf16.msra.mxu1 %v6294_v3 }
 0x659   :  { %2150 = vmatprep.subr.bf16.mxu0 %v6295_v4  ;;  %2191 = vmatprep.subr.bf16.mxu1 %v6296_v6 }
 0x65c   :  { %2151 = vmatpush1.bf16.msra.mxu0 %v6297_v58  ;;  %2192 = vmatpush1.bf16.msra.mxu1 %v6298_v53  ;;  %v6309_v58 = vld [vmem:[#allocation87_spill] sm:$0xff] }
 0x65d   :  { %2152 = vmatprep.subr.bf16.mxu0 %v6299_v5  ;;  %2193 = vmatprep.subr.bf16.mxu1 %v6300_v14  ;;  %v6310_v5 = vld [vmem:[#allocation88_spill] sm:$0xff] }
 0x660   :  { %2153 = vmatpush1.bf16.msra.mxu0 %v6301_v61  ;;  %2194 = vmatpush1.bf16.msra.mxu1 %v6302_v7 }
 0x661   :  { %2229 = vmatprep.subr.bf16.mxu0 %v6303_v60  ;;  %2270 = vmatprep.subr.bf16.mxu1 %v6304_v1 }
 0x6d6   :  { %v1938_v55 = vpop.f32.mrb[52].mxu0  ;;  %v1979_v50 = vpop.f32.mrb[52].mxu1 }
 0x6d7   :  { %v1939_v10 = vadd.f32 %v1938_v55, %v6305_v54  ;;  %v1940_v52 = vpop.f32.mrb[53].mxu0  ;;  %v1981_v17 = vpop.f32.mrb[53].mxu1  ;;  %v1980_v31 = vadd.f32 %v1979_v50, %v6307_v45  ;;  %v6311_v55 = vld [vmem:[#allocation89_spill] sm:$0xff] }
 0x6d8   :  { %v1941_v19 = vadd.f32 %v1940_v52, %v6306_v18  ;;  %v1942_v20 = vpop.f32.mrb[54].mxu0  ;;  %v1983_v21 = vpop.f32.mrb[54].mxu1  ;;  %v1982_v35 = vadd.f32 %v1981_v17, %v6308_v34 }
 0x6d9   :  { %v2967_v22 = vmul.f32 -1.442695, %v1939_v10  ;;  %v1943_v26 = vpop.f32.mrb[55].mxu0  ;;  %v1984_v27 = vpop.f32.mrb[55].mxu1  ;;  %v2969_v32 = vmul.f32 -1.442695, %v1980_v31 }
 0x6da   :  { %v2968_v29 = vmul.f32 -1.442695, %v1941_v19  ;;  %v6312_v10 = vld [vmem:[#allocation90_spill] sm:$0xff] }
 0x6db   :  { %3344 = vpow2.f32 %v2967_v22 }
 0x6dc   :  { %3346 = vpow2.f32 %v2968_v29 }
 0x6dd   :  { %3348 = vtanh.f32 %v1982_v35 }
 0x6de   :  { %3350 = vpow2.f32 %v2969_v32 }
 0x6e5   :  { %v3345_v36 = vpop.eup %3344 }
 0x6e6   :  { %v1995_v37 = vadd.f32 1.0, %v3345_v36  ;;  %v3347_v38 = vpop.eup %3346 }
 0x6e7   :  { %v1996_v39 = vadd.f32 1.0, %v3347_v38  ;;  %v3349_v40 = vpop.eup %3348 }
 0x6e8   :  { %3352 = vrcp.f32 %v1995_v37  ;;  %v3351_v59 = vpop.eup %3350 }
 0x6e9   :  { %3354 = vrcp.f32 %v1996_v39  ;;  %v1997_v62 = vadd.f32 1.0, %v3351_v59 }
 0x6eb   :  { %3356 = vrcp.f32 %v1997_v62 }
 0x6f2   :  { %v3353_v56 = vpop.eup %3352 }
 0x6f3   :  { %v2006_v25 = vmul.f32 %v3353_v56, %v3349_v40  ;;  %v3355_v2 = vpop.eup %3354 }
 0x6f4   :  { %v2005_v63 = vmul.f32 %v3355_v2, %v4986_v44 }
 0x6f5   :  { %v3357_v26 = vpop.eup %3356 }
 0x6f6   :  { %v2045_v3 = vpop.f32.mrb[56].mxu0  ;;  %v2086_v4 = vpop.f32.mrb[56].mxu1  ;;  %v5166_v6 = vadd.f32 %v2006_v25, %v2005_v63 }
 0x6f7   :  { %v2093_v53 = vadd.f32 %v2045_v3, %v6309_v58  ;;  %v2095_v14 = vadd.f32 %v2086_v4, %v6310_v5  ;;  %v2047_v61 = vpop.f32.mrb[57].mxu0  ;;  %v2088_v7 = vpop.f32.mrb[57].mxu1  ;;  %v6314_v5 = vld [vmem:[#allocation29_spill] sm:$0xff] }
 0x6f8   :  { %v2094_v50 = vadd.f32 %v2047_v61, %v6311_v55  ;;  %v2096_v52 = vadd.f32 %v2088_v7, %v6312_v10  ;;  %v2049_v17 = vpop.f32.mrb[58].mxu0  ;;  %v2090_v19 = vpop.f32.mrb[58].mxu1  ;;  %3358 = vtanh.f32 %v5166_v6  ;;  %v6316_v61 = vld [vmem:[#allocation31_spill] sm:$0xff]  ;;  %v6318_v55 = vld [vmem:[#allocation80_spill] sm:$0xff]  ;;  %v6320_v10 = vld [vmem:[#allocation82_spill] sm:$0xff] }
 0x6f9   :  { %v2970_v20 = vmul.f32 -1.442695, %v2093_v53  ;;  %v2050_v21 = vpop.f32.mrb[59].mxu0  ;;  %v2091_v44 = vpop.f32.mrb[59].mxu1  ;;  %v2972_v29 = vmul.f32 -1.442695, %v2095_v14 }
 0x6fa   :  { %v2971_v22 = vmul.f32 -1.442695, %v2094_v50  ;;  %v6315_v14 = vld [vmem:[#allocation30_spill] sm:$0xff]  ;;  %v6317_v7 = vld [vmem:[#allocation79_spill] sm:$0xff]  ;;  %v6319_v50 = vld [vmem:[#allocation81_spill] sm:$0xff] }
 0x6fb   :  { %3360 = vpow2.f32 %v2970_v20  ;;  %v6322_v17 = vld [vmem:[#allocation33_spill] sm:$0xff]  ;;  %v5209_v19 = vld [vmem:[#allocation7 + $0x4] ss:$16 sps:$4 sm:$0xff]   ;;  %v5218_v44 = vld [vmem:[#allocation7 + $0x8] ss:$16 sps:$4 sm:$0xff]  }
 0x6fc   :  { %3362 = vpow2.f32 %v2971_v22  ;;  %v5212_v20 = vld [vmem:[#allocation7 + $0xc] ss:$16 sps:$4 sm:$0xff]   ;;  %v5215_v21 = vld [vmem:[#allocation7] ss:$16 sps:$4 sm:$0xff]   ;;  %v5221_v22 = vld [vmem:[#allocation7 + $0x24] ss:$16 sps:$4 sm:$0xff]  }
 0x6fd   :  { %3364 = vtanh.f32 %v2096_v52  ;;  %v6321_v52 = vld [vmem:[#allocation32_spill] sm:$0xff] }
 0x6fe   :  { %3366 = vpow2.f32 %v2972_v29  ;;  %v5230_v29 = vld [vmem:[#allocation7 + $0x28] ss:$16 sps:$4 sm:$0xff]  }
 0x702   :  { %v3359_v27 = vpop.eup %3358 }
 0x703   :  { %v2009_v31 = vmul.f32 %v3359_v27, %v3357_v26  ;;  %v5224_v26 = vld [vmem:[#allocation7 + $0x2c] ss:$16 sps:$4 sm:$0xff]   ;;  %v5227_v27 = vld [vmem:[#allocation7 + $0x20] ss:$16 sps:$4 sm:$0xff]  }
 0x705   :  { %v3361_v35 = vpop.eup %3360  ;;  %v2010_v36 = vpack.c.bf16 %v2009_v31, %v2009_v31  ;;  %v5233_v31 = vld [vmem:[#allocation7 + $0x44] ss:$16 sps:$4 sm:$0xff]  }
 0x706   :  { %v2106_v32 = vadd.f32 1.0, %v3361_v35  ;;  %v3363_v37 = vpop.eup %3362  ;;  %v5236_v35 = vld [vmem:[#allocation7 + $0x4c] ss:$16 sps:$4 sm:$0xff]  }
 0x707   :  { %v2107_v38 = vadd.f32 1.0, %v3363_v37  ;;  %2154 = vmatprep.mubr.bf16.mxu0 %v2010_v36  ;;  %2195 = vmatprep.mubr.bf16.mxu1 %v2010_v36  ;;  %v3365_v39 = vpop.eup %3364  ;;  %v5242_v36 = vld [vmem:[#allocation7 + $0x48] ss:$16 sps:$4 sm:$0xff]   ;;  %v5245_v37 = vld [vmem:[#allocation7 + $0x64] ss:$16 sps:$4 sm:$0xff]  }
 0x708   :  { %3368 = vrcp.f32 %v2106_v32  ;;  %v3367_v40 = vpop.eup %3366  ;;  %v5239_v32 = vld [vmem:[#allocation7 + $0x40] ss:$16 sps:$4 sm:$0xff]   ;;  %6324 = vst [vmem:[#allocation35_spill] sm:$0xff] %v5242_v36  ;;  %6325 = vst [vmem:[#allocation36_spill] sm:$0xff] %v5245_v37 }
 0x709   :  { %3370 = vrcp.f32 %v2107_v38  ;;  %v2108_v2 = vadd.f32 1.0, %v3367_v40  ;;  %6323 = vst [vmem:[#allocation34_spill] sm:$0xff] %v5239_v32  ;;  %v5248_v38 = vld [vmem:[#allocation7 + $0x6c] ss:$16 sps:$4 sm:$0xff]   ;;  %v5254_v40 = vld [vmem:[#allocation7 + $0x68] ss:$16 sps:$4 sm:$0xff]  }
 0x70a   :  { %6326 = vst [vmem:[#allocation37_spill] sm:$0xff] %v5248_v38  ;;  %6328 = vst [vmem:[#allocation39_spill] sm:$0xff] %v5254_v40 }
 0x70b   :  { %3372 = vrcp.f32 %v2108_v2  ;;  %v5266_v2 = vld [vmem:[#allocation7 + $0x88] ss:$16 sps:$4 sm:$0xff]  }
 0x70c   :  { %6332 = vst [vmem:[#allocation43_spill] sm:$0xff] %v5266_v2 }
 0x712   :  { %v3369_v59 = vpop.eup %3368 }
 0x713   :  { %v2117_v56 = vmul.f32 %v3369_v59, %v3365_v39  ;;  %v3371_v25 = vpop.eup %3370  ;;  %v5251_v39 = vld [vmem:[#allocation7 + $0x60] ss:$16 sps:$4 sm:$0xff]   ;;  %v5257_v59 = vld [vmem:[#allocation7 + $0x84] ss:$16 sps:$4 sm:$0xff]  }
 0x714   :  { %v2116_v62 = vmul.f32 %v3371_v25, %v4994_v41  ;;  %v6313_v41 = vld [vmem:[#allocation28_spill] sm:$0xff]  ;;  %6327 = vst [vmem:[#allocation38_spill] sm:$0xff] %v5251_v39  ;;  %6329 = vst [vmem:[#allocation40_spill] sm:$0xff] %v5257_v59  ;;  %v5263_v25 = vld [vmem:[#allocation7 + $0x80] ss:$16 sps:$4 sm:$0xff]  }
 0x715   :  { %v3373_v3 = vpop.eup %3372  ;;  %6331 = vst [vmem:[#allocation42_spill] sm:$0xff] %v5263_v25 }
 0x716   :  { %v5174_v63 = vadd.f32 %v2117_v56, %v2116_v62  ;;  %v5260_v56 = vld [vmem:[#allocation7 + $0x8c] ss:$16 sps:$4 sm:$0xff]   ;;  %v5269_v62 = vld [vmem:[#allocation7 + $0xa4] ss:$16 sps:$4 sm:$0xff]  }
 0x717   :  { %6330 = vst [vmem:[#allocation41_spill] sm:$0xff] %v5260_v56  ;;  %6333 = vst [vmem:[#allocation44_spill] sm:$0xff] %v5269_v62 }
 0x718   :  { %3374 = vtanh.f32 %v5174_v63 }
 0x722   :  { %v3375_v4 = vpop.eup %3374 }
 0x723   :  { %v2120_v58 = vmul.f32 %v3375_v4, %v3373_v3  ;;  %v5272_v3 = vld [vmem:[#allocation7 + $0xac] ss:$16 sps:$4 sm:$0xff]   ;;  %v5275_v4 = vld [vmem:[#allocation7 + $0xa0] ss:$16 sps:$4 sm:$0xff]  }
 0x724   :  { %6334 = vst [vmem:[#allocation45_spill] sm:$0xff] %v5272_v3  ;;  %6335 = vst [vmem:[#allocation46_spill] sm:$0xff] %v5275_v4 }
 0x725   :  { %v2121_v53 = vpack.c.bf16 %v2120_v58, %v2120_v58  ;;  %v5278_v58 = vld [vmem:[#allocation7 + $0xa8] ss:$16 sps:$4 sm:$0xff]  }
 0x726   :  { %6336 = vst [vmem:[#allocation70_spill] sm:$0xff] %v5278_v58 }
 0x727   :  { %2155 = vmatmul.mubr.bf16.vlgmr.msra.gmra.mrb[60].mxu0 %v2121_v53  ;;  %2196 = vmatmul.mubr.bf16.vlgmr.msra.gmra.mrb[60].mxu1 %v2121_v53 }
 0x728   :  { %2230 = vmatpush1.bf16.msra.mxu0 %v5001_v28  ;;  %2271 = vmatpush1.bf16.msra.mxu1 %v5004_v23 }
 0x729   :  { %2231 = vmatprep.subr.bf16.mxu0 %v5007_v9  ;;  %2272 = vmatprep.subr.bf16.mxu1 %v5010_v47 }
 0x72a   :  { %2261 = vmatprep.mubr.bf16.mxu0 %v6021_v51  ;;  %2302 = vmatprep.mubr.bf16.mxu1 %v6021_v51 }
 0x72c   :  { %2232 = vmatpush1.bf16.msra.mxu0 %v5015_v15  ;;  %2273 = vmatpush1.bf16.msra.mxu1 %v5018_v16 }
 0x72d   :  { %2233 = vmatprep.subr.bf16.mxu0 %v5021_v24  ;;  %2274 = vmatprep.subr.bf16.mxu1 %v5024_v46 }
 0x730   :  { %2234 = vmatpush1.bf16.msra.mxu0 %v5027_v43  ;;  %2275 = vmatpush1.bf16.msra.mxu1 %v5030_v13 }
 0x731   :  { %2235 = vmatprep.subr.bf16.mxu0 %v5033_v57  ;;  %2276 = vmatprep.subr.bf16.mxu1 %v5036_v8 }
 0x734   :  { %2236 = vmatpush1.bf16.msra.mxu0 %v5039_v30  ;;  %2277 = vmatpush1.bf16.msra.mxu1 %v5042_v33 }
 0x735   :  { %2237 = vmatprep.subr.bf16.mxu0 %v6313_v41  ;;  %2278 = vmatprep.subr.bf16.mxu1 %v6314_v5 }
 0x738   :  { %2238 = vmatpush1.bf16.msra.mxu0 %v6315_v14  ;;  %2279 = vmatpush1.bf16.msra.mxu1 %v6316_v61 }
 0x739   :  { %2239 = vmatprep.subr.bf16.mxu0 %v6317_v7  ;;  %2280 = vmatprep.subr.bf16.mxu1 %v6318_v55 }
 0x73c   :  { %2240 = vmatpush1.bf16.msra.mxu0 %v6319_v50  ;;  %2281 = vmatpush1.bf16.msra.mxu1 %v6320_v10 }
 0x73d   :  { %2241 = vmatprep.subr.bf16.mxu0 %v6321_v52  ;;  %2282 = vmatprep.subr.bf16.mxu1 %v6322_v17 }
 0x740   :  { %2242 = vmatpush1.bf16.msra.mxu0 %v5075_v42  ;;  %2283 = vmatpush1.bf16.msra.mxu1 %v5078_v48 }
 0x741   :  { %2243 = vmatprep.subr.bf16.mxu0 %v5081_v49  ;;  %2284 = vmatprep.subr.bf16.mxu1 %v5084_v11 }
 0x744   :  { %2244 = vmatpush1.bf16.msra.mxu0 %v5087_v12  ;;  %2285 = vmatpush1.bf16.msra.mxu1 %v5090_v0 }
 0x745   :  { %2340 = vmatprep.subr.bf16.mxu0 %v5209_v19  ;;  %2381 = vmatprep.subr.bf16.mxu1 %v5212_v20 }
 0x747   :  { %2262 = vmatmul.mubr.bf16.vlgmr.msra.gmra.mrb[64].mxu0 %v2121_v53  ;;  %2303 = vmatmul.mubr.bf16.vlgmr.msra.gmra.mrb[64].mxu1 %v2121_v53  ;;  %v5281_v53 = vld [vmem:[#allocation7 + $0xc4] ss:$16 sps:$4 sm:$0xff]  }
 0x748   :  { %2341 = vmatpush1.bf16.msra.mxu0 %v5215_v21  ;;  %2382 = vmatpush1.bf16.msra.mxu1 %v5218_v44  ;;  %6337 = vst [vmem:[#allocation71_spill] sm:$0xff] %v5281_v53 }
 0x749   :  { %2342 = vmatprep.subr.bf16.mxu0 %v5221_v22  ;;  %2383 = vmatprep.subr.bf16.mxu1 %v5224_v26 }
 0x74c   :  { %2343 = vmatpush1.bf16.msra.mxu0 %v5227_v27  ;;  %2384 = vmatpush1.bf16.msra.mxu1 %v5230_v29 }
 0x74d   :  { %2344 = vmatprep.subr.bf16.mxu0 %v5233_v31  ;;  %2385 = vmatprep.subr.bf16.mxu1 %v5236_v35 }
 0x750   :  { %2345 = vmatpush1.bf16.msra.mxu0 %v5239_v32  ;;  %2386 = vmatpush1.bf16.msra.mxu1 %v5242_v36 }
 0x751   :  { %2346 = vmatprep.subr.bf16.mxu0 %v5245_v37  ;;  %2387 = vmatprep.subr.bf16.mxu1 %v5248_v38 }
 0x754   :  { %2347 = vmatpush1.bf16.msra.mxu0 %v5251_v39  ;;  %2388 = vmatpush1.bf16.msra.mxu1 %v5254_v40 }
 0x755   :  { %2348 = vmatprep.subr.bf16.mxu0 %v5257_v59  ;;  %2389 = vmatprep.subr.bf16.mxu1 %v5260_v56 }
 0x758   :  { %2349 = vmatpush1.bf16.msra.mxu0 %v5263_v25  ;;  %2390 = vmatpush1.bf16.msra.mxu1 %v5266_v2  ;;  %v5284_v2 = vld [vmem:[#allocation7 + $0xcc] ss:$16 sps:$4 sm:$0xff]  }
 0x759   :  { %2350 = vmatprep.subr.bf16.mxu0 %v5269_v62  ;;  %2391 = vmatprep.subr.bf16.mxu1 %v5272_v3  ;;  %6338 = vst [vmem:[#allocation72_spill] sm:$0xff] %v5284_v2  ;;  %v5287_v62 = vld [vmem:[#allocation7 + $0xc0] ss:$16 sps:$4 sm:$0xff]   ;;  %v5290_v3 = vld [vmem:[#allocation7 + $0xc8] ss:$16 sps:$4 sm:$0xff]  }
 0x75a   :  { %6339 = vst [vmem:[#allocation73_spill] sm:$0xff] %v5287_v62  ;;  %6340 = vst [vmem:[#allocation74_spill] sm:$0xff] %v5290_v3 }
 0x75c   :  { %2351 = vmatpush1.bf16.msra.mxu0 %v5275_v4  ;;  %2392 = vmatpush1.bf16.msra.mxu1 %v5278_v58  ;;  %v5293_v4 = vld [vmem:[#allocation7 + $0xe4] ss:$16 sps:$4 sm:$0xff]   ;;  %v5296_v58 = vld [vmem:[#allocation7 + $0xec] ss:$16 sps:$4 sm:$0xff]  }
 0x75d   :  { %2352 = vmatprep.subr.bf16.mxu0 %v5281_v53  ;;  %2393 = vmatprep.subr.bf16.mxu1 %v5284_v2  ;;  %6341 = vst [vmem:[#allocation47_spill] sm:$0xff] %v5293_v4  ;;  %6342 = vst [vmem:[#allocation48_spill] sm:$0xff] %v5296_v58  ;;  %v5299_v53 = vld [vmem:[#allocation7 + $0xe0] ss:$16 sps:$4 sm:$0xff]   ;;  %v5302_v2 = vld [vmem:[#allocation7 + $0xe8] ss:$16 sps:$4 sm:$0xff]  }
 0x75e   :  { %6343 = vst [vmem:[#allocation49_spill] sm:$0xff] %v5299_v53  ;;  %6344 = vst [vmem:[#allocation50_spill] sm:$0xff] %v5302_v2 }
 0x760   :  { %2353 = vmatpush1.bf16.msra.mxu0 %v5287_v62  ;;  %2394 = vmatpush1.bf16.msra.mxu1 %v5290_v3  ;;  %v5305_v62 = vld [vmem:[#allocation7 + $0x104] ss:$16 sps:$4 sm:$0xff]   ;;  %v5308_v3 = vld [vmem:[#allocation7 + $0x10c] ss:$16 sps:$4 sm:$0xff]  }
 0x761   :  { %2354 = vmatprep.subr.bf16.mxu0 %v5293_v4  ;;  %2395 = vmatprep.subr.bf16.mxu1 %v5296_v58  ;;  %6345 = vst [vmem:[#allocation51_spill] sm:$0xff] %v5305_v62  ;;  %6346 = vst [vmem:[#allocation52_spill] sm:$0xff] %v5308_v3  ;;  %v5311_v4 = vld [vmem:[#allocation7 + $0x100] ss:$16 sps:$4 sm:$0xff]   ;;  %v5314_v58 = vld [vmem:[#allocation7 + $0x108] ss:$16 sps:$4 sm:$0xff]  }
 0x762   :  { %6347 = vst [vmem:[#allocation53_spill] sm:$0xff] %v5311_v4  ;;  %6348 = vst [vmem:[#allocation54_spill] sm:$0xff] %v5314_v58 }
 0x764   :  { %2355 = vmatpush1.bf16.msra.mxu0 %v5299_v53  ;;  %2396 = vmatpush1.bf16.msra.mxu1 %v5302_v2  ;;  %v5317_v53 = vld [vmem:[#allocation7 + $0x124] ss:$16 sps:$4 sm:$0xff]   ;;  %v5320_v2 = vld [vmem:[#allocation7 + $0x12c] ss:$16 sps:$4 sm:$0xff]  }
 0x765   :  { %2356 = vmatprep.subr.bf16.mxu0 %v5305_v62  ;;  %2397 = vmatprep.subr.bf16.mxu1 %v5308_v3  ;;  %6349 = vst [vmem:[#allocation55_spill] sm:$0xff] %v5317_v53  ;;  %6350 = vst [vmem:[#allocation56_spill] sm:$0xff] %v5320_v2  ;;  %v5323_v62 = vld [vmem:[#allocation7 + $0x120] ss:$16 sps:$4 sm:$0xff]   ;;  %v5326_v3 = vld [vmem:[#allocation7 + $0x128] ss:$16 sps:$4 sm:$0xff]  }
 0x766   :  { %6351 = vst [vmem:[#allocation83_spill] sm:$0xff] %v5323_v62  ;;  %6352 = vst [vmem:[#allocation84_spill] sm:$0xff] %v5326_v3 }
 0x768   :  { %2357 = vmatpush1.bf16.msra.mxu0 %v5311_v4  ;;  %2398 = vmatpush1.bf16.msra.mxu1 %v5314_v58  ;;  %v5329_v4 = vld [vmem:[#allocation7 + $0x144] ss:$16 sps:$4 sm:$0xff]   ;;  %v5332_v58 = vld [vmem:[#allocation7 + $0x14c] ss:$16 sps:$4 sm:$0xff]  }
 0x769   :  { %2358 = vmatprep.subr.bf16.mxu0 %v5317_v53  ;;  %2399 = vmatprep.subr.bf16.mxu1 %v5320_v2  ;;  %6353 = vst [vmem:[#allocation85_spill] sm:$0xff] %v5329_v4  ;;  %6354 = vst [vmem:[#allocation86_spill] sm:$0xff] %v5332_v58  ;;  %v5335_v53 = vld [vmem:[#allocation7 + $0x140] ss:$16 sps:$4 sm:$0xff]   ;;  %v5338_v2 = vld [vmem:[#allocation7 + $0x148] ss:$16 sps:$4 sm:$0xff]  }
 0x76a   :  { %6355 = vst [vmem:[#allocation57_spill] sm:$0xff] %v5335_v53  ;;  %6356 = vst [vmem:[#allocation58_spill] sm:$0xff] %v5338_v2 }
 0x76c   :  { %2359 = vmatpush1.bf16.msra.mxu0 %v5323_v62  ;;  %2400 = vmatpush1.bf16.msra.mxu1 %v5326_v3  ;;  %v5341_v62 = vld [vmem:[#allocation7 + $0x164] ss:$16 sps:$4 sm:$0xff]   ;;  %v5344_v3 = vld [vmem:[#allocation7 + $0x16c] ss:$16 sps:$4 sm:$0xff]  }
 0x76d   :  { %2360 = vmatprep.subr.bf16.mxu0 %v5329_v4  ;;  %2401 = vmatprep.subr.bf16.mxu1 %v5332_v58  ;;  %6357 = vst [vmem:[#allocation59_spill] sm:$0xff] %v5341_v62  ;;  %6358 = vst [vmem:[#allocation60_spill] sm:$0xff] %v5344_v3  ;;  %v5347_v4 = vld [vmem:[#allocation7 + $0x160] ss:$16 sps:$4 sm:$0xff]   ;;  %v5350_v58 = vld [vmem:[#allocation7 + $0x168] ss:$16 sps:$4 sm:$0xff]  }
 0x76e   :  { %6359 = vst [vmem:[#allocation61_spill] sm:$0xff] %v5347_v4  ;;  %6360 = vst [vmem:[#allocation62_spill] sm:$0xff] %v5350_v58 }
 0x770   :  { %2361 = vmatpush1.bf16.msra.mxu0 %v5335_v53  ;;  %2402 = vmatpush1.bf16.msra.mxu1 %v5338_v2  ;;  %v5353_v53 = vld [vmem:[#allocation7 + $0x184] ss:$16 sps:$4 sm:$0xff]   ;;  %v5356_v2 = vld [vmem:[#allocation7 + $0x18c] ss:$16 sps:$4 sm:$0xff]  }
 0x771   :  { %2362 = vmatprep.subr.bf16.mxu0 %v5341_v62  ;;  %2403 = vmatprep.subr.bf16.mxu1 %v5344_v3  ;;  %6361 = vst [vmem:[#allocation63_spill] sm:$0xff] %v5353_v53  ;;  %6362 = vst [vmem:[#allocation64_spill] sm:$0xff] %v5356_v2  ;;  %v5359_v62 = vld [vmem:[#allocation7 + $0x180] ss:$16 sps:$4 sm:$0xff]   ;;  %v5362_v3 = vld [vmem:[#allocation7 + $0x188] ss:$16 sps:$4 sm:$0xff]  }
 0x772   :  { %6363 = vst [vmem:[#allocation65_spill] sm:$0xff] %v5359_v62  ;;  %6364 = vst [vmem:[#allocation66_spill] sm:$0xff] %v5362_v3 }
 0x774   :  { %2363 = vmatpush1.bf16.msra.mxu0 %v5347_v4  ;;  %2404 = vmatpush1.bf16.msra.mxu1 %v5350_v58  ;;  %v5365_v4 = vld [vmem:[#allocation7 + $0x1a4] ss:$16 sps:$4 sm:$0xff]   ;;  %v5368_v58 = vld [vmem:[#allocation7 + $0x1ac] ss:$16 sps:$4 sm:$0xff]  }
 0x775   :  { %2364 = vmatprep.subr.bf16.mxu0 %v5353_v53  ;;  %2405 = vmatprep.subr.bf16.mxu1 %v5356_v2  ;;  %6365 = vst [vmem:[#allocation67_spill] sm:$0xff] %v5365_v4  ;;  %6366 = vst [vmem:[#allocation68_spill] sm:$0xff] %v5368_v58  ;;  %v5371_v53 = vld [vmem:[#allocation7 + $0x1a0] ss:$16 sps:$4 sm:$0xff]   ;;  %v5374_v2 = vld [vmem:[#allocation7 + $0x1a8] ss:$16 sps:$4 sm:$0xff]  }
 0x776   :  { %6367 = vst [vmem:[#allocation69_spill] sm:$0xff] %v5371_v53  ;;  %6368 = vst [vmem:[#allocation15_spill] sm:$0xff] %v5374_v2 }
 0x778   :  { %2365 = vmatpush1.bf16.msra.mxu0 %v5359_v62  ;;  %2406 = vmatpush1.bf16.msra.mxu1 %v5362_v3  ;;  %v5377_v62 = vld [vmem:[#allocation7 + $0x1c4] ss:$16 sps:$4 sm:$0xff]   ;;  %v5380_v3 = vld [vmem:[#allocation7 + $0x1cc] ss:$16 sps:$4 sm:$0xff]  }
 0x779   :  { %2366 = vmatprep.subr.bf16.mxu0 %v5365_v4  ;;  %2407 = vmatprep.subr.bf16.mxu1 %v5368_v58  ;;  %6369 = vst [vmem:[#allocation16_spill] sm:$0xff] %v5377_v62  ;;  %6370 = vst [vmem:[#allocation75_spill] sm:$0xff] %v5380_v3  ;;  %v5383_v4 = vld [vmem:[#allocation7 + $0x1c0] ss:$16 sps:$4 sm:$0xff]   ;;  %v5386_v58 = vld [vmem:[#allocation7 + $0x1c8] ss:$16 sps:$4 sm:$0xff]  }
 0x77a   :  { %6371 = vst [vmem:[#allocation76_spill] sm:$0xff] %v5383_v4  ;;  %6372 = vst [vmem:[#allocation77_spill] sm:$0xff] %v5386_v58 }
 0x77c   :  { %2367 = vmatpush1.bf16.msra.mxu0 %v5371_v53  ;;  %2408 = vmatpush1.bf16.msra.mxu1 %v5374_v2  ;;  %v5389_v53 = vld [vmem:[#allocation7 + $0x1e4] ss:$16 sps:$4 sm:$0xff]   ;;  %v5392_v2 = vld [vmem:[#allocation7 + $0x1ec] ss:$16 sps:$4 sm:$0xff]  }
 0x77d   :  { %2368 = vmatprep.subr.bf16.mxu0 %v5377_v62  ;;  %2409 = vmatprep.subr.bf16.mxu1 %v5380_v3  ;;  %6373 = vst [vmem:[#allocation78_spill] sm:$0xff] %v5389_v53  ;;  %6374 = vst [vmem:[#allocation21_spill] sm:$0xff] %v5392_v2  ;;  %v5395_v62 = vld [vmem:[#allocation7 + $0x1e0] ss:$16 sps:$4 sm:$0xff]   ;;  %v5398_v3 = vld [vmem:[#allocation7 + $0x1e8] ss:$16 sps:$4 sm:$0xff]  }
 0x77e   :  { %6375 = vst [vmem:[#allocation22_spill] sm:$0xff] %v5395_v62  ;;  %6376 = vst [vmem:[#allocation23_spill] sm:$0xff] %v5398_v3 }
 0x780   :  { %2369 = vmatpush1.bf16.msra.mxu0 %v5383_v4  ;;  %2410 = vmatpush1.bf16.msra.mxu1 %v5386_v58 }
 0x781   :  { %2370 = vmatprep.subr.bf16.mxu0 %v5389_v53  ;;  %2411 = vmatprep.subr.bf16.mxu1 %v5392_v2 }
 0x784   :  { %2371 = vmatpush1.bf16.msra.mxu0 %v5395_v62  ;;  %2412 = vmatpush1.bf16.msra.mxu1 %v5398_v3 }
 0x785   :  { %2447 = vmatprep.subr.bf16.mxu0 %v6303_v60  ;;  %2488 = vmatprep.subr.bf16.mxu1 %v6304_v1 }
 0x7fa   :  { %v2156_v58 = vpop.f32.mrb[60].mxu0  ;;  %v2197_v4 = vpop.f32.mrb[60].mxu1 }
 0x7fb   :  { %v2157_v53 = vadd.f32 %v2156_v58, %v6305_v54  ;;  %v2158_v25 = vpop.f32.mrb[61].mxu0  ;;  %v2199_v56 = vpop.f32.mrb[61].mxu1  ;;  %v2198_v60 = vadd.f32 %v2197_v4, %v6307_v45  ;;  %v6380_v45 = vld [vmem:[#allocation94_spill] sm:$0xff] }
 0x7fc   :  { %v2159_v2 = vadd.f32 %v2158_v25, %v6306_v18  ;;  %v2160_v59 = vpop.f32.mrb[62].mxu0  ;;  %v2201_v40 = vpop.f32.mrb[62].mxu1  ;;  %v2200_v1 = vadd.f32 %v2199_v56, %v6308_v34 }
 0x7fd   :  { %v2973_v39 = vmul.f32 -1.442695, %v2157_v53  ;;  %v2161_v62 = vpop.f32.mrb[63].mxu0  ;;  %v2202_v38 = vpop.f32.mrb[63].mxu1  ;;  %v2975_v3 = vmul.f32 -1.442695, %v2198_v60 }
 0x7fe   :  { %v2974_v37 = vmul.f32 -1.442695, %v2159_v2  ;;  %v6377_v60 = vld [vmem:[#allocation91_spill] sm:$0xff] }
 0x7ff   :  { %3376 = vpow2.f32 %v2973_v39 }
 0x800   :  { %3378 = vpow2.f32 %v2974_v37 }
 0x801   :  { %3380 = vtanh.f32 %v2200_v1  ;;  %v6378_v1 = vld [vmem:[#allocation92_spill] sm:$0xff] }
 0x802   :  { %3382 = vpow2.f32 %v2975_v3 }
 0x809   :  { %v3377_v36 = vpop.eup %3376 }
 0x80a   :  { %v2213_v32 = vadd.f32 1.0, %v3377_v36  ;;  %v3379_v58 = vpop.eup %3378 }
 0x80b   :  { %v2214_v25 = vadd.f32 1.0, %v3379_v58  ;;  %v3381_v40 = vpop.eup %3380  ;;  %v6379_v58 = vld [vmem:[#allocation93_spill] sm:$0xff] }
 0x80c   :  { %3384 = vrcp.f32 %v2213_v32  ;;  %v3383_v59 = vpop.eup %3382 }
 0x80d   :  { %3386 = vrcp.f32 %v2214_v25  ;;  %v2215_v39 = vadd.f32 1.0, %v3383_v59 }
 0x80f   :  { %3388 = vrcp.f32 %v2215_v39 }
 0x816   :  { %v3385_v62 = vpop.eup %3384 }
 0x817   :  { %v2224_v38 = vmul.f32 %v3385_v62, %v3381_v40  ;;  %v3387_v2 = vpop.eup %3386 }
 0x818   :  { %v2223_v37 = vmul.f32 %v3387_v2, %v5166_v6 }
 0x819   :  { %v3389_v2 = vpop.eup %3388 }
 0x81a   :  { %v2263_v4 = vpop.f32.mrb[64].mxu0  ;;  %v2304_v53 = vpop.f32.mrb[64].mxu1  ;;  %v5408_v56 = vadd.f32 %v2224_v38, %v2223_v37 }
 0x81b   :  { %v2311_v36 = vadd.f32 %v2263_v4, %v6377_v60  ;;  %v2313_v34 = vadd.f32 %v2304_v53, %v6378_v1  ;;  %v2265_v3 = vpop.f32.mrb[65].mxu0  ;;  %v2306_v32 = vpop.f32.mrb[65].mxu1 }
 0x81c   :  { %v2312_v25 = vadd.f32 %v2265_v3, %v6379_v58  ;;  %v2314_v18 = vadd.f32 %v2306_v32, %v6380_v45  ;;  %v2267_v40 = vpop.f32.mrb[66].mxu0  ;;  %v2308_v62 = vpop.f32.mrb[66].mxu1  ;;  %3390 = vtanh.f32 %v5408_v56 }
 0x81d   :  { %v2976_v59 = vmul.f32 -1.442695, %v2311_v36  ;;  %v2268_v54 = vpop.f32.mrb[67].mxu0  ;;  %v2309_v6 = vpop.f32.mrb[67].mxu1  ;;  %v2978_v4 = vmul.f32 -1.442695, %v2313_v34 }
 0x81e   :  { %v2977_v38 = vmul.f32 -1.442695, %v2312_v25 }
 0x81f   :  { %3392 = vpow2.f32 %v2976_v59 }
 0x820   :  { %3394 = vpow2.f32 %v2977_v38 }
 0x821   :  { %3396 = vtanh.f32 %v2314_v18 }
 0x822   :  { %3398 = vpow2.f32 %v2978_v4  ;;  %v6425_v4 = vld [vmem:[#allocation69_spill] sm:$0xff] }
 0x826   :  { %v3391_v37 = vpop.eup %3390 }
 0x827   :  { %v2227_v53 = vmul.f32 %v3391_v37, %v3389_v2  ;;  %v6423_v2 = vld [vmem:[#allocation67_spill] sm:$0xff]  ;;  %v6424_v37 = vld [vmem:[#allocation68_spill] sm:$0xff] }
 0x829   :  { %v3393_v60 = vpop.eup %3392  ;;  %v2228_v1 = vpack.c.bf16 %v2227_v53, %v2227_v53  ;;  %v6426_v53 = vld [vmem:[#allocation15_spill] sm:$0xff] }
 0x82a   :  { %v2324_v39 = vadd.f32 1.0, %v3393_v60  ;;  %v3395_v3 = vpop.eup %3394  ;;  %v6427_v60 = vld [vmem:[#allocation16_spill] sm:$0xff] }
 0x82b   :  { %v2325_v45 = vadd.f32 1.0, %v3395_v3  ;;  %2372 = vmatprep.mubr.bf16.mxu0 %v2228_v1  ;;  %2413 = vmatprep.mubr.bf16.mxu1 %v2228_v1  ;;  %v3397_v54 = vpop.eup %3396  ;;  %v6429_v1 = vld [vmem:[#allocation76_spill] sm:$0xff]  ;;  %v6430_v3 = vld [vmem:[#allocation77_spill] sm:$0xff] }
 0x82c   :  { %3400 = vrcp.f32 %v2324_v39  ;;  %v3399_v36 = vpop.eup %3398  ;;  %v6428_v39 = vld [vmem:[#allocation75_spill] sm:$0xff] }
 0x82d   :  { %3402 = vrcp.f32 %v2325_v45  ;;  %v2326_v40 = vadd.f32 1.0, %v3399_v36  ;;  %v6431_v45 = vld [vmem:[#allocation78_spill] sm:$0xff] }
 0x82e   :  { %v6433_v36 = vld [vmem:[#allocation22_spill] sm:$0xff] }
 0x82f   :  { %3404 = vrcp.f32 %v2326_v40  ;;  %v6435_v40 = vld [vmem:[#allocation17_spill] sm:$0xff] }
 0x836   :  { %v3401_v32 = vpop.eup %3400 }
 0x837   :  { %v2335_v58 = vmul.f32 %v3401_v32, %v3397_v54  ;;  %v3403_v25 = vpop.eup %3402  ;;  %v6432_v54 = vld [vmem:[#allocation21_spill] sm:$0xff]  ;;  %v6434_v32 = vld [vmem:[#allocation23_spill] sm:$0xff] }
 0x838   :  { %v2334_v34 = vmul.f32 %v3403_v25, %v5174_v63  ;;  %v6402_v63 = vld [vmem:[#allocation50_spill] sm:$0xff] }
 0x839   :  { %v3405_v18 = vpop.eup %3404 }
 0x83a   :  { %v5416_v62 = vadd.f32 %v2335_v58, %v2334_v34 }
 0x83c   :  { %3406 = vtanh.f32 %v5416_v62 }
 0x846   :  { %v3407_v59 = vpop.eup %3406 }
 0x847   :  { %v2338_v6 = vmul.f32 %v3407_v59, %v3405_v18 }
 0x849   :  { %v2339_v38 = vpack.c.bf16 %v2338_v6, %v2338_v6  ;;  %v6436_v6 = vld [vmem:[#allocation18_spill] sm:$0xff] }
 0x84b   :  { %2373 = vmatmul.mubr.bf16.vlgmr.msra.gmra.mrb[68].mxu0 %v2339_v38  ;;  %2414 = vmatmul.mubr.bf16.vlgmr.msra.gmra.mrb[68].mxu1 %v2339_v38 }
 0x84c   :  { %2448 = vmatpush1.bf16.msra.mxu0 %v5001_v28  ;;  %2489 = vmatpush1.bf16.msra.mxu1 %v5004_v23  ;;  %v6382_v28 = vld [vmem:[#allocation35_spill] sm:$0xff]  ;;  %v6383_v23 = vld [vmem:[#allocation36_spill] sm:$0xff] }
 0x84d   :  { %2449 = vmatprep.subr.bf16.mxu0 %v5007_v9  ;;  %2490 = vmatprep.subr.bf16.mxu1 %v5010_v47  ;;  %v6384_v9 = vld [vmem:[#allocation37_spill] sm:$0xff]  ;;  %v6385_v47 = vld [vmem:[#allocation38_spill] sm:$0xff] }
 0x84e   :  { %2479 = vmatprep.mubr.bf16.mxu0 %v6021_v51  ;;  %2520 = vmatprep.mubr.bf16.mxu1 %v6021_v51  ;;  %v6381_v51 = vld [vmem:[#allocation34_spill] sm:$0xff] }
 0x850   :  { %2450 = vmatpush1.bf16.msra.mxu0 %v5015_v15  ;;  %2491 = vmatpush1.bf16.msra.mxu1 %v5018_v16  ;;  %v6386_v15 = vld [vmem:[#allocation39_spill] sm:$0xff]  ;;  %v6387_v16 = vld [vmem:[#allocation40_spill] sm:$0xff] }
 0x851   :  { %2451 = vmatprep.subr.bf16.mxu0 %v5021_v24  ;;  %2492 = vmatprep.subr.bf16.mxu1 %v5024_v46  ;;  %v6388_v24 = vld [vmem:[#allocation41_spill] sm:$0xff]  ;;  %v6389_v46 = vld [vmem:[#allocation42_spill] sm:$0xff] }
 0x854   :  { %2452 = vmatpush1.bf16.msra.mxu0 %v5027_v43  ;;  %2493 = vmatpush1.bf16.msra.mxu1 %v5030_v13  ;;  %v6390_v43 = vld [vmem:[#allocation43_spill] sm:$0xff]  ;;  %v6391_v13 = vld [vmem:[#allocation44_spill] sm:$0xff] }
 0x855   :  { %2453 = vmatprep.subr.bf16.mxu0 %v5033_v57  ;;  %2494 = vmatprep.subr.bf16.mxu1 %v5036_v8  ;;  %v6392_v57 = vld [vmem:[#allocation45_spill] sm:$0xff]  ;;  %v6393_v8 = vld [vmem:[#allocation46_spill] sm:$0xff] }
 0x858   :  { %2454 = vmatpush1.bf16.msra.mxu0 %v5039_v30  ;;  %2495 = vmatpush1.bf16.msra.mxu1 %v5042_v33  ;;  %v6394_v30 = vld [vmem:[#allocation70_spill] sm:$0xff]  ;;  %v6395_v33 = vld [vmem:[#allocation71_spill] sm:$0xff] }
 0x859   :  { %2455 = vmatprep.subr.bf16.mxu0 %v6313_v41  ;;  %2496 = vmatprep.subr.bf16.mxu1 %v6314_v5  ;;  %v6403_v41 = vld [vmem:[#allocation51_spill] sm:$0xff]  ;;  %v6404_v5 = vld [vmem:[#allocation52_spill] sm:$0xff] }
 0x85c   :  { %2456 = vmatpush1.bf16.msra.mxu0 %v6315_v14  ;;  %2497 = vmatpush1.bf16.msra.mxu1 %v6316_v61  ;;  %v6405_v14 = vld [vmem:[#allocation53_spill] sm:$0xff]  ;;  %v6406_v61 = vld [vmem:[#allocation54_spill] sm:$0xff] }
 0x85d   :  { %2457 = vmatprep.subr.bf16.mxu0 %v6317_v7  ;;  %2498 = vmatprep.subr.bf16.mxu1 %v6318_v55  ;;  %v6407_v7 = vld [vmem:[#allocation55_spill] sm:$0xff]  ;;  %v6408_v55 = vld [vmem:[#allocation56_spill] sm:$0xff] }
 0x860   :  { %2458 = vmatpush1.bf16.msra.mxu0 %v6319_v50  ;;  %2499 = vmatpush1.bf16.msra.mxu1 %v6320_v10  ;;  %v6409_v50 = vld [vmem:[#allocation83_spill] sm:$0xff]  ;;  %v6410_v10 = vld [vmem:[#allocation84_spill] sm:$0xff] }
 0x861   :  { %2459 = vmatprep.subr.bf16.mxu0 %v6321_v52  ;;  %2500 = vmatprep.subr.bf16.mxu1 %v6322_v17  ;;  %v6411_v52 = vld [vmem:[#allocation85_spill] sm:$0xff]  ;;  %v6412_v17 = vld [vmem:[#allocation86_spill] sm:$0xff] }
 0x864   :  { %2460 = vmatpush1.bf16.msra.mxu0 %v5075_v42  ;;  %2501 = vmatpush1.bf16.msra.mxu1 %v5078_v48  ;;  %v6400_v42 = vld [vmem:[#allocation48_spill] sm:$0xff]  ;;  %v6401_v48 = vld [vmem:[#allocation49_spill] sm:$0xff] }
 0x865   :  { %2461 = vmatprep.subr.bf16.mxu0 %v5081_v49  ;;  %2502 = vmatprep.subr.bf16.mxu1 %v5084_v11  ;;  %v6396_v49 = vld [vmem:[#allocation72_spill] sm:$0xff]  ;;  %v6397_v11 = vld [vmem:[#allocation73_spill] sm:$0xff] }
 0x868   :  { %2462 = vmatpush1.bf16.msra.mxu0 %v5087_v12  ;;  %2503 = vmatpush1.bf16.msra.mxu1 %v5090_v0  ;;  %v6398_v12 = vld [vmem:[#allocation74_spill] sm:$0xff]  ;;  %v6399_v0 = vld [vmem:[#allocation47_spill] sm:$0xff] }
 0x869   :  { %2558 = vmatprep.subr.bf16.mxu0 %v5209_v19  ;;  %2599 = vmatprep.subr.bf16.mxu1 %v5212_v20  ;;  %v6413_v19 = vld [vmem:[#allocation57_spill] sm:$0xff]  ;;  %v6414_v20 = vld [vmem:[#allocation58_spill] sm:$0xff] }
 0x86b   :  { %2480 = vmatmul.mubr.bf16.vlgmr.msra.gmra.mrb[72].mxu0 %v2339_v38  ;;  %2521 = vmatmul.mubr.bf16.vlgmr.msra.gmra.mrb[72].mxu1 %v2339_v38 }
 0x86c   :  { %2559 = vmatpush1.bf16.msra.mxu0 %v5215_v21  ;;  %2600 = vmatpush1.bf16.msra.mxu1 %v5218_v44  ;;  %v6415_v21 = vld [vmem:[#allocation59_spill] sm:$0xff]  ;;  %v6416_v44 = vld [vmem:[#allocation60_spill] sm:$0xff] }
 0x86d   :  { %2560 = vmatprep.subr.bf16.mxu0 %v5221_v22  ;;  %2601 = vmatprep.subr.bf16.mxu1 %v5224_v26  ;;  %v6417_v22 = vld [vmem:[#allocation61_spill] sm:$0xff]  ;;  %v6418_v26 = vld [vmem:[#allocation62_spill] sm:$0xff] }
 0x870   :  { %2561 = vmatpush1.bf16.msra.mxu0 %v5227_v27  ;;  %2602 = vmatpush1.bf16.msra.mxu1 %v5230_v29  ;;  %v6419_v27 = vld [vmem:[#allocation63_spill] sm:$0xff]  ;;  %v6420_v29 = vld [vmem:[#allocation64_spill] sm:$0xff] }
 0x871   :  { %2562 = vmatprep.subr.bf16.mxu0 %v5233_v31  ;;  %2603 = vmatprep.subr.bf16.mxu1 %v5236_v35  ;;  %v6421_v31 = vld [vmem:[#allocation65_spill] sm:$0xff]  ;;  %v6422_v35 = vld [vmem:[#allocation66_spill] sm:$0xff] }
 0x874   :  { %2563 = vmatpush1.bf16.msra.mxu0 %v6381_v51  ;;  %2604 = vmatpush1.bf16.msra.mxu1 %v6382_v28 }
 0x875   :  { %2564 = vmatprep.subr.bf16.mxu0 %v6383_v23  ;;  %2605 = vmatprep.subr.bf16.mxu1 %v6384_v9 }
 0x878   :  { %2565 = vmatpush1.bf16.msra.mxu0 %v6385_v47  ;;  %2606 = vmatpush1.bf16.msra.mxu1 %v6386_v15 }
 0x879   :  { %2566 = vmatprep.subr.bf16.mxu0 %v6387_v16  ;;  %2607 = vmatprep.subr.bf16.mxu1 %v6388_v24  ;;  %v6437_v16 = vld [vmem:[#allocation19_spill] sm:$0xff] }
 0x87c   :  { %2567 = vmatpush1.bf16.msra.mxu0 %v6389_v46  ;;  %2608 = vmatpush1.bf16.msra.mxu1 %v6390_v43  ;;  %v6438_v46 = vld [vmem:[#allocation20_spill] sm:$0xff] }
 0x87d   :  { %2568 = vmatprep.subr.bf16.mxu0 %v6391_v13  ;;  %2609 = vmatprep.subr.bf16.mxu1 %v6392_v57 }
 0x880   :  { %2569 = vmatpush1.bf16.msra.mxu0 %v6393_v8  ;;  %2610 = vmatpush1.bf16.msra.mxu1 %v6394_v30 }
 0x881   :  { %2570 = vmatprep.subr.bf16.mxu0 %v6395_v33  ;;  %2611 = vmatprep.subr.bf16.mxu1 %v6396_v49 }
 0x884   :  { %2571 = vmatpush1.bf16.msra.mxu0 %v6397_v11  ;;  %2612 = vmatpush1.bf16.msra.mxu1 %v6398_v12 }
 0x885   :  { %2572 = vmatprep.subr.bf16.mxu0 %v6399_v0  ;;  %2613 = vmatprep.subr.bf16.mxu1 %v6400_v42 }
 0x888   :  { %2573 = vmatpush1.bf16.msra.mxu0 %v6401_v48  ;;  %2614 = vmatpush1.bf16.msra.mxu1 %v6402_v63 }
 0x889   :  { %2574 = vmatprep.subr.bf16.mxu0 %v6403_v41  ;;  %2615 = vmatprep.subr.bf16.mxu1 %v6404_v5 }
 0x88c   :  { %2575 = vmatpush1.bf16.msra.mxu0 %v6405_v14  ;;  %2616 = vmatpush1.bf16.msra.mxu1 %v6406_v61  ;;  %v6439_v61 = vld [vmem:[#allocation95_spill] sm:$0xff] }
 0x88d   :  { %2576 = vmatprep.subr.bf16.mxu0 %v6407_v7  ;;  %2617 = vmatprep.subr.bf16.mxu1 %v6408_v55  ;;  %v6440_v55 = vld [vmem:[#allocation96_spill] sm:$0xff] }
 0x890   :  { %2577 = vmatpush1.bf16.msra.mxu0 %v6409_v50  ;;  %2618 = vmatpush1.bf16.msra.mxu1 %v6410_v10 }
 0x891   :  { %2578 = vmatprep.subr.bf16.mxu0 %v6411_v52  ;;  %2619 = vmatprep.subr.bf16.mxu1 %v6412_v17  ;;  %v6441_v17 = vld [vmem:[#allocation97_spill] sm:$0xff] }
 0x894   :  { %2579 = vmatpush1.bf16.msra.mxu0 %v6413_v19  ;;  %2620 = vmatpush1.bf16.msra.mxu1 %v6414_v20  ;;  %v6442_v20 = vld [vmem:[#allocation98_spill] sm:$0xff] }
 0x895   :  { %2580 = vmatprep.subr.bf16.mxu0 %v6415_v21  ;;  %2621 = vmatprep.subr.bf16.mxu1 %v6416_v44 }
 0x898   :  { %2581 = vmatpush1.bf16.msra.mxu0 %v6417_v22  ;;  %2622 = vmatpush1.bf16.msra.mxu1 %v6418_v26 }
 0x899   :  { %2582 = vmatprep.subr.bf16.mxu0 %v6419_v27  ;;  %2623 = vmatprep.subr.bf16.mxu1 %v6420_v29 }
 0x89c   :  { %2583 = vmatpush1.bf16.msra.mxu0 %v6421_v31  ;;  %2624 = vmatpush1.bf16.msra.mxu1 %v6422_v35 }
 0x89d   :  { %2584 = vmatprep.subr.bf16.mxu0 %v6423_v2  ;;  %2625 = vmatprep.subr.bf16.mxu1 %v6424_v37 }
 0x8a0   :  { %2585 = vmatpush1.bf16.msra.mxu0 %v6425_v4  ;;  %2626 = vmatpush1.bf16.msra.mxu1 %v6426_v53 }
 0x8a1   :  { %2586 = vmatprep.subr.bf16.mxu0 %v6427_v60  ;;  %2627 = vmatprep.subr.bf16.mxu1 %v6428_v39 }
 0x8a4   :  { %2587 = vmatpush1.bf16.msra.mxu0 %v6429_v1  ;;  %2628 = vmatpush1.bf16.msra.mxu1 %v6430_v3 }
 0x8a5   :  { %2588 = vmatprep.subr.bf16.mxu0 %v6431_v45  ;;  %2629 = vmatprep.subr.bf16.mxu1 %v6432_v54 }
 0x8a8   :  { %2589 = vmatpush1.bf16.msra.mxu0 %v6433_v36  ;;  %2630 = vmatpush1.bf16.msra.mxu1 %v6434_v32 }
 0x91e   :  { %v2374_v58 = vpop.f32.mrb[68].mxu0  ;;  %v2415_v25 = vpop.f32.mrb[68].mxu1 }
 0x91f   :  { %v2375_v34 = vadd.f32 %v2374_v58, %v6435_v40  ;;  %v2376_v18 = vpop.f32.mrb[69].mxu0  ;;  %v2417_v59 = vpop.f32.mrb[69].mxu1  ;;  %v2416_v24 = vadd.f32 %v2415_v25, %v6437_v16 }
 0x920   :  { %v2377_v38 = vadd.f32 %v2376_v18, %v6436_v6  ;;  %v2378_v51 = vpop.f32.mrb[70].mxu0  ;;  %v2419_v28 = vpop.f32.mrb[70].mxu1  ;;  %v2418_v43 = vadd.f32 %v2417_v59, %v6438_v46 }
 0x921   :  { %v2979_v23 = vmul.f32 -1.442695, %v2375_v34  ;;  %v2379_v9 = vpop.f32.mrb[71].mxu0  ;;  %v2420_v47 = vpop.f32.mrb[71].mxu1  ;;  %v2981_v13 = vmul.f32 -1.442695, %v2416_v24 }
 0x922   :  { %v2980_v15 = vmul.f32 -1.442695, %v2377_v38 }
 0x923   :  { %3408 = vpow2.f32 %v2979_v23 }
 0x924   :  { %3410 = vpow2.f32 %v2980_v15 }
 0x925   :  { %3412 = vtanh.f32 %v2418_v43 }
 0x926   :  { %3414 = vpow2.f32 %v2981_v13 }
 0x92d   :  { %v3409_v57 = vpop.eup %3408 }
 0x92e   :  { %v2431_v8 = vadd.f32 1.0, %v3409_v57  ;;  %v3411_v30 = vpop.eup %3410 }
 0x92f   :  { %v2432_v33 = vadd.f32 1.0, %v3411_v30  ;;  %v3413_v49 = vpop.eup %3412 }
 0x930   :  { %3416 = vrcp.f32 %v2431_v8  ;;  %v3415_v11 = vpop.eup %3414 }
 0x931   :  { %3418 = vrcp.f32 %v2432_v33  ;;  %v2433_v48 = vadd.f32 1.0, %v3415_v11 }
 0x933   :  { %3420 = vrcp.f32 %v2433_v48 }
 0x93a   :  { %v3417_v12 = vpop.eup %3416 }
 0x93b   :  { %v2442_v0 = vmul.f32 %v3417_v12, %v3413_v49  ;;  %v3419_v42 = vpop.eup %3418 }
 0x93c   :  { %v2441_v63 = vmul.f32 %v3419_v42, %v5408_v56 }
 0x93d   :  { %v3421_v31 = vpop.eup %3420 }
 0x93e   :  { %v2481_v41 = vpop.f32.mrb[72].mxu0  ;;  %v2522_v5 = vpop.f32.mrb[72].mxu1  ;;  %v5520_v14 = vadd.f32 %v2442_v0, %v2441_v63 }
 0x93f   :  { %v2529_v7 = vadd.f32 %v2481_v41, %v6439_v61  ;;  %v2531_v50 = vadd.f32 %v2522_v5, %v6440_v55  ;;  %v2483_v10 = vpop.f32.mrb[73].mxu0  ;;  %v2524_v52 = vpop.f32.mrb[73].mxu1 }
 0x940   :  { %v2530_v19 = vadd.f32 %v2483_v10, %v6441_v17  ;;  %v2532_v21 = vadd.f32 %v2524_v52, %v6442_v20  ;;  %v2485_v44 = vpop.f32.mrb[74].mxu0  ;;  %v2526_v22 = vpop.f32.mrb[74].mxu1  ;;  %3422 = vtanh.f32 %v5520_v14  ;;  %v3192_v10 = vld [vmem:[%s5587_s8] sm:$0xff]   ;;  %v3775_v52 = vmov 0.0   ;;  %v3193_v17 = vld [vmem:[%s5587_s8 + $0x8] sm:$0xff]  }
 0x941   :  { %v2982_v26 = vmul.f32 -1.442695, %v2529_v7  ;;  %v2486_v27 = vpop.f32.mrb[75].mxu0  ;;  %v2527_v56 = vpop.f32.mrb[75].mxu1  ;;  %v2984_v2 = vmul.f32 -1.442695, %v2531_v50  ;;  %3008 = vmatprep.subr.bf16.mxu0 %v3775_v52 }
 0x942   :  { %v2983_v29 = vmul.f32 -1.442695, %v2530_v19  ;;  %v3194_v27 = vld [vmem:[%s5587_s8 + $0x10] sm:$0xff]   ;;  %v3195_v56 = vld [vmem:[%s5587_s8 + $0x18] sm:$0xff]  }
 0x943   :  { %3424 = vpow2.f32 %v2982_v26 }
 0x944   :  { %3426 = vpow2.f32 %v2983_v29  ;;  %v3196_v29 = vld [vmem:[%s5587_s8 + $0x20] sm:$0xff]  }
 0x945   :  { %3428 = vtanh.f32 %v2532_v21 }
 0x946   :  { %3430 = vpow2.f32 %v2984_v2  ;;  %v3199_v2 = vld [vmem:[%s5587_s8 + $0x38] sm:$0xff]  }
 0x94a   :  { %v3423_v35 = vpop.eup %3422 }
 0x94b   :  { %v2445_v37 = vmul.f32 %v3423_v35, %v3421_v31  ;;  %v3197_v31 = vld [vmem:[%s5587_s8 + $0x28] sm:$0xff]   ;;  %v3198_v35 = vld [vmem:[%s5587_s8 + $0x30] sm:$0xff]  }
 0x94d   :  { %v3425_v4 = vpop.eup %3424  ;;  %v2446_v60 = vpack.c.bf16 %v2445_v37, %v2445_v37 }
 0x94e   :  { %v2542_v53 = vadd.f32 1.0, %v3425_v4  ;;  %v3427_v39 = vpop.eup %3426 }
 0x94f   :  { %v2543_v1 = vadd.f32 1.0, %v3427_v39  ;;  %2590 = vmatprep.mubr.bf16.mxu0 %v2446_v60  ;;  %2631 = vmatprep.mubr.bf16.mxu1 %v2446_v60  ;;  %v3429_v3 = vpop.eup %3428  ;;  %v2988_v39 = vld [vmem:[%s5585_s6] ss:$0 sm:$0xff]  ;;  %s3738_s6 = scalar_lea.vmem %s2818_s27, 128 }
 0x950   :  { %3432 = vrcp.f32 %v2542_v53  ;;  %v3431_v45 = vpop.eup %3430  ;;  %p3739_p4 = scmp.ne.s32.totalorder %s2818_s27, %s3738_s6  ;;  %p3744_p6 = scmp.lt.s32.totalorder %s3738_s6, %s3738_s6 }
 0x951   :  { %3434 = vrcp.f32 %v2543_v1  ;;  %v2544_v58 = vadd.f32 1.0, %v3431_v45 }
 0x952   :  { %p3745_p7 = por %p3744_p6, %p3743_p5 }
 0x953   :  { %3436 = vrcp.f32 %v2544_v58  ;;  %v2990_v58 = vld [vmem:[%s5588_s9] ss:$0 sm:$0xff] }
 0x954   :  { %p3746_p8 = pnand %p3745_p7, %p3739_p4 }
 0x95a   :  { %v3433_v54 = vpop.eup %3432 }
 0x95b   :  { %v2553_v36 = vmul.f32 %v3433_v54, %v3429_v3  ;;  %v3435_v32 = vpop.eup %3434  ;;  %v2989_v3 = vld [vmem:[%s5586_s7] ss:$0 sm:$0xff] }
 0x95c   :  { %v2552_v25 = vmul.f32 %v3435_v32, %v5416_v62 }
 0x95d   :  { %v3437_v18 = vpop.eup %3436 }
 0x95e   :  { %v2554_v34 = vadd.f32 %v2553_v36, %v2552_v25 }
 0x960   :  { %3438 = vtanh.f32 %v2554_v34 }
 0x96a   :  { %v3439_v59 = vpop.eup %3438 }
 0x96b   :  { %v2556_v38 = vmul.f32 %v3439_v59, %v3437_v18 }
 0x96d   :  { %v2557_v51 = vpack.c.bf16 %v2556_v38, %v2556_v38 }
 0x96f   :  { %2591 = vmatmul.mubr.bf16.vlgmr.msra.gmra.mrb[76].mxu0 %v2557_v51  ;;  %2632 = vmatmul.mubr.bf16.vlgmr.msra.gmra.mrb[76].mxu1 %v2557_v51 }
 0x970   :  { %3009 = vmatpush3.bf16.msra.mxu0 %v3192_v10  ;;  %3024 = vmatprep.mubr.msk.bf16.mxu0 %vm3776_vm2, %v3775_v52 }
 0x971   :  { %3010 = vmatprep.subr.bf16.mxu0 %v3775_v52 }
 0x974   :  { %3011 = vmatpush3.bf16.msra.mxu0 %v3193_v17 }
 0x975   :  { %3012 = vmatprep.subr.bf16.mxu0 %v3775_v52 }
 0x978   :  { %3013 = vmatpush3.bf16.msra.mxu0 %v3194_v27 }
 0x979   :  { %3014 = vmatprep.subr.bf16.mxu0 %v3775_v52 }
 0x97c   :  { %3015 = vmatpush3.bf16.msra.mxu0 %v3195_v56 }
 0x97d   :  { %3016 = vmatprep.subr.bf16.mxu0 %v3775_v52 }
 0x980   :  { %3017 = vmatpush3.bf16.msra.mxu0 %v3196_v29 }
 0x981   :  { %3018 = vmatprep.subr.bf16.mxu0 %v3775_v52 }
 0x984   :  { %3019 = vmatpush3.bf16.msra.mxu0 %v3197_v31 }
 0x985   :  { %3020 = vmatprep.subr.bf16.mxu0 %v3775_v52 }
 0x988   :  { %3021 = vmatpush3.bf16.msra.mxu0 %v3198_v35 }
 0x989   :  { %3022 = vmatprep.subr.bf16.mxu0 %v3775_v52 }
 0x98c   :  { %3023 = vmatpush3.bf16.msra.mxu0 %v3199_v2 }
 0xa42   :  { %v2592_v28 = vpop.f32.mrb[76].mxu0  ;;  %v2633_v23 = vpop.f32.mrb[76].mxu1 }
 0xa43   :  { %v2593_v9 = vadd.f32 %v2592_v28, %v6435_v40  ;;  %v2594_v47 = vpop.f32.mrb[77].mxu0  ;;  %v2635_v15 = vpop.f32.mrb[77].mxu1  ;;  %v2634_v33 = vadd.f32 %v2633_v23, %v6437_v16 }
 0xa44   :  { %v2595_v24 = vadd.f32 %v2594_v47, %v6436_v6  ;;  %v2596_v43 = vpop.f32.mrb[78].mxu0  ;;  %v2637_v13 = vpop.f32.mrb[78].mxu1  ;;  %v2636_v49 = vadd.f32 %v2635_v15, %v6438_v46 }
 0xa45   :  { %v2985_v62 = vmul.f32 -1.442695, %v2593_v9  ;;  %v2597_v57 = vpop.f32.mrb[79].mxu0  ;;  %v2638_v8 = vpop.f32.mrb[79].mxu1  ;;  %v2987_v11 = vmul.f32 -1.442695, %v2634_v33 }
 0xa46   :  { %v2986_v30 = vmul.f32 -1.442695, %v2595_v24 }
 0xa47   :  { %3440 = vpow2.f32 %v2985_v62 }
 0xa48   :  { %3442 = vpow2.f32 %v2986_v30 }
 0xa49   :  { %3444 = vtanh.f32 %v2636_v49 }
 0xa4a   :  { %3446 = vpow2.f32 %v2987_v11 }
 0xa51   :  { %v3441_v12 = vpop.eup %3440 }
 0xa52   :  { %v2649_v0 = vadd.f32 1.0, %v3441_v12  ;;  %v3443_v40 = vpop.eup %3442 }
 0xa53   :  { %v2650_v6 = vadd.f32 1.0, %v3443_v40  ;;  %v3445_v42 = vpop.eup %3444 }
 0xa54   :  { %3448 = vrcp.f32 %v2649_v0  ;;  %v3447_v48 = vpop.eup %3446 }
 0xa55   :  { %3450 = vrcp.f32 %v2650_v6  ;;  %v2651_v61 = vadd.f32 1.0, %v3447_v48 }
 0xa57   :  { %3452 = vrcp.f32 %v2651_v61 }
 0xa5e   :  { %v3449_v63 = vpop.eup %3448 }
 0xa5f   :  { %v2660_v41 = vmul.f32 %v3449_v63, %v3445_v42  ;;  %v3451_v5 = vpop.eup %3450 }
 0xa60   :  { %v2659_v7 = vmul.f32 %v3451_v5, %v5520_v14  ;;  %v6443_v14 = vlaneseq }
 0xa61   :  { %v3453_v46 = vpop.eup %3452 }
 0xa62   :  { %v2661_v16 = vadd.f32 %v2660_v41, %v2659_v7  ;;  %v2665_v19 = vand.u32 127, %v6443_v14 }
 0xa64   :  { %3454 = vtanh.f32 %v2661_v16  ;;  %vm2666_vm1 = vcmp.lt.s32.totalorder %v2665_v19, 32 }
 0xa6e   :  { %v3455_v55 = vpop.eup %3454 }
 0xa6f   :  { %v2663_v50 = vmul.f32 %v3455_v55, %v3453_v46 }
 0xa71   :  { %2667 = vadd.xlane.f32.xlu0 %v2663_v50 }
 0xafe   :  { %v2668_v20 = vpop.xlane.xlu0 %2667 }
 0xaff   :  { %v2669_v21 = vmul.f32 0.03125, %v2668_v20 }
 0xb01   :  { %v2670_v44 = vsub.f32 %v2663_v50, %v2669_v21 }
 0xb03   :  { %v2673_v22 = vsel %vm2666_vm1, %v2670_v44, 0.0 }
 0xb04   :  { %v2674_v26 = vmul.f32 %v2673_v22, %v2673_v22 }
 0xb06   :  { %2675 = vadd.xlane.f32.xlu0 %v2674_v26 }
 0xb93   :  { %v2676_v37 = vpop.xlane.xlu0 %2675 }
 0xb94   :  { %v2677_v4 = vmul.f32 0.03125, %v2676_v37 }
 0xb96   :  { %v2678_v53 = vadd.f32 1e-05, %v2677_v4 }
 0xb98   :  { %3456 = vrsqrt.f32 %v2678_v53 }
 0xba2   :  { %v3457_v60 = vpop.eup %3456 }
 0xba3   :  { %v2680_v1 = vmul.f32 %v3457_v60, %v2673_v22 }
 0xba5   :  { %v2688_v45 = vmul.f32 %v2988_v39, %v2680_v1 }
 0xba7   :  { %v2696_v54 = vadd.f32 %v2989_v3, %v2688_v45 }
 0xba9   :  { %v2697_v36 = vmax.f32 %v2696_v54, 0.0 }
 0xbab   :  { %v2698_v32 = vpack.c.bf16 %v2697_v36, %v2697_v36 }
 0xbad   :  { %3025 = vmatmul.mubr.bf16.vlgmr.msra.gmra.mrb[80].mxu0 %v2698_v32 }
 0xc80   :  { %v2804_v25 = vpop.f32.mrb[80].mxu0 }
 0xc81   :  { %v2805_v34 = vadd.f32 %v2990_v58, %v2804_v25  ;;  %v3026_v18 = vpop.f32.mrb[81].mxu0 }
 0xc82   :  { %v2807_v59 = vpop.f32.mrb[82].mxu0 }
 0xc83   :  { %2810 = vst [vmem:[#allocation10] sm:$0xff] %v2805_v34  ;;  %v3027_v38 = vpop.f32.mrb[83].mxu0 }
 0xc84   :  { %3749 = shalt.err (!%p3746_p8)
}
 0xc85   :  { %s3750_s9 = scalar_lea.hbm %s5589_s10, 128 }
 0xc86   :  { %p3751_p9 = scmp.ne.s32.totalorder %s5589_s10, %s3750_s9  ;;  %p3754_p10 = scmp.lt.u32.totalorder %s3750_s9, %s5589_s10 }
 0xc88   :  { %p3756_p11 = pnand %p3754_p10, %p3751_p9 }
 0xc8a   :  { %3759 = shalt.err (!%p3756_p11)
}
 0xc8b   :  { %2820 = dma.vmem_to_hbm [thread:$0]  %s2818_s27, 128, %s5589_s10, [#allocation4]  }
 0xc8c   :  { %3766 = dma.done.wait [#allocation4], 128  }
 0xc8d   :  { %3767 = vsyncadd [#allocation4], 4294967168 }
 0xc8e   :  { %2824 = vsyncpa [#allocation3], 1 }
 0xc8f   :  { %2825 = vsyncpa [#allocation6], 1 }
 0xc90   :  { %2826 = vsyncpa [#allocation9], 1 }
 0xc91   :  { %2827 = vsyncpa [#allocation4], 1 }

</bundles_post_ra>
